<compile_context>
chip_gen: v6e
topology: v6e:2x2x1
jax: 0.10.0
libtpu: 0.0.40
codegen_flags: <defaults>
</compile_context>

<pallas_src>
import functools

import jax
import jax.numpy as jnp
from jax.experimental import pallas as pl
from jax.experimental.pallas import tpu as pltpu


# ----------------------------------------------------------------------------
# Fused forward kernel
# ----------------------------------------------------------------------------
def _command_scorer_kernel(
        obs_ref, cmd_ref, state_ref,            # ids (N,1) int32; state (BP,128) f32
        gi_tab_ref,                               # (2, V, 384): enc / cmd (emb@Wih + bi)
        whh_ref,                                  # (4, 128, 384): enc/cmd/state Whh, state Wih
        bias_ref,                                 # (6, 384): state bi; enc/cmd/state bhn; crit_b; att_b
        head_ref,                                 # (3, 128): crit_w, att_w_s, att_w_c
        scores_ref, value_ref, new_state_ref,    # outputs
        *, L, Lc, B, C):
    BP, GP = state_ref.shape                      # padded batch rows (8), gate pitch (128)
    CP = cmd_ref.shape[0] // Lc                   # padded command rows per step (8)
    V = gi_tab_ref.shape[1]

    def onehot(ids_ref):
        n = ids_ref.shape[0]
        iota = jax.lax.broadcasted_iota(jnp.int32, (n, V), 1)
        return (ids_ref[...] == iota).astype(jnp.float32)            # (n, V), exact gather

    def gru_step(gi, h, whh, bhn):
        # gi already contains x @ W_ih + b_i (r/z biases pre-summed with b_hh,
        # b_hn kept separate => exact PyTorch GRU semantics).  Gates live in lane
        # blocks [0:128) r, [128:256) z, [256:384) n, so every slice is whole-vreg.
        gh = jnp.dot(h, whh, preferred_element_type=jnp.float32)     # (n, 384)
        r = jax.nn.sigmoid(gi[:, 0:GP] + gh[:, 0:GP])
        z = jax.nn.sigmoid(gi[:, GP:2 * GP] + gh[:, GP:2 * GP])
        n = jnp.tanh(gi[:, 2 * GP:] + r * (gh[:, 2 * GP:] + bhn))
        return (1.0 - z) * n + z * h

    # ---- hoisted input pre-activations: ONE matmul per sequence --------------
    gi_obs = jnp.dot(onehot(obs_ref), gi_tab_ref[0],
                     preferred_element_type=jnp.float32)              # (L*BP, 384)
    gi_cmd = jnp.dot(onehot(cmd_ref), gi_tab_ref[1],
                     preferred_element_type=jnp.float32)              # (Lc*CP, 384)

    # ---- encoder GRU over observation tokens (serial chain: only h @ Whh) ----
    h = jnp.zeros((BP, GP), jnp.float32)
    for t in range(L):
        h = gru_step(gi_obs[t * BP:(t + 1) * BP, :], h,
                     whh_ref[0], bias_ref[1:2, 0:GP])

    # ---- state GRU (one step): input transform of h_enc + carried state ------
    gi_state = (jnp.dot(h, whh_ref[3], preferred_element_type=jnp.float32)
                + bias_ref[0:1, :])
    h_state = gru_step(gi_state, state_ref[...], whh_ref[2], bias_ref[3:4, 0:GP])
    new_state_ref[...] = h_state

    # ---- command encoder GRU --------------------------------------------------
    # TODO(synk): on v7x this chain is independent of the obs encoder and could run
    #             on the second TensorCore via pl.core_map; kept single-core for
    #             v5e/v6e portability.
    hc = jnp.zeros((CP, GP), jnp.float32)
    for t in range(Lc):
        hc = gru_step(gi_cmd[t * CP:(t + 1) * CP, :], hc,
                      whh_ref[1], bias_ref[2:3, 0:GP])

    # ---- heads: critic + att state-term fused into one matmul ----------------
    hs2 = jax.lax.dot_general(h_state, head_ref[0:2, :],
                              dimension_numbers=(((1,), (1,)), ((), ())),
                              preferred_element_type=jnp.float32)     # (BP, 2)
    value_ref[...] = hs2[:B, 0:1] + bias_ref[4:5, 0:1]
    c_term = jax.lax.dot_general(head_ref[2:3, :], hc,                # (1, CP)
                                 dimension_numbers=(((1,), (1,)), ((), ())),
                                 preferred_element_type=jnp.float32)
    scores_ref[...] = jnp.maximum(hs2[:B, 1:2] + c_term[:, :C]
                                  + bias_ref[5:6, 0:1], 0.0)


# ----------------------------------------------------------------------------
# Wrapper: single fused pallas_call + sampling
# ----------------------------------------------------------------------------
_GP = 128   # gate pitch / padded hidden width (one full lane block per gate)
_BP = 8     # sublane-padded batch rows per step
_CP = 8     # sublane-padded command rows per step


def command_scorer_forward(packed, obs, commands, state_hidden, sample_key):
    """obs: (L, B) int32, commands: (Lc, C) int32, state_hidden: (B, H) float32.
    Returns (scores (1,B,C), index (1,B,1), value (1,B,1), new_state_hidden (B,H))."""
    L, B = obs.shape
    Lc, C = commands.shape
    H = state_hidden.shape[1]

    # Pad batch / command rows to 8 sublanes so every per-step row slice of the
    # hoisted pre-activations is tile-aligned; pad ids with token 0 (harmless).
    obs_p = jnp.zeros((L, _BP), jnp.int32).at[:, :B].set(obs).reshape(L * _BP, 1)
    cmd_p = jnp.zeros((Lc, _CP), jnp.int32).at[:, :C].set(commands).reshape(Lc * _CP, 1)
    state_p = jnp.zeros((_BP, _GP), jnp.float32).at[:B, :H].set(state_hidden)

    vmem = pltpu.MemorySpace.VMEM
    kernel = functools.partial(_command_scorer_kernel, L=L, Lc=Lc, B=B, C=C)
    scores, value, new_state = pl.pallas_call(
        kernel,
        out_shape=(jax.ShapeDtypeStruct((B, C), jnp.float32),
                   jax.ShapeDtypeStruct((B, 1), jnp.float32),
                   jax.ShapeDtypeStruct((_BP, _GP), jnp.float32)),
        in_specs=[pl.BlockSpec(memory_space=vmem)] * 7,
        out_specs=(pl.BlockSpec(memory_space=vmem),) * 3,
    )(obs_p, cmd_p, state_p,
      packed["gi_tables"], packed["whh_all"], packed["bias_all"], packed["head_w"])

    # TODO(synk): torch.multinomial's RNG stream cannot be reproduced; an equivalent
    # categorical draw (∝ softmax(scores)) is made with a JAX key on the ReLU'd scores.
    index = jax.random.categorical(sample_key, scores, axis=-1)        # (B,)
    index = index[None, :, None].astype(jnp.int32)                     # (1, B, 1)
    return scores[None], index, value[None], new_state[:B, :H]


# ----------------------------------------------------------------------------
# Parameter packing: fold embedding @ W_ih + b_i, lane-align gates, stack arrays
# ----------------------------------------------------------------------------
def _gate_pad_cols(w, H, gp=_GP):
    """(rows, 3H) -> (rows, 3*gp) with gate g placed at lane offset g*gp."""
    out = jnp.zeros((w.shape[0], 3 * gp), jnp.float32)
    for g in range(3):
        out = out.at[:, g * gp:g * gp + H].set(w[:, g * H:(g + 1) * H])
    return out


def _row_pad(w, rp=_GP):
    return jnp.pad(w, ((0, rp - w.shape[0]), (0, 0)))


def pack_params(p, hidden):
    H = hidden
    emb = p["embedding"]
    gi_tables = jnp.stack([
        emb @ _gate_pad_cols(p["enc_wih"], H) + _gate_pad_cols(p["enc_bi"], H),
        emb @ _gate_pad_cols(p["cmd_wih"], H) + _gate_pad_cols(p["cmd_bi"], H),
    ])                                                                  # (2, V, 384)
    whh_all = jnp.stack([
        _row_pad(_gate_pad_cols(p["enc_whh"], H)),
        _row_pad(_gate_pad_cols(p["cmd_whh"], H)),
        _row_pad(_gate_pad_cols(p["state_whh"], H)),
        _row_pad(_gate_pad_cols(p["state_wih"], H)),
    ])                                                                  # (4, 128, 384)
    bias_all = jnp.zeros((6, 3 * _GP), jnp.float32)
    bias_all = bias_all.at[0].set(_gate_pad_cols(p["state_bi"], H)[0])
    bias_all = bias_all.at[1, :H].set(p["enc_bhn"][0])
    bias_all = bias_all.at[2, :H].set(p["cmd_bhn"][0])
    bias_all = bias_all.at[3, :H].set(p["state_bhn"][0])
    bias_all = bias_all.at[4, 0].set(p["crit_b"][0, 0])
    bias_all = bias_all.at[5, 0].set(p["att_b"][0, 0])
    head_w = jnp.zeros((3, _GP), jnp.float32)
    head_w = head_w.at[0, :H].set(p["crit_w"][:, 0])
    head_w = head_w.at[1, :H].set(p["att_w_s"][:, 0])
    head_w = head_w.at[2, :H].set(p["att_w_c"][0, :])
    return {"gi_tables": gi_tables, "whh_all": whh_all,
            "bias_all": bias_all, "head_w": head_w}


# ----------------------------------------------------------------------------
# Parameters (deterministic synthetic init; cannot reproduce torch.manual_seed(42))
# ----------------------------------------------------------------------------
def init_params(key, vocab, hidden):
    ks = jax.random.split(key, 20)
    lim = 1.0 / float(hidden) ** 0.5

    def u(k, shape, lo=-lim, hi=lim):
        return jax.random.uniform(k, shape, jnp.float32, lo, hi)

    p = {"embedding": jax.random.normal(ks[0], (vocab, hidden), jnp.float32)}
    for i, name in enumerate(("enc", "cmd", "state")):
        base = 1 + 4 * i
        p[f"{name}_wih"] = u(ks[base + 0], (hidden, 3 * hidden))   # gate order (r, z, n)
        p[f"{name}_whh"] = u(ks[base + 1], (hidden, 3 * hidden))
        bih = u(ks[base + 2], (1, 3 * hidden))
        bhh = u(ks[base + 3], (1, 3 * hidden))
        # Pre-summed r/z biases; n-gate input bias kept, hidden n-bias passed separately.
        p[f"{name}_bi"] = jnp.concatenate(
            [bih[:, :2 * hidden] + bhh[:, :2 * hidden], bih[:, 2 * hidden:]], axis=1)
        p[f"{name}_bhn"] = bhh[:, 2 * hidden:]
    p["crit_w"] = u(ks[13], (hidden, 1))
    p["crit_b"] = u(ks[14], (1, 1))
    lim2 = 1.0 / float(2 * hidden) ** 0.5
    p["att_w_s"] = u(ks[15], (hidden, 1), -lim2, lim2)   # first H cols of att_cmd (state part)
    p["att_w_c"] = u(ks[16], (1, hidden), -lim2, lim2)   # last H cols of att_cmd (cmd part)
    p["att_b"] = u(ks[17], (1, 1), -lim2, lim2)
    return p


# ----------------------------------------------------------------------------
# Pure-JAX reference (for correctness check)
# ----------------------------------------------------------------------------
def _gru_cell_ref(x, h, wih, whh, bi, bhn):
    H = h.shape[1]
    gi = x @ wih + bi
    gh = h @ whh
    r = jax.nn.sigmoid(gi[:, :H] + gh[:, :H])
    z = jax.nn.sigmoid(gi[:, H:2 * H] + gh[:, H:2 * H])
    n = jnp.tanh(gi[:, 2 * H:] + r * (gh[:, 2 * H:] + bhn))
    return (1.0 - z) * n + z * h


def _forward_ref(params, obs, commands, state_hidden):
    emb = params["embedding"]
    x = jnp.take(emb, obs, axis=0)
    h = jnp.zeros((obs.shape[1], emb.shape[1]), jnp.float32)
    for t in range(obs.shape[0]):
        h = _gru_cell_ref(x[t], h, params["enc_wih"], params["enc_whh"],
                          params["enc_bi"], params["enc_bhn"])
    h_state = _gru_cell_ref(h, state_hidden, params["state_wih"], params["state_whh"],
                            params["state_bi"], params["state_bhn"])
    xc = jnp.take(emb, commands, axis=0)
    hc = jnp.zeros((commands.shape[1], emb.shape[1]), jnp.float32)
    for t in range(commands.shape[0]):
        hc = _gru_cell_ref(xc[t], hc, params["cmd_wih"], params["cmd_whh"],
                           params["cmd_bi"], params["cmd_bhn"])
    value = h_state @ params["crit_w"] + params["crit_b"]
    scores = jnp.maximum(h_state @ params["att_w_s"]
                         + (hc @ params["att_w_c"].T).T + params["att_b"], 0.0)
    return scores, value, h_state


# ----------------------------------------------------------------------------
if __name__ == "__main__":
    VOCAB, HIDDEN = 50, 32
    L, B = 8, 2          # obs:      (seq_len=8, batch=2)
    LC, C = 5, 6         # commands: (cmd_len=5, nb_cmds=6)

    key = jax.random.PRNGKey(0)
    kp, kobs, kcmd, ksample = jax.random.split(key, 4)

    params = init_params(kp, VOCAB, HIDDEN)
    packed = jax.tree.map(jax.block_until_ready, pack_params(params, HIDDEN))
    obs = jax.random.randint(kobs, (L, B), 0, VOCAB, dtype=jnp.int32)
    commands = jax.random.randint(kcmd, (LC, C), 0, VOCAB, dtype=jnp.int32)
    state_hidden = jnp.zeros((B, HIDDEN), jnp.float32)   # reset_hidden(batch_size)

    fwd = jax.jit(command_scorer_forward)
    scores, index, value, new_state = fwd(packed, obs, commands, state_hidden, ksample)
    jax.block_until_ready((scores, index, value, new_state))

    assert scores.shape == (1, B, C)
    assert index.shape == (1, B, 1)
    assert value.shape == (1, B, 1)
    assert new_state.shape == (B, HIDDEN)

    # Correctness check against a pure-JAX reference of the same forward.
    ref_scores, ref_value, ref_state = _forward_ref(params, obs, commands, state_hidden)
    assert jnp.allclose(scores[0], ref_scores, rtol=1e-4, atol=1e-4)
    assert jnp.allclose(value[0], ref_value, rtol=1e-4, atol=1e-4)
    assert jnp.allclose(new_state, ref_state, rtol=1e-4, atol=1e-4)

    print("KERNEL_OK")
</pallas_src>

<mosaic_0001>
module attributes {stable_mosaic.version = 11 : i64} {
  func.func @_command_scorer_kernel(%arg0: memref<64x1xi32, #tpu.memory_space<vmem>>, %arg1: memref<40x1xi32, #tpu.memory_space<vmem>>, %arg2: memref<8x128xf32, #tpu.memory_space<vmem>>, %arg3: memref<2x50x384xf32, #tpu.memory_space<vmem>>, %arg4: memref<4x128x384xf32, #tpu.memory_space<vmem>>, %arg5: memref<6x384xf32, #tpu.memory_space<vmem>>, %arg6: memref<3x128xf32, #tpu.memory_space<vmem>>, %arg7: memref<2x6xf32, #tpu.memory_space<vmem>>, %arg8: memref<2x1xf32, #tpu.memory_space<vmem>>, %arg9: memref<8x128xf32, #tpu.memory_space<vmem>>) attributes {dimension_semantics = [], scalar_prefetch = 0 : i64, scratch_operands = 0 : i64, tpu.core_type = #tpu.core_type<tc>} {
    %0 = tpu.iota {dimensions = array<i32: 1>} : vector<64x50xi32>
    %c0 = arith.constant 0 : index
    %c0_0 = arith.constant 0 : index
    %1 = vector.load %arg0[%c0, %c0_0] : memref<64x1xi32, #tpu.memory_space<vmem>>, vector<64x1xi32>
    %2 = vector.broadcast %1 : vector<64x1xi32> to vector<64x50xi32>
    %3 = arith.cmpi eq, %2, %0 : vector<64x50xi32>
    %4 = arith.extui %3 : vector<64x50xi1> to vector<64x50xi32>
    %5 = arith.sitofp %4 : vector<64x50xi32> to vector<64x50xf32>
    %c0_1 = arith.constant 0 : index
    %c0_2 = arith.constant 0 : index
    %c0_3 = arith.constant 0 : index
    %6 = vector.load %arg3[%c0_1, %c0_2, %c0_3] : memref<2x50x384xf32, #tpu.memory_space<vmem>>, vector<1x50x384xf32>
    %7 = vector.shape_cast %6 : vector<1x50x384xf32> to vector<50x384xf32>
    %cst = arith.constant dense<0.000000e+00> : vector<64x384xf32>
    %8 = tpu.matmul %5, %7, %cst {dimension_numbers = #tpu.dot_dimension_numbers<[1], [0], [0], [1], [0, 0, 1, 1], [], []>} : vector<64x50xf32>, vector<50x384xf32>, vector<64x384xf32> -> vector<64x384xf32>
    %9 = tpu.iota {dimensions = array<i32: 1>} : vector<40x50xi32>
    %c0_4 = arith.constant 0 : index
    %c0_5 = arith.constant 0 : index
    %10 = vector.load %arg1[%c0_4, %c0_5] : memref<40x1xi32, #tpu.memory_space<vmem>>, vector<40x1xi32>
    %11 = vector.broadcast %10 : vector<40x1xi32> to vector<40x50xi32>
    %12 = arith.cmpi eq, %11, %9 : vector<40x50xi32>
    %13 = arith.extui %12 : vector<40x50xi1> to vector<40x50xi32>
    %14 = arith.sitofp %13 : vector<40x50xi32> to vector<40x50xf32>
    %c1 = arith.constant 1 : index
    %c0_6 = arith.constant 0 : index
    %c0_7 = arith.constant 0 : index
    %15 = vector.load %arg3[%c1, %c0_6, %c0_7] : memref<2x50x384xf32, #tpu.memory_space<vmem>>, vector<1x50x384xf32>
    %16 = vector.shape_cast %15 : vector<1x50x384xf32> to vector<50x384xf32>
    %cst_8 = arith.constant dense<0.000000e+00> : vector<40x384xf32>
    %17 = tpu.matmul %14, %16, %cst_8 {dimension_numbers = #tpu.dot_dimension_numbers<[1], [0], [0], [1], [0, 0, 1, 1], [], []>} : vector<40x50xf32>, vector<50x384xf32>, vector<40x384xf32> -> vector<40x384xf32>
    %cst_9 = arith.constant 0.000000e+00 : f32
    %18 = vector.broadcast %cst_9 : f32 to vector<8x128xf32>
    %19 = vector.extract_strided_slice %8 {offsets = [0, 0], sizes = [8, 384], strides = [1, 1]} : vector<64x384xf32> to vector<8x384xf32>
    %c0_10 = arith.constant 0 : index
    %c0_11 = arith.constant 0 : index
    %c0_12 = arith.constant 0 : index
    %20 = vector.load %arg4[%c0_10, %c0_11, %c0_12] : memref<4x128x384xf32, #tpu.memory_space<vmem>>, vector<1x128x384xf32>
    %21 = vector.shape_cast %20 : vector<1x128x384xf32> to vector<128x384xf32>
    %c1_13 = arith.constant 1 : index
    %c0_14 = arith.constant 0 : index
    %22 = vector.load %arg5[%c1_13, %c0_14] : memref<6x384xf32, #tpu.memory_space<vmem>>, vector<1x128xf32>
    %cst_15 = arith.constant dense<0.000000e+00> : vector<8x384xf32>
    %23 = tpu.matmul %18, %21, %cst_15 {dimension_numbers = #tpu.dot_dimension_numbers<[1], [0], [0], [1], [0, 0, 1, 1], [], []>} : vector<8x128xf32>, vector<128x384xf32>, vector<8x384xf32> -> vector<8x384xf32>
    %24 = vector.extract_strided_slice %19 {offsets = [0, 0], sizes = [8, 128], strides = [1, 1]} : vector<8x384xf32> to vector<8x128xf32>
    %25 = vector.extract_strided_slice %23 {offsets = [0, 0], sizes = [8, 128], strides = [1, 1]} : vector<8x384xf32> to vector<8x128xf32>
    %26 = arith.addf %24, %25 : vector<8x128xf32>
    %27 = arith.negf %26 : vector<8x128xf32>
    %28 = math.exp %27 : vector<8x128xf32>
    %cst_16 = arith.constant 1.000000e+00 : f32
    %29 = vector.broadcast %cst_16 : f32 to vector<8x128xf32>
    %30 = arith.addf %29, %28 : vector<8x128xf32>
    %31 = arith.divf %29, %30 : vector<8x128xf32>
    %32 = vector.extract_strided_slice %19 {offsets = [0, 128], sizes = [8, 128], strides = [1, 1]} : vector<8x384xf32> to vector<8x128xf32>
    %33 = vector.extract_strided_slice %23 {offsets = [0, 128], sizes = [8, 128], strides = [1, 1]} : vector<8x384xf32> to vector<8x128xf32>
    %34 = arith.addf %32, %33 : vector<8x128xf32>
    %35 = arith.negf %34 : vector<8x128xf32>
    %36 = math.exp %35 : vector<8x128xf32>
    %cst_17 = arith.constant 1.000000e+00 : f32
    %37 = vector.broadcast %cst_17 : f32 to vector<8x128xf32>
    %38 = arith.addf %37, %36 : vector<8x128xf32>
    %39 = arith.divf %37, %38 : vector<8x128xf32>
    %40 = vector.extract_strided_slice %19 {offsets = [0, 256], sizes = [8, 128], strides = [1, 1]} : vector<8x384xf32> to vector<8x128xf32>
    %41 = vector.extract_strided_slice %23 {offsets = [0, 256], sizes = [8, 128], strides = [1, 1]} : vector<8x384xf32> to vector<8x128xf32>
    %42 = vector.broadcast %22 : vector<1x128xf32> to vector<8x128xf32>
    %43 = arith.addf %41, %42 : vector<8x128xf32>
    %44 = arith.mulf %31, %43 : vector<8x128xf32>
    %45 = arith.addf %40, %44 : vector<8x128xf32>
    %46 = math.tanh %45 : vector<8x128xf32>
    %cst_18 = arith.constant 1.000000e+00 : f32
    %47 = vector.broadcast %cst_18 : f32 to vector<8x128xf32>
    %48 = arith.subf %47, %39 : vector<8x128xf32>
    %49 = arith.mulf %48, %46 : vector<8x128xf32>
    %50 = arith.mulf %39, %18 : vector<8x128xf32>
    %51 = arith.addf %49, %50 : vector<8x128xf32>
    %52 = vector.extract_strided_slice %8 {offsets = [8, 0], sizes = [8, 384], strides = [1, 1]} : vector<64x384xf32> to vector<8x384xf32>
    %c0_19 = arith.constant 0 : index
    %c0_20 = arith.constant 0 : index
    %c0_21 = arith.constant 0 : index
    %53 = vector.load %arg4[%c0_19, %c0_20, %c0_21] : memref<4x128x384xf32, #tpu.memory_space<vmem>>, vector<1x128x384xf32>
    %54 = vector.shape_cast %53 : vector<1x128x384xf32> to vector<128x384xf32>
    %c1_22 = arith.constant 1 : index
    %c0_23 = arith.constant 0 : index
    %55 = vector.load %arg5[%c1_22, %c0_23] : memref<6x384xf32, #tpu.memory_space<vmem>>, vector<1x128xf32>
    %cst_24 = arith.constant dense<0.000000e+00> : vector<8x384xf32>
    %56 = tpu.matmul %51, %54, %cst_24 {dimension_numbers = #tpu.dot_dimension_numbers<[1], [0], [0], [1], [0, 0, 1, 1], [], []>} : vector<8x128xf32>, vector<128x384xf32>, vector<8x384xf32> -> vector<8x384xf32>
    %57 = vector.extract_strided_slice %52 {offsets = [0, 0], sizes = [8, 128], strides = [1, 1]} : vector<8x384xf32> to vector<8x128xf32>
    %58 = vector.extract_strided_slice %56 {offsets = [0, 0], sizes = [8, 128], strides = [1, 1]} : vector<8x384xf32> to vector<8x128xf32>
    %59 = arith.addf %57, %58 : vector<8x128xf32>
    %60 = arith.negf %59 : vector<8x128xf32>
    %61 = math.exp %60 : vector<8x128xf32>
    %cst_25 = arith.constant 1.000000e+00 : f32
    %62 = vector.broadcast %cst_25 : f32 to vector<8x128xf32>
    %63 = arith.addf %62, %61 : vector<8x128xf32>
    %64 = arith.divf %62, %63 : vector<8x128xf32>
    %65 = vector.extract_strided_slice %52 {offsets = [0, 128], sizes = [8, 128], strides = [1, 1]} : vector<8x384xf32> to vector<8x128xf32>
    %66 = vector.extract_strided_slice %56 {offsets = [0, 128], sizes = [8, 128], strides = [1, 1]} : vector<8x384xf32> to vector<8x128xf32>
    %67 = arith.addf %65, %66 : vector<8x128xf32>
    %68 = arith.negf %67 : vector<8x128xf32>
    %69 = math.exp %68 : vector<8x128xf32>
    %cst_26 = arith.constant 1.000000e+00 : f32
    %70 = vector.broadcast %cst_26 : f32 to vector<8x128xf32>
    %71 = arith.addf %70, %69 : vector<8x128xf32>
    %72 = arith.divf %70, %71 : vector<8x128xf32>
    %73 = vector.extract_strided_slice %52 {offsets = [0, 256], sizes = [8, 128], strides = [1, 1]} : vector<8x384xf32> to vector<8x128xf32>
    %74 = vector.extract_strided_slice %56 {offsets = [0, 256], sizes = [8, 128], strides = [1, 1]} : vector<8x384xf32> to vector<8x128xf32>
    %75 = vector.broadcast %55 : vector<1x128xf32> to vector<8x128xf32>
    %76 = arith.addf %74, %75 : vector<8x128xf32>
    %77 = arith.mulf %64, %76 : vector<8x128xf32>
    %78 = arith.addf %73, %77 : vector<8x128xf32>
    %79 = math.tanh %78 : vector<8x128xf32>
    %cst_27 = arith.constant 1.000000e+00 : f32
    %80 = vector.broadcast %cst_27 : f32 to vector<8x128xf32>
    %81 = arith.subf %80, %72 : vector<8x128xf32>
    %82 = arith.mulf %81, %79 : vector<8x128xf32>
    %83 = arith.mulf %72, %51 : vector<8x128xf32>
    %84 = arith.addf %82, %83 : vector<8x128xf32>
    %85 = vector.extract_strided_slice %8 {offsets = [16, 0], sizes = [8, 384], strides = [1, 1]} : vector<64x384xf32> to vector<8x384xf32>
    %c0_28 = arith.constant 0 : index
    %c0_29 = arith.constant 0 : index
    %c0_30 = arith.constant 0 : index
    %86 = vector.load %arg4[%c0_28, %c0_29, %c0_30] : memref<4x128x384xf32, #tpu.memory_space<vmem>>, vector<1x128x384xf32>
    %87 = vector.shape_cast %86 : vector<1x128x384xf32> to vector<128x384xf32>
    %c1_31 = arith.constant 1 : index
    %c0_32 = arith.constant 0 : index
    %88 = vector.load %arg5[%c1_31, %c0_32] : memref<6x384xf32, #tpu.memory_space<vmem>>, vector<1x128xf32>
    %cst_33 = arith.constant dense<0.000000e+00> : vector<8x384xf32>
    %89 = tpu.matmul %84, %87, %cst_33 {dimension_numbers = #tpu.dot_dimension_numbers<[1], [0], [0], [1], [0, 0, 1, 1], [], []>} : vector<8x128xf32>, vector<128x384xf32>, vector<8x384xf32> -> vector<8x384xf32>
    %90 = vector.extract_strided_slice %85 {offsets = [0, 0], sizes = [8, 128], strides = [1, 1]} : vector<8x384xf32> to vector<8x128xf32>
    %91 = vector.extract_strided_slice %89 {offsets = [0, 0], sizes = [8, 128], strides = [1, 1]} : vector<8x384xf32> to vector<8x128xf32>
    %92 = arith.addf %90, %91 : vector<8x128xf32>
    %93 = arith.negf %92 : vector<8x128xf32>
    %94 = math.exp %93 : vector<8x128xf32>
    %cst_34 = arith.constant 1.000000e+00 : f32
    %95 = vector.broadcast %cst_34 : f32 to vector<8x128xf32>
    %96 = arith.addf %95, %94 : vector<8x128xf32>
    %97 = arith.divf %95, %96 : vector<8x128xf32>
    %98 = vector.extract_strided_slice %85 {offsets = [0, 128], sizes = [8, 128], strides = [1, 1]} : vector<8x384xf32> to vector<8x128xf32>
    %99 = vector.extract_strided_slice %89 {offsets = [0, 128], sizes = [8, 128], strides = [1, 1]} : vector<8x384xf32> to vector<8x128xf32>
    %100 = arith.addf %98, %99 : vector<8x128xf32>
    %101 = arith.negf %100 : vector<8x128xf32>
    %102 = math.exp %101 : vector<8x128xf32>
    %cst_35 = arith.constant 1.000000e+00 : f32
    %103 = vector.broadcast %cst_35 : f32 to vector<8x128xf32>
    %104 = arith.addf %103, %102 : vector<8x128xf32>
    %105 = arith.divf %103, %104 : vector<8x128xf32>
    %106 = vector.extract_strided_slice %85 {offsets = [0, 256], sizes = [8, 128], strides = [1, 1]} : vector<8x384xf32> to vector<8x128xf32>
    %107 = vector.extract_strided_slice %89 {offsets = [0, 256], sizes = [8, 128], strides = [1, 1]} : vector<8x384xf32> to vector<8x128xf32>
    %108 = vector.broadcast %88 : vector<1x128xf32> to vector<8x128xf32>
    %109 = arith.addf %107, %108 : vector<8x128xf32>
    %110 = arith.mulf %97, %109 : vector<8x128xf32>
    %111 = arith.addf %106, %110 : vector<8x128xf32>
    %112 = math.tanh %111 : vector<8x128xf32>
    %cst_36 = arith.constant 1.000000e+00 : f32
    %113 = vector.broadcast %cst_36 : f32 to vector<8x128xf32>
    %114 = arith.subf %113, %105 : vector<8x128xf32>
    %115 = arith.mulf %114, %112 : vector<8x128xf32>
    %116 = arith.mulf %105, %84 : vector<8x128xf32>
    %117 = arith.addf %115, %116 : vector<8x128xf32>
    %118 = vector.extract_strided_slice %8 {offsets = [24, 0], sizes = [8, 384], strides = [1, 1]} : vector<64x384xf32> to vector<8x384xf32>
    %c0_37 = arith.constant 0 : index
    %c0_38 = arith.constant 0 : index
    %c0_39 = arith.constant 0 : index
    %119 = vector.load %arg4[%c0_37, %c0_38, %c0_39] : memref<4x128x384xf32, #tpu.memory_space<vmem>>, vector<1x128x384xf32>
    %120 = vector.shape_cast %119 : vector<1x128x384xf32> to vector<128x384xf32>
    %c1_40 = arith.constant 1 : index
    %c0_41 = arith.constant 0 : index
    %121 = vector.load %arg5[%c1_40, %c0_41] : memref<6x384xf32, #tpu.memory_space<vmem>>, vector<1x128xf32>
    %cst_42 = arith.constant dense<0.000000e+00> : vector<8x384xf32>
    %122 = tpu.matmul %117, %120, %cst_42 {dimension_numbers = #tpu.dot_dimension_numbers<[1], [0], [0], [1], [0, 0, 1, 1], [], []>} : vector<8x128xf32>, vector<128x384xf32>, vector<8x384xf32> -> vector<8x384xf32>
    %123 = vector.extract_strided_slice %118 {offsets = [0, 0], sizes = [8, 128], strides = [1, 1]} : vector<8x384xf32> to vector<8x128xf32>
    %124 = vector.extract_strided_slice %122 {offsets = [0, 0], sizes = [8, 128], strides = [1, 1]} : vector<8x384xf32> to vector<8x128xf32>
    %125 = arith.addf %123, %124 : vector<8x128xf32>
    %126 = arith.negf %125 : vector<8x128xf32>
    %127 = math.exp %126 : vector<8x128xf32>
    %cst_43 = arith.constant 1.000000e+00 : f32
    %128 = vector.broadcast %cst_43 : f32 to vector<8x128xf32>
    %129 = arith.addf %128, %127 : vector<8x128xf32>
    %130 = arith.divf %128, %129 : vector<8x128xf32>
    %131 = vector.extract_strided_slice %118 {offsets = [0, 128], sizes = [8, 128], strides = [1, 1]} : vector<8x384xf32> to vector<8x128xf32>
    %132 = vector.extract_strided_slice %122 {offsets = [0, 128], sizes = [8, 128], strides = [1, 1]} : vector<8x384xf32> to vector<8x128xf32>
    %133 = arith.addf %131, %132 : vector<8x128xf32>
    %134 = arith.negf %133 : vector<8x128xf32>
    %135 = math.exp %134 : vector<8x128xf32>
    %cst_44 = arith.constant 1.000000e+00 : f32
    %136 = vector.broadcast %cst_44 : f32 to vector<8x128xf32>
    %137 = arith.addf %136, %135 : vector<8x128xf32>
    %138 = arith.divf %136, %137 : vector<8x128xf32>
    %139 = vector.extract_strided_slice %118 {offsets = [0, 256], sizes = [8, 128], strides = [1, 1]} : vector<8x384xf32> to vector<8x128xf32>
    %140 = vector.extract_strided_slice %122 {offsets = [0, 256], sizes = [8, 128], strides = [1, 1]} : vector<8x384xf32> to vector<8x128xf32>
    %141 = vector.broadcast %121 : vector<1x128xf32> to vector<8x128xf32>
    %142 = arith.addf %140, %141 : vector<8x128xf32>
    %143 = arith.mulf %130, %142 : vector<8x128xf32>
    %144 = arith.addf %139, %143 : vector<8x128xf32>
    %145 = math.tanh %144 : vector<8x128xf32>
    %cst_45 = arith.constant 1.000000e+00 : f32
    %146 = vector.broadcast %cst_45 : f32 to vector<8x128xf32>
    %147 = arith.subf %146, %138 : vector<8x128xf32>
    %148 = arith.mulf %147, %145 : vector<8x128xf32>
    %149 = arith.mulf %138, %117 : vector<8x128xf32>
    %150 = arith.addf %148, %149 : vector<8x128xf32>
    %151 = vector.extract_strided_slice %8 {offsets = [32, 0], sizes = [8, 384], strides = [1, 1]} : vector<64x384xf32> to vector<8x384xf32>
    %c0_46 = arith.constant 0 : index
    %c0_47 = arith.constant 0 : index
    %c0_48 = arith.constant 0 : index
    %152 = vector.load %arg4[%c0_46, %c0_47, %c0_48] : memref<4x128x384xf32, #tpu.memory_space<vmem>>, vector<1x128x384xf32>
    %153 = vector.shape_cast %152 : vector<1x128x384xf32> to vector<128x384xf32>
    %c1_49 = arith.constant 1 : index
    %c0_50 = arith.constant 0 : index
    %154 = vector.load %arg5[%c1_49, %c0_50] : memref<6x384xf32, #tpu.memory_space<vmem>>, vector<1x128xf32>
    %cst_51 = arith.constant dense<0.000000e+00> : vector<8x384xf32>
    %155 = tpu.matmul %150, %153, %cst_51 {dimension_numbers = #tpu.dot_dimension_numbers<[1], [0], [0], [1], [0, 0, 1, 1], [], []>} : vector<8x128xf32>, vector<128x384xf32>, vector<8x384xf32> -> vector<8x384xf32>
    %156 = vector.extract_strided_slice %151 {offsets = [0, 0], sizes = [8, 128], strides = [1, 1]} : vector<8x384xf32> to vector<8x128xf32>
    %157 = vector.extract_strided_slice %155 {offsets = [0, 0], sizes = [8, 128], strides = [1, 1]} : vector<8x384xf32> to vector<8x128xf32>
    %158 = arith.addf %156, %157 : vector<8x128xf32>
    %159 = arith.negf %158 : vector<8x128xf32>
    %160 = math.exp %159 : vector<8x128xf32>
    %cst_52 = arith.constant 1.000000e+00 : f32
    %161 = vector.broadcast %cst_52 : f32 to vector<8x128xf32>
    %162 = arith.addf %161, %160 : vector<8x128xf32>
    %163 = arith.divf %161, %162 : vector<8x128xf32>
    %164 = vector.extract_strided_slice %151 {offsets = [0, 128], sizes = [8, 128], strides = [1, 1]} : vector<8x384xf32> to vector<8x128xf32>
    %165 = vector.extract_strided_slice %155 {offsets = [0, 128], sizes = [8, 128], strides = [1, 1]} : vector<8x384xf32> to vector<8x128xf32>
    %166 = arith.addf %164, %165 : vector<8x128xf32>
    %167 = arith.negf %166 : vector<8x128xf32>
    %168 = math.exp %167 : vector<8x128xf32>
    %cst_53 = arith.constant 1.000000e+00 : f32
    %169 = vector.broadcast %cst_53 : f32 to vector<8x128xf32>
    %170 = arith.addf %169, %168 : vector<8x128xf32>
    %171 = arith.divf %169, %170 : vector<8x128xf32>
    %172 = vector.extract_strided_slice %151 {offsets = [0, 256], sizes = [8, 128], strides = [1, 1]} : vector<8x384xf32> to vector<8x128xf32>
    %173 = vector.extract_strided_slice %155 {offsets = [0, 256], sizes = [8, 128], strides = [1, 1]} : vector<8x384xf32> to vector<8x128xf32>
    %174 = vector.broadcast %154 : vector<1x128xf32> to vector<8x128xf32>
    %175 = arith.addf %173, %174 : vector<8x128xf32>
    %176 = arith.mulf %163, %175 : vector<8x128xf32>
    %177 = arith.addf %172, %176 : vector<8x128xf32>
    %178 = math.tanh %177 : vector<8x128xf32>
    %cst_54 = arith.constant 1.000000e+00 : f32
    %179 = vector.broadcast %cst_54 : f32 to vector<8x128xf32>
    %180 = arith.subf %179, %171 : vector<8x128xf32>
    %181 = arith.mulf %180, %178 : vector<8x128xf32>
    %182 = arith.mulf %171, %150 : vector<8x128xf32>
    %183 = arith.addf %181, %182 : vector<8x128xf32>
    %184 = vector.extract_strided_slice %8 {offsets = [40, 0], sizes = [8, 384], strides = [1, 1]} : vector<64x384xf32> to vector<8x384xf32>
    %c0_55 = arith.constant 0 : index
    %c0_56 = arith.constant 0 : index
    %c0_57 = arith.constant 0 : index
    %185 = vector.load %arg4[%c0_55, %c0_56, %c0_57] : memref<4x128x384xf32, #tpu.memory_space<vmem>>, vector<1x128x384xf32>
    %186 = vector.shape_cast %185 : vector<1x128x384xf32> to vector<128x384xf32>
    %c1_58 = arith.constant 1 : index
    %c0_59 = arith.constant 0 : index
    %187 = vector.load %arg5[%c1_58, %c0_59] : memref<6x384xf32, #tpu.memory_space<vmem>>, vector<1x128xf32>
    %cst_60 = arith.constant dense<0.000000e+00> : vector<8x384xf32>
    %188 = tpu.matmul %183, %186, %cst_60 {dimension_numbers = #tpu.dot_dimension_numbers<[1], [0], [0], [1], [0, 0, 1, 1], [], []>} : vector<8x128xf32>, vector<128x384xf32>, vector<8x384xf32> -> vector<8x384xf32>
    %189 = vector.extract_strided_slice %184 {offsets = [0, 0], sizes = [8, 128], strides = [1, 1]} : vector<8x384xf32> to vector<8x128xf32>
    %190 = vector.extract_strided_slice %188 {offsets = [0, 0], sizes = [8, 128], strides = [1, 1]} : vector<8x384xf32> to vector<8x128xf32>
    %191 = arith.addf %189, %190 : vector<8x128xf32>
    %192 = arith.negf %191 : vector<8x128xf32>
    %193 = math.exp %192 : vector<8x128xf32>
    %cst_61 = arith.constant 1.000000e+00 : f32
    %194 = vector.broadcast %cst_61 : f32 to vector<8x128xf32>
    %195 = arith.addf %194, %193 : vector<8x128xf32>
    %196 = arith.divf %194, %195 : vector<8x128xf32>
    %197 = vector.extract_strided_slice %184 {offsets = [0, 128], sizes = [8, 128], strides = [1, 1]} : vector<8x384xf32> to vector<8x128xf32>
    %198 = vector.extract_strided_slice %188 {offsets = [0, 128], sizes = [8, 128], strides = [1, 1]} : vector<8x384xf32> to vector<8x128xf32>
    %199 = arith.addf %197, %198 : vector<8x128xf32>
    %200 = arith.negf %199 : vector<8x128xf32>
    %201 = math.exp %200 : vector<8x128xf32>
    %cst_62 = arith.constant 1.000000e+00 : f32
    %202 = vector.broadcast %cst_62 : f32 to vector<8x128xf32>
    %203 = arith.addf %202, %201 : vector<8x128xf32>
    %204 = arith.divf %202, %203 : vector<8x128xf32>
    %205 = vector.extract_strided_slice %184 {offsets = [0, 256], sizes = [8, 128], strides = [1, 1]} : vector<8x384xf32> to vector<8x128xf32>
    %206 = vector.extract_strided_slice %188 {offsets = [0, 256], sizes = [8, 128], strides = [1, 1]} : vector<8x384xf32> to vector<8x128xf32>
    %207 = vector.broadcast %187 : vector<1x128xf32> to vector<8x128xf32>
    %208 = arith.addf %206, %207 : vector<8x128xf32>
    %209 = arith.mulf %196, %208 : vector<8x128xf32>
    %210 = arith.addf %205, %209 : vector<8x128xf32>
    %211 = math.tanh %210 : vector<8x128xf32>
    %cst_63 = arith.constant 1.000000e+00 : f32
    %212 = vector.broadcast %cst_63 : f32 to vector<8x128xf32>
    %213 = arith.subf %212, %204 : vector<8x128xf32>
    %214 = arith.mulf %213, %211 : vector<8x128xf32>
    %215 = arith.mulf %204, %183 : vector<8x128xf32>
    %216 = arith.addf %214, %215 : vector<8x128xf32>
    %217 = vector.extract_strided_slice %8 {offsets = [48, 0], sizes = [8, 384], strides = [1, 1]} : vector<64x384xf32> to vector<8x384xf32>
    %c0_64 = arith.constant 0 : index
    %c0_65 = arith.constant 0 : index
    %c0_66 = arith.constant 0 : index
    %218 = vector.load %arg4[%c0_64, %c0_65, %c0_66] : memref<4x128x384xf32, #tpu.memory_space<vmem>>, vector<1x128x384xf32>
    %219 = vector.shape_cast %218 : vector<1x128x384xf32> to vector<128x384xf32>
    %c1_67 = arith.constant 1 : index
    %c0_68 = arith.constant 0 : index
    %220 = vector.load %arg5[%c1_67, %c0_68] : memref<6x384xf32, #tpu.memory_space<vmem>>, vector<1x128xf32>
    %cst_69 = arith.constant dense<0.000000e+00> : vector<8x384xf32>
    %221 = tpu.matmul %216, %219, %cst_69 {dimension_numbers = #tpu.dot_dimension_numbers<[1], [0], [0], [1], [0, 0, 1, 1], [], []>} : vector<8x128xf32>, vector<128x384xf32>, vector<8x384xf32> -> vector<8x384xf32>
    %222 = vector.extract_strided_slice %217 {offsets = [0, 0], sizes = [8, 128], strides = [1, 1]} : vector<8x384xf32> to vector<8x128xf32>
    %223 = vector.extract_strided_slice %221 {offsets = [0, 0], sizes = [8, 128], strides = [1, 1]} : vector<8x384xf32> to vector<8x128xf32>
    %224 = arith.addf %222, %223 : vector<8x128xf32>
    %225 = arith.negf %224 : vector<8x128xf32>
    %226 = math.exp %225 : vector<8x128xf32>
    %cst_70 = arith.constant 1.000000e+00 : f32
    %227 = vector.broadcast %cst_70 : f32 to vector<8x128xf32>
    %228 = arith.addf %227, %226 : vector<8x128xf32>
    %229 = arith.divf %227, %228 : vector<8x128xf32>
    %230 = vector.extract_strided_slice %217 {offsets = [0, 128], sizes = [8, 128], strides = [1, 1]} : vector<8x384xf32> to vector<8x128xf32>
    %231 = vector.extract_strided_slice %221 {offsets = [0, 128], sizes = [8, 128], strides = [1, 1]} : vector<8x384xf32> to vector<8x128xf32>
    %232 = arith.addf %230, %231 : vector<8x128xf32>
    %233 = arith.negf %232 : vector<8x128xf32>
    %234 = math.exp %233 : vector<8x128xf32>
    %cst_71 = arith.constant 1.000000e+00 : f32
    %235 = vector.broadcast %cst_71 : f32 to vector<8x128xf32>
    %236 = arith.addf %235, %234 : vector<8x128xf32>
    %237 = arith.divf %235, %236 : vector<8x128xf32>
    %238 = vector.extract_strided_slice %217 {offsets = [0, 256], sizes = [8, 128], strides = [1, 1]} : vector<8x384xf32> to vector<8x128xf32>
    %239 = vector.extract_strided_slice %221 {offsets = [0, 256], sizes = [8, 128], strides = [1, 1]} : vector<8x384xf32> to vector<8x128xf32>
    %240 = vector.broadcast %220 : vector<1x128xf32> to vector<8x128xf32>
    %241 = arith.addf %239, %240 : vector<8x128xf32>
    %242 = arith.mulf %229, %241 : vector<8x128xf32>
    %243 = arith.addf %238, %242 : vector<8x128xf32>
    %244 = math.tanh %243 : vector<8x128xf32>
    %cst_72 = arith.constant 1.000000e+00 : f32
    %245 = vector.broadcast %cst_72 : f32 to vector<8x128xf32>
    %246 = arith.subf %245, %237 : vector<8x128xf32>
    %247 = arith.mulf %246, %244 : vector<8x128xf32>
    %248 = arith.mulf %237, %216 : vector<8x128xf32>
    %249 = arith.addf %247, %248 : vector<8x128xf32>
    %250 = vector.extract_strided_slice %8 {offsets = [56, 0], sizes = [8, 384], strides = [1, 1]} : vector<64x384xf32> to vector<8x384xf32>
    %c0_73 = arith.constant 0 : index
    %c0_74 = arith.constant 0 : index
    %c0_75 = arith.constant 0 : index
    %251 = vector.load %arg4[%c0_73, %c0_74, %c0_75] : memref<4x128x384xf32, #tpu.memory_space<vmem>>, vector<1x128x384xf32>
    %252 = vector.shape_cast %251 : vector<1x128x384xf32> to vector<128x384xf32>
    %c1_76 = arith.constant 1 : index
    %c0_77 = arith.constant 0 : index
    %253 = vector.load %arg5[%c1_76, %c0_77] : memref<6x384xf32, #tpu.memory_space<vmem>>, vector<1x128xf32>
    %cst_78 = arith.constant dense<0.000000e+00> : vector<8x384xf32>
    %254 = tpu.matmul %249, %252, %cst_78 {dimension_numbers = #tpu.dot_dimension_numbers<[1], [0], [0], [1], [0, 0, 1, 1], [], []>} : vector<8x128xf32>, vector<128x384xf32>, vector<8x384xf32> -> vector<8x384xf32>
    %255 = vector.extract_strided_slice %250 {offsets = [0, 0], sizes = [8, 128], strides = [1, 1]} : vector<8x384xf32> to vector<8x128xf32>
    %256 = vector.extract_strided_slice %254 {offsets = [0, 0], sizes = [8, 128], strides = [1, 1]} : vector<8x384xf32> to vector<8x128xf32>
    %257 = arith.addf %255, %256 : vector<8x128xf32>
    %258 = arith.negf %257 : vector<8x128xf32>
    %259 = math.exp %258 : vector<8x128xf32>
    %cst_79 = arith.constant 1.000000e+00 : f32
    %260 = vector.broadcast %cst_79 : f32 to vector<8x128xf32>
    %261 = arith.addf %260, %259 : vector<8x128xf32>
    %262 = arith.divf %260, %261 : vector<8x128xf32>
    %263 = vector.extract_strided_slice %250 {offsets = [0, 128], sizes = [8, 128], strides = [1, 1]} : vector<8x384xf32> to vector<8x128xf32>
    %264 = vector.extract_strided_slice %254 {offsets = [0, 128], sizes = [8, 128], strides = [1, 1]} : vector<8x384xf32> to vector<8x128xf32>
    %265 = arith.addf %263, %264 : vector<8x128xf32>
    %266 = arith.negf %265 : vector<8x128xf32>
    %267 = math.exp %266 : vector<8x128xf32>
    %cst_80 = arith.constant 1.000000e+00 : f32
    %268 = vector.broadcast %cst_80 : f32 to vector<8x128xf32>
    %269 = arith.addf %268, %267 : vector<8x128xf32>
    %270 = arith.divf %268, %269 : vector<8x128xf32>
    %271 = vector.extract_strided_slice %250 {offsets = [0, 256], sizes = [8, 128], strides = [1, 1]} : vector<8x384xf32> to vector<8x128xf32>
    %272 = vector.extract_strided_slice %254 {offsets = [0, 256], sizes = [8, 128], strides = [1, 1]} : vector<8x384xf32> to vector<8x128xf32>
    %273 = vector.broadcast %253 : vector<1x128xf32> to vector<8x128xf32>
    %274 = arith.addf %272, %273 : vector<8x128xf32>
    %275 = arith.mulf %262, %274 : vector<8x128xf32>
    %276 = arith.addf %271, %275 : vector<8x128xf32>
    %277 = math.tanh %276 : vector<8x128xf32>
    %cst_81 = arith.constant 1.000000e+00 : f32
    %278 = vector.broadcast %cst_81 : f32 to vector<8x128xf32>
    %279 = arith.subf %278, %270 : vector<8x128xf32>
    %280 = arith.mulf %279, %277 : vector<8x128xf32>
    %281 = arith.mulf %270, %249 : vector<8x128xf32>
    %282 = arith.addf %280, %281 : vector<8x128xf32>
    %c3 = arith.constant 3 : index
    %c0_82 = arith.constant 0 : index
    %c0_83 = arith.constant 0 : index
    %283 = vector.load %arg4[%c3, %c0_82, %c0_83] : memref<4x128x384xf32, #tpu.memory_space<vmem>>, vector<1x128x384xf32>
    %284 = vector.shape_cast %283 : vector<1x128x384xf32> to vector<128x384xf32>
    %cst_84 = arith.constant dense<0.000000e+00> : vector<8x384xf32>
    %285 = tpu.matmul %282, %284, %cst_84 {dimension_numbers = #tpu.dot_dimension_numbers<[1], [0], [0], [1], [0, 0, 1, 1], [], []>} : vector<8x128xf32>, vector<128x384xf32>, vector<8x384xf32> -> vector<8x384xf32>
    %c0_85 = arith.constant 0 : index
    %c0_86 = arith.constant 0 : index
    %286 = vector.load %arg5[%c0_85, %c0_86] : memref<6x384xf32, #tpu.memory_space<vmem>>, vector<1x384xf32>
    %287 = vector.broadcast %286 : vector<1x384xf32> to vector<8x384xf32>
    %288 = arith.addf %285, %287 : vector<8x384xf32>
    %c0_87 = arith.constant 0 : index
    %c0_88 = arith.constant 0 : index
    %289 = vector.load %arg2[%c0_87, %c0_88] : memref<8x128xf32, #tpu.memory_space<vmem>>, vector<8x128xf32>
    %c2 = arith.constant 2 : index
    %c0_89 = arith.constant 0 : index
    %c0_90 = arith.constant 0 : index
    %290 = vector.load %arg4[%c2, %c0_89, %c0_90] : memref<4x128x384xf32, #tpu.memory_space<vmem>>, vector<1x128x384xf32>
    %291 = vector.shape_cast %290 : vector<1x128x384xf32> to vector<128x384xf32>
    %c3_91 = arith.constant 3 : index
    %c0_92 = arith.constant 0 : index
    %292 = vector.load %arg5[%c3_91, %c0_92] : memref<6x384xf32, #tpu.memory_space<vmem>>, vector<1x128xf32>
    %cst_93 = arith.constant dense<0.000000e+00> : vector<8x384xf32>
    %293 = tpu.matmul %289, %291, %cst_93 {dimension_numbers = #tpu.dot_dimension_numbers<[1], [0], [0], [1], [0, 0, 1, 1], [], []>} : vector<8x128xf32>, vector<128x384xf32>, vector<8x384xf32> -> vector<8x384xf32>
    %294 = vector.extract_strided_slice %288 {offsets = [0, 0], sizes = [8, 128], strides = [1, 1]} : vector<8x384xf32> to vector<8x128xf32>
    %295 = vector.extract_strided_slice %293 {offsets = [0, 0], sizes = [8, 128], strides = [1, 1]} : vector<8x384xf32> to vector<8x128xf32>
    %296 = arith.addf %294, %295 : vector<8x128xf32>
    %297 = arith.negf %296 : vector<8x128xf32>
    %298 = math.exp %297 : vector<8x128xf32>
    %cst_94 = arith.constant 1.000000e+00 : f32
    %299 = vector.broadcast %cst_94 : f32 to vector<8x128xf32>
    %300 = arith.addf %299, %298 : vector<8x128xf32>
    %301 = arith.divf %299, %300 : vector<8x128xf32>
    %302 = vector.extract_strided_slice %288 {offsets = [0, 128], sizes = [8, 128], strides = [1, 1]} : vector<8x384xf32> to vector<8x128xf32>
    %303 = vector.extract_strided_slice %293 {offsets = [0, 128], sizes = [8, 128], strides = [1, 1]} : vector<8x384xf32> to vector<8x128xf32>
    %304 = arith.addf %302, %303 : vector<8x128xf32>
    %305 = arith.negf %304 : vector<8x128xf32>
    %306 = math.exp %305 : vector<8x128xf32>
    %cst_95 = arith.constant 1.000000e+00 : f32
    %307 = vector.broadcast %cst_95 : f32 to vector<8x128xf32>
    %308 = arith.addf %307, %306 : vector<8x128xf32>
    %309 = arith.divf %307, %308 : vector<8x128xf32>
    %310 = vector.extract_strided_slice %288 {offsets = [0, 256], sizes = [8, 128], strides = [1, 1]} : vector<8x384xf32> to vector<8x128xf32>
    %311 = vector.extract_strided_slice %293 {offsets = [0, 256], sizes = [8, 128], strides = [1, 1]} : vector<8x384xf32> to vector<8x128xf32>
    %312 = vector.broadcast %292 : vector<1x128xf32> to vector<8x128xf32>
    %313 = arith.addf %311, %312 : vector<8x128xf32>
    %314 = arith.mulf %301, %313 : vector<8x128xf32>
    %315 = arith.addf %310, %314 : vector<8x128xf32>
    %316 = math.tanh %315 : vector<8x128xf32>
    %cst_96 = arith.constant 1.000000e+00 : f32
    %317 = vector.broadcast %cst_96 : f32 to vector<8x128xf32>
    %318 = arith.subf %317, %309 : vector<8x128xf32>
    %319 = arith.mulf %318, %316 : vector<8x128xf32>
    %320 = arith.mulf %309, %289 : vector<8x128xf32>
    %321 = arith.addf %319, %320 : vector<8x128xf32>
    %c0_97 = arith.constant 0 : index
    %c0_98 = arith.constant 0 : index
    %322 = vector.load %arg9[%c0_97, %c0_98] : memref<8x128xf32, #tpu.memory_space<vmem>>, vector<8x128xf32>
    tpu.vector_store %arg9[%c0_97, %c0_98], %321 {strides = array<i32>} : memref<8x128xf32, #tpu.memory_space<vmem>>, vector<8x128xf32>,
    %cst_99 = arith.constant 0.000000e+00 : f32
    %323 = vector.broadcast %cst_99 : f32 to vector<8x128xf32>
    %324 = vector.extract_strided_slice %17 {offsets = [0, 0], sizes = [8, 384], strides = [1, 1]} : vector<40x384xf32> to vector<8x384xf32>
    %c1_100 = arith.constant 1 : index
    %c0_101 = arith.constant 0 : index
    %c0_102 = arith.constant 0 : index
    %325 = vector.load %arg4[%c1_100, %c0_101, %c0_102] : memref<4x128x384xf32, #tpu.memory_space<vmem>>, vector<1x128x384xf32>
    %326 = vector.shape_cast %325 : vector<1x128x384xf32> to vector<128x384xf32>
    %c2_103 = arith.constant 2 : index
    %c0_104 = arith.constant 0 : index
    %327 = vector.load %arg5[%c2_103, %c0_104] : memref<6x384xf32, #tpu.memory_space<vmem>>, vector<1x128xf32>
    %cst_105 = arith.constant dense<0.000000e+00> : vector<8x384xf32>
    %328 = tpu.matmul %323, %326, %cst_105 {dimension_numbers = #tpu.dot_dimension_numbers<[1], [0], [0], [1], [0, 0, 1, 1], [], []>} : vector<8x128xf32>, vector<128x384xf32>, vector<8x384xf32> -> vector<8x384xf32>
    %329 = vector.extract_strided_slice %324 {offsets = [0, 0], sizes = [8, 128], strides = [1, 1]} : vector<8x384xf32> to vector<8x128xf32>
    %330 = vector.extract_strided_slice %328 {offsets = [0, 0], sizes = [8, 128], strides = [1, 1]} : vector<8x384xf32> to vector<8x128xf32>
    %331 = arith.addf %329, %330 : vector<8x128xf32>
    %332 = arith.negf %331 : vector<8x128xf32>
    %333 = math.exp %332 : vector<8x128xf32>
    %cst_106 = arith.constant 1.000000e+00 : f32
    %334 = vector.broadcast %cst_106 : f32 to vector<8x128xf32>
    %335 = arith.addf %334, %333 : vector<8x128xf32>
    %336 = arith.divf %334, %335 : vector<8x128xf32>
    %337 = vector.extract_strided_slice %324 {offsets = [0, 128], sizes = [8, 128], strides = [1, 1]} : vector<8x384xf32> to vector<8x128xf32>
    %338 = vector.extract_strided_slice %328 {offsets = [0, 128], sizes = [8, 128], strides = [1, 1]} : vector<8x384xf32> to vector<8x128xf32>
    %339 = arith.addf %337, %338 : vector<8x128xf32>
    %340 = arith.negf %339 : vector<8x128xf32>
    %341 = math.exp %340 : vector<8x128xf32>
    %cst_107 = arith.constant 1.000000e+00 : f32
    %342 = vector.broadcast %cst_107 : f32 to vector<8x128xf32>
    %343 = arith.addf %342, %341 : vector<8x128xf32>
    %344 = arith.divf %342, %343 : vector<8x128xf32>
    %345 = vector.extract_strided_slice %324 {offsets = [0, 256], sizes = [8, 128], strides = [1, 1]} : vector<8x384xf32> to vector<8x128xf32>
    %346 = vector.extract_strided_slice %328 {offsets = [0, 256], sizes = [8, 128], strides = [1, 1]} : vector<8x384xf32> to vector<8x128xf32>
    %347 = vector.broadcast %327 : vector<1x128xf32> to vector<8x128xf32>
    %348 = arith.addf %346, %347 : vector<8x128xf32>
    %349 = arith.mulf %336, %348 : vector<8x128xf32>
    %350 = arith.addf %345, %349 : vector<8x128xf32>
    %351 = math.tanh %350 : vector<8x128xf32>
    %cst_108 = arith.constant 1.000000e+00 : f32
    %352 = vector.broadcast %cst_108 : f32 to vector<8x128xf32>
    %353 = arith.subf %352, %344 : vector<8x128xf32>
    %354 = arith.mulf %353, %351 : vector<8x128xf32>
    %355 = arith.mulf %344, %323 : vector<8x128xf32>
    %356 = arith.addf %354, %355 : vector<8x128xf32>
    %357 = vector.extract_strided_slice %17 {offsets = [8, 0], sizes = [8, 384], strides = [1, 1]} : vector<40x384xf32> to vector<8x384xf32>
    %c1_109 = arith.constant 1 : index
    %c0_110 = arith.constant 0 : index
    %c0_111 = arith.constant 0 : index
    %358 = vector.load %arg4[%c1_109, %c0_110, %c0_111] : memref<4x128x384xf32, #tpu.memory_space<vmem>>, vector<1x128x384xf32>
    %359 = vector.shape_cast %358 : vector<1x128x384xf32> to vector<128x384xf32>
    %c2_112 = arith.constant 2 : index
    %c0_113 = arith.constant 0 : index
    %360 = vector.load %arg5[%c2_112, %c0_113] : memref<6x384xf32, #tpu.memory_space<vmem>>, vector<1x128xf32>
    %cst_114 = arith.constant dense<0.000000e+00> : vector<8x384xf32>
    %361 = tpu.matmul %356, %359, %cst_114 {dimension_numbers = #tpu.dot_dimension_numbers<[1], [0], [0], [1], [0, 0, 1, 1], [], []>} : vector<8x128xf32>, vector<128x384xf32>, vector<8x384xf32> -> vector<8x384xf32>
    %362 = vector.extract_strided_slice %357 {offsets = [0, 0], sizes = [8, 128], strides = [1, 1]} : vector<8x384xf32> to vector<8x128xf32>
    %363 = vector.extract_strided_slice %361 {offsets = [0, 0], sizes = [8, 128], strides = [1, 1]} : vector<8x384xf32> to vector<8x128xf32>
    %364 = arith.addf %362, %363 : vector<8x128xf32>
    %365 = arith.negf %364 : vector<8x128xf32>
    %366 = math.exp %365 : vector<8x128xf32>
    %cst_115 = arith.constant 1.000000e+00 : f32
    %367 = vector.broadcast %cst_115 : f32 to vector<8x128xf32>
    %368 = arith.addf %367, %366 : vector<8x128xf32>
    %369 = arith.divf %367, %368 : vector<8x128xf32>
    %370 = vector.extract_strided_slice %357 {offsets = [0, 128], sizes = [8, 128], strides = [1, 1]} : vector<8x384xf32> to vector<8x128xf32>
    %371 = vector.extract_strided_slice %361 {offsets = [0, 128], sizes = [8, 128], strides = [1, 1]} : vector<8x384xf32> to vector<8x128xf32>
    %372 = arith.addf %370, %371 : vector<8x128xf32>
    %373 = arith.negf %372 : vector<8x128xf32>
    %374 = math.exp %373 : vector<8x128xf32>
    %cst_116 = arith.constant 1.000000e+00 : f32
    %375 = vector.broadcast %cst_116 : f32 to vector<8x128xf32>
    %376 = arith.addf %375, %374 : vector<8x128xf32>
    %377 = arith.divf %375, %376 : vector<8x128xf32>
    %378 = vector.extract_strided_slice %357 {offsets = [0, 256], sizes = [8, 128], strides = [1, 1]} : vector<8x384xf32> to vector<8x128xf32>
    %379 = vector.extract_strided_slice %361 {offsets = [0, 256], sizes = [8, 128], strides = [1, 1]} : vector<8x384xf32> to vector<8x128xf32>
    %380 = vector.broadcast %360 : vector<1x128xf32> to vector<8x128xf32>
    %381 = arith.addf %379, %380 : vector<8x128xf32>
    %382 = arith.mulf %369, %381 : vector<8x128xf32>
    %383 = arith.addf %378, %382 : vector<8x128xf32>
    %384 = math.tanh %383 : vector<8x128xf32>
    %cst_117 = arith.constant 1.000000e+00 : f32
    %385 = vector.broadcast %cst_117 : f32 to vector<8x128xf32>
    %386 = arith.subf %385, %377 : vector<8x128xf32>
    %387 = arith.mulf %386, %384 : vector<8x128xf32>
    %388 = arith.mulf %377, %356 : vector<8x128xf32>
    %389 = arith.addf %387, %388 : vector<8x128xf32>
    %390 = vector.extract_strided_slice %17 {offsets = [16, 0], sizes = [8, 384], strides = [1, 1]} : vector<40x384xf32> to vector<8x384xf32>
    %c1_118 = arith.constant 1 : index
    %c0_119 = arith.constant 0 : index
    %c0_120 = arith.constant 0 : index
    %391 = vector.load %arg4[%c1_118, %c0_119, %c0_120] : memref<4x128x384xf32, #tpu.memory_space<vmem>>, vector<1x128x384xf32>
    %392 = vector.shape_cast %391 : vector<1x128x384xf32> to vector<128x384xf32>
    %c2_121 = arith.constant 2 : index
    %c0_122 = arith.constant 0 : index
    %393 = vector.load %arg5[%c2_121, %c0_122] : memref<6x384xf32, #tpu.memory_space<vmem>>, vector<1x128xf32>
    %cst_123 = arith.constant dense<0.000000e+00> : vector<8x384xf32>
    %394 = tpu.matmul %389, %392, %cst_123 {dimension_numbers = #tpu.dot_dimension_numbers<[1], [0], [0], [1], [0, 0, 1, 1], [], []>} : vector<8x128xf32>, vector<128x384xf32>, vector<8x384xf32> -> vector<8x384xf32>
    %395 = vector.extract_strided_slice %390 {offsets = [0, 0], sizes = [8, 128], strides = [1, 1]} : vector<8x384xf32> to vector<8x128xf32>
    %396 = vector.extract_strided_slice %394 {offsets = [0, 0], sizes = [8, 128], strides = [1, 1]} : vector<8x384xf32> to vector<8x128xf32>
    %397 = arith.addf %395, %396 : vector<8x128xf32>
    %398 = arith.negf %397 : vector<8x128xf32>
    %399 = math.exp %398 : vector<8x128xf32>
    %cst_124 = arith.constant 1.000000e+00 : f32
    %400 = vector.broadcast %cst_124 : f32 to vector<8x128xf32>
    %401 = arith.addf %400, %399 : vector<8x128xf32>
    %402 = arith.divf %400, %401 : vector<8x128xf32>
    %403 = vector.extract_strided_slice %390 {offsets = [0, 128], sizes = [8, 128], strides = [1, 1]} : vector<8x384xf32> to vector<8x128xf32>
    %404 = vector.extract_strided_slice %394 {offsets = [0, 128], sizes = [8, 128], strides = [1, 1]} : vector<8x384xf32> to vector<8x128xf32>
    %405 = arith.addf %403, %404 : vector<8x128xf32>
    %406 = arith.negf %405 : vector<8x128xf32>
    %407 = math.exp %406 : vector<8x128xf32>
    %cst_125 = arith.constant 1.000000e+00 : f32
    %408 = vector.broadcast %cst_125 : f32 to vector<8x128xf32>
    %409 = arith.addf %408, %407 : vector<8x128xf32>
    %410 = arith.divf %408, %409 : vector<8x128xf32>
    %411 = vector.extract_strided_slice %390 {offsets = [0, 256], sizes = [8, 128], strides = [1, 1]} : vector<8x384xf32> to vector<8x128xf32>
    %412 = vector.extract_strided_slice %394 {offsets = [0, 256], sizes = [8, 128], strides = [1, 1]} : vector<8x384xf32> to vector<8x128xf32>
    %413 = vector.broadcast %393 : vector<1x128xf32> to vector<8x128xf32>
    %414 = arith.addf %412, %413 : vector<8x128xf32>
    %415 = arith.mulf %402, %414 : vector<8x128xf32>
    %416 = arith.addf %411, %415 : vector<8x128xf32>
    %417 = math.tanh %416 : vector<8x128xf32>
    %cst_126 = arith.constant 1.000000e+00 : f32
    %418 = vector.broadcast %cst_126 : f32 to vector<8x128xf32>
    %419 = arith.subf %418, %410 : vector<8x128xf32>
    %420 = arith.mulf %419, %417 : vector<8x128xf32>
    %421 = arith.mulf %410, %389 : vector<8x128xf32>
    %422 = arith.addf %420, %421 : vector<8x128xf32>
    %423 = vector.extract_strided_slice %17 {offsets = [24, 0], sizes = [8, 384], strides = [1, 1]} : vector<40x384xf32> to vector<8x384xf32>
    %c1_127 = arith.constant 1 : index
    %c0_128 = arith.constant 0 : index
    %c0_129 = arith.constant 0 : index
    %424 = vector.load %arg4[%c1_127, %c0_128, %c0_129] : memref<4x128x384xf32, #tpu.memory_space<vmem>>, vector<1x128x384xf32>
    %425 = vector.shape_cast %424 : vector<1x128x384xf32> to vector<128x384xf32>
    %c2_130 = arith.constant 2 : index
    %c0_131 = arith.constant 0 : index
    %426 = vector.load %arg5[%c2_130, %c0_131] : memref<6x384xf32, #tpu.memory_space<vmem>>, vector<1x128xf32>
    %cst_132 = arith.constant dense<0.000000e+00> : vector<8x384xf32>
    %427 = tpu.matmul %422, %425, %cst_132 {dimension_numbers = #tpu.dot_dimension_numbers<[1], [0], [0], [1], [0, 0, 1, 1], [], []>} : vector<8x128xf32>, vector<128x384xf32>, vector<8x384xf32> -> vector<8x384xf32>
    %428 = vector.extract_strided_slice %423 {offsets = [0, 0], sizes = [8, 128], strides = [1, 1]} : vector<8x384xf32> to vector<8x128xf32>
    %429 = vector.extract_strided_slice %427 {offsets = [0, 0], sizes = [8, 128], strides = [1, 1]} : vector<8x384xf32> to vector<8x128xf32>
    %430 = arith.addf %428, %429 : vector<8x128xf32>
    %431 = arith.negf %430 : vector<8x128xf32>
    %432 = math.exp %431 : vector<8x128xf32>
    %cst_133 = arith.constant 1.000000e+00 : f32
    %433 = vector.broadcast %cst_133 : f32 to vector<8x128xf32>
    %434 = arith.addf %433, %432 : vector<8x128xf32>
    %435 = arith.divf %433, %434 : vector<8x128xf32>
    %436 = vector.extract_strided_slice %423 {offsets = [0, 128], sizes = [8, 128], strides = [1, 1]} : vector<8x384xf32> to vector<8x128xf32>
    %437 = vector.extract_strided_slice %427 {offsets = [0, 128], sizes = [8, 128], strides = [1, 1]} : vector<8x384xf32> to vector<8x128xf32>
    %438 = arith.addf %436, %437 : vector<8x128xf32>
    %439 = arith.negf %438 : vector<8x128xf32>
    %440 = math.exp %439 : vector<8x128xf32>
    %cst_134 = arith.constant 1.000000e+00 : f32
    %441 = vector.broadcast %cst_134 : f32 to vector<8x128xf32>
    %442 = arith.addf %441, %440 : vector<8x128xf32>
    %443 = arith.divf %441, %442 : vector<8x128xf32>
    %444 = vector.extract_strided_slice %423 {offsets = [0, 256], sizes = [8, 128], strides = [1, 1]} : vector<8x384xf32> to vector<8x128xf32>
    %445 = vector.extract_strided_slice %427 {offsets = [0, 256], sizes = [8, 128], strides = [1, 1]} : vector<8x384xf32> to vector<8x128xf32>
    %446 = vector.broadcast %426 : vector<1x128xf32> to vector<8x128xf32>
    %447 = arith.addf %445, %446 : vector<8x128xf32>
    %448 = arith.mulf %435, %447 : vector<8x128xf32>
    %449 = arith.addf %444, %448 : vector<8x128xf32>
    %450 = math.tanh %449 : vector<8x128xf32>
    %cst_135 = arith.constant 1.000000e+00 : f32
    %451 = vector.broadcast %cst_135 : f32 to vector<8x128xf32>
    %452 = arith.subf %451, %443 : vector<8x128xf32>
    %453 = arith.mulf %452, %450 : vector<8x128xf32>
    %454 = arith.mulf %443, %422 : vector<8x128xf32>
    %455 = arith.addf %453, %454 : vector<8x128xf32>
    %456 = vector.extract_strided_slice %17 {offsets = [32, 0], sizes = [8, 384], strides = [1, 1]} : vector<40x384xf32> to vector<8x384xf32>
    %c1_136 = arith.constant 1 : index
    %c0_137 = arith.constant 0 : index
    %c0_138 = arith.constant 0 : index
    %457 = vector.load %arg4[%c1_136, %c0_137, %c0_138] : memref<4x128x384xf32, #tpu.memory_space<vmem>>, vector<1x128x384xf32>
    %458 = vector.shape_cast %457 : vector<1x128x384xf32> to vector<128x384xf32>
    %c2_139 = arith.constant 2 : index
    %c0_140 = arith.constant 0 : index
    %459 = vector.load %arg5[%c2_139, %c0_140] : memref<6x384xf32, #tpu.memory_space<vmem>>, vector<1x128xf32>
    %cst_141 = arith.constant dense<0.000000e+00> : vector<8x384xf32>
    %460 = tpu.matmul %455, %458, %cst_141 {dimension_numbers = #tpu.dot_dimension_numbers<[1], [0], [0], [1], [0, 0, 1, 1], [], []>} : vector<8x128xf32>, vector<128x384xf32>, vector<8x384xf32> -> vector<8x384xf32>
    %461 = vector.extract_strided_slice %456 {offsets = [0, 0], sizes = [8, 128], strides = [1, 1]} : vector<8x384xf32> to vector<8x128xf32>
    %462 = vector.extract_strided_slice %460 {offsets = [0, 0], sizes = [8, 128], strides = [1, 1]} : vector<8x384xf32> to vector<8x128xf32>
    %463 = arith.addf %461, %462 : vector<8x128xf32>
    %464 = arith.negf %463 : vector<8x128xf32>
    %465 = math.exp %464 : vector<8x128xf32>
    %cst_142 = arith.constant 1.000000e+00 : f32
    %466 = vector.broadcast %cst_142 : f32 to vector<8x128xf32>
    %467 = arith.addf %466, %465 : vector<8x128xf32>
    %468 = arith.divf %466, %467 : vector<8x128xf32>
    %469 = vector.extract_strided_slice %456 {offsets = [0, 128], sizes = [8, 128], strides = [1, 1]} : vector<8x384xf32> to vector<8x128xf32>
    %470 = vector.extract_strided_slice %460 {offsets = [0, 128], sizes = [8, 128], strides = [1, 1]} : vector<8x384xf32> to vector<8x128xf32>
    %471 = arith.addf %469, %470 : vector<8x128xf32>
    %472 = arith.negf %471 : vector<8x128xf32>
    %473 = math.exp %472 : vector<8x128xf32>
    %cst_143 = arith.constant 1.000000e+00 : f32
    %474 = vector.broadcast %cst_143 : f32 to vector<8x128xf32>
    %475 = arith.addf %474, %473 : vector<8x128xf32>
    %476 = arith.divf %474, %475 : vector<8x128xf32>
    %477 = vector.extract_strided_slice %456 {offsets = [0, 256], sizes = [8, 128], strides = [1, 1]} : vector<8x384xf32> to vector<8x128xf32>
    %478 = vector.extract_strided_slice %460 {offsets = [0, 256], sizes = [8, 128], strides = [1, 1]} : vector<8x384xf32> to vector<8x128xf32>
    %479 = vector.broadcast %459 : vector<1x128xf32> to vector<8x128xf32>
    %480 = arith.addf %478, %479 : vector<8x128xf32>
    %481 = arith.mulf %468, %480 : vector<8x128xf32>
    %482 = arith.addf %477, %481 : vector<8x128xf32>
    %483 = math.tanh %482 : vector<8x128xf32>
    %cst_144 = arith.constant 1.000000e+00 : f32
    %484 = vector.broadcast %cst_144 : f32 to vector<8x128xf32>
    %485 = arith.subf %484, %476 : vector<8x128xf32>
    %486 = arith.mulf %485, %483 : vector<8x128xf32>
    %487 = arith.mulf %476, %455 : vector<8x128xf32>
    %488 = arith.addf %486, %487 : vector<8x128xf32>
    %c0_145 = arith.constant 0 : index
    %c0_146 = arith.constant 0 : index
    %489 = vector.load %arg6[%c0_145, %c0_146] : memref<3x128xf32, #tpu.memory_space<vmem>>, vector<2x128xf32>
    %cst_147 = arith.constant dense<0.000000e+00> : vector<8x2xf32>
    %490 = tpu.matmul %321, %489, %cst_147 {dimension_numbers = #tpu.dot_dimension_numbers<[1], [1], [0], [0], [0, 0, 1, 0], [], []>} : vector<8x128xf32>, vector<2x128xf32>, vector<8x2xf32> -> vector<8x2xf32>
    %491 = vector.extract_strided_slice %490 {offsets = [0, 0], sizes = [2, 1], strides = [1, 1]} : vector<8x2xf32> to vector<2x1xf32>
    %c4 = arith.constant 4 : index
    %c0_148 = arith.constant 0 : index
    %492 = vector.load %arg5[%c4, %c0_148] : memref<6x384xf32, #tpu.memory_space<vmem>>, vector<1x1xf32>
    %493 = vector.broadcast %492 : vector<1x1xf32> to vector<2x1xf32>
    %494 = arith.addf %491, %493 : vector<2x1xf32>
    %c0_149 = arith.constant 0 : index
    %c0_150 = arith.constant 0 : index
    %495 = vector.load %arg8[%c0_149, %c0_150] : memref<2x1xf32, #tpu.memory_space<vmem>>, vector<2x1xf32>
    tpu.vector_store %arg8[%c0_149, %c0_150], %494 {strides = array<i32>} : memref<2x1xf32, #tpu.memory_space<vmem>>, vector<2x1xf32>,
    %c2_151 = arith.constant 2 : index
    %c0_152 = arith.constant 0 : index
    %496 = vector.load %arg6[%c2_151, %c0_152] : memref<3x128xf32, #tpu.memory_space<vmem>>, vector<1x128xf32>
    %cst_153 = arith.constant dense<0.000000e+00> : vector<1x8xf32>
    %497 = tpu.matmul %496, %488, %cst_153 {dimension_numbers = #tpu.dot_dimension_numbers<[1], [1], [0], [0], [0, 0, 1, 0], [], []>} : vector<1x128xf32>, vector<8x128xf32>, vector<1x8xf32> -> vector<1x8xf32>
    %498 = vector.extract_strided_slice %490 {offsets = [0, 1], sizes = [2, 1], strides = [1, 1]} : vector<8x2xf32> to vector<2x1xf32>
    %499 = vector.extract_strided_slice %497 {offsets = [0, 0], sizes = [1, 6], strides = [1, 1]} : vector<1x8xf32> to vector<1x6xf32>
    %500 = vector.broadcast %498 : vector<2x1xf32> to vector<2x6xf32>
    %501 = vector.broadcast %499 : vector<1x6xf32> to vector<2x6xf32>
    %502 = arith.addf %500, %501 : vector<2x6xf32>
    %c5 = arith.constant 5 : index
    %c0_154 = arith.constant 0 : index
    %503 = vector.load %arg5[%c5, %c0_154] : memref<6x384xf32, #tpu.memory_space<vmem>>, vector<1x1xf32>
    %504 = vector.broadcast %503 : vector<1x1xf32> to vector<2x6xf32>
    %505 = arith.addf %502, %504 : vector<2x6xf32>
    %cst_155 = arith.constant 0.000000e+00 : f32
    %506 = vector.broadcast %cst_155 : f32 to vector<2x6xf32>
    %507 = arith.maximumf %505, %506 : vector<2x6xf32>
    %c0_156 = arith.constant 0 : index
    %c0_157 = arith.constant 0 : index
    %508 = vector.load %arg7[%c0_156, %c0_157] : memref<2x6xf32, #tpu.memory_space<vmem>>, vector<2x6xf32>
    tpu.vector_store %arg7[%c0_156, %c0_157], %507 {strides = array<i32>} : memref<2x6xf32, #tpu.memory_space<vmem>>, vector<2x6xf32>,
    return
  }
}

</mosaic_0001>

<bundles_post_ra>
// kernel: command_scorer_forward.1
= control target key start
LH: loop header
LB: loop body
LE: loop exit
PB: predicated region body
PF: predicated region fallthrough
CT: control target
= control target key end

     0   :  { %15 = vsyncpa [#allocation3], 0  ;;  %s4651_s30 = smov [#allocation2]   ;;  %s6410_s0 = inlined_call_operand.vmem [shape: s32[64,1], index: 0, kind: input, shape index: {}]   ;;  %s6411_s1 = inlined_call_operand.vmem [shape: s32[40,1], index: 1, kind: input, shape index: {}]   ;;  %s6412_s2 = inlined_call_operand.vmem [shape: f32[8,128], index: 2, kind: input, shape index: {}]   ;;  %s6413_s3 = inlined_call_operand.vmem [shape: f32[2,50,384], index: 3, kind: input, shape index: {}]   ;;  %s6414_s4 = inlined_call_operand.hbm [shape: f32[4,128,384], index: 4, kind: input, shape index: {}]   ;;  %s6415_s5 = inlined_call_operand.vmem [shape: f32[6,384], index: 5, kind: input, shape index: {}]   ;;  %s6416_s6 = inlined_call_operand.vmem [shape: f32[3,128], index: 6, kind: input, shape index: {}]   ;;  %s6417_s7 = inlined_call_operand.vmem [shape: f32[2,6], index: 7, kind: output, shape index: {0}]   ;;  %s6418_s8 = inlined_call_operand.vmem [shape: f32[2,1], index: 8, kind: output, shape index: {1}]   ;;  %s6419_s9 = inlined_call_operand.vmem [shape: f32[8,128], index: 9, kind: output, shape index: {2}]  }
   0x1   :  { %s29_s10 = sshll.u32 %s4651_s30, 4  ;;  %s30_s10 = int_to_ptr.vmem [resolvable:$true] %s29_s10 }
   0x2   :  { %s4637_s11 = scalar_lea.vmem %s30_s10, 24576  ;;  %p4642_p1 = scmp.lt.s32.totalorder %s30_s10, %s30_s10 }
   0x3   :  { %p4638_p0 = scmp.ne.s32.totalorder %s30_s10, %s4637_s11  ;;  %p4643_p2 = scmp.lt.s32.totalorder %s4637_s11, %s4637_s11 }
   0x5   :  { %p4644_p3 = por %p4643_p2, %p4642_p1 }
   0x7   :  { %p4645_p4 = pnand %p4644_p3, %p4638_p0 }
   0x9   :  { %4648 = shalt.err (!%p4645_p4)
}
   0xa   :  { %s4652_s12 = smov 384   ;;  %s4653_s13 = smov 24  }
   0xb   :  { %35 = dma.hbm_to_vmem [thread:$0]  %s6414_s4, 24576, %s30_s10, [#allocation3], %s4652_s12, %s4652_s12, %s4653_s13  }
   0xc   :  { %4649 = dma.done.wait [#allocation3], 24576  }
   0xd   :  { %4650 = vsyncadd [#allocation3], 4294942720  ;;  %v4654_v0 = vmov 0   ;;  %v6421_v1 = vmov 0.0   ;;  %v47_v2 = vld [vmem:[%s6410_s0 + $0x10] sm:$0xff]  ;;  %v45_v3 = vld [vmem:[%s6410_s0] sm:$0xff]  ;;  %v6420_v38 = vlaneseq }
   0xe   :  { %4438 = vset.pattern.permute.xlu1 %v4654_v0  ;;  %4437 = vset.pattern.permute.xlu0 %v4654_v0  ;;  %v48_v4 = vld [vmem:[%s6410_s0 + $0x18] sm:$0xff]  ;;  %v46_v5 = vld [vmem:[%s6410_s0 + $0x8] sm:$0xff]  ;;  %vm147_vm0 = vcmask 1041408   ;;  %v119_v7 = vld [vmem:[%s6413_s3 + $0x90] sm:$0x3]  ;;  %vm122_vm1 = vcmask 408576  }
   0xf   :  { %221 = vmatprep.mubr.f32.mxu0 %v6421_v1  ;;  %60 = vperm.xlu1 %4438, %v47_v2   ;;  %v120_v6 = vld [vmem:[%s6413_s3 + $0x98] sm:$0x3]  ;;  %v117_v8 = vld [vmem:[%s6413_s3 + $0x80] sm:$0xff]  ;;  %v50_v9 = vld [vmem:[%s6410_s0 + $0x28] sm:$0xff]  ;;  %v4827_v39 = vand.u32 127, %v6420_v38  ;;  %vm4656_vm14 = vmmov 0  }
  0x10   :  { %54 = vperm.xlu0 %4437, %v45_v3   ;;  %v49_v10 = vld [vmem:[%s6410_s0 + $0x20] sm:$0xff]  ;;  %3468 = vmatprep.subr.msk.mxu0 %vm147_vm0, %v120_v6  ;;  %v116_v12 = vld [vmem:[%s6413_s3 + $0x78] sm:$0xff]  ;;  %v118_v13 = vld [vmem:[%s6413_s3 + $0x88] sm:$0xff] }
  0x11   :  { %v121_v11 = vld [vmem:[%s6413_s3 + $0xa0] sm:$0x3]  ;;  %3469 = vmatpush1.msk.msra.mxu0 %vm147_vm0, %v119_v7  ;;  %v114_v14 = vld [vmem:[%s6413_s3 + $0x68] sm:$0xff]  ;;  %v115_v16 = vld [vmem:[%s6413_s3 + $0x70] sm:$0xff] }
  0x12   :  { %3840 = vmatprep.subr.msk.mxu1 %vm147_vm0, %v121_v11  ;;  %177 = vmatprep.subr.mxu0 %v117_v8  ;;  %v113_v15 = vld [vmem:[%s6413_s3 + $0x60] sm:$0xff]  ;;  %v52_v17 = vld [vmem:[%s6410_s0 + $0x38] sm:$0xff]  ;;  %v51_v18 = vld [vmem:[%s6410_s0 + $0x30] sm:$0xff] }
  0x13   :  { %63 = vperm.xlu1 %4438, %v48_v4   ;;  %3841 = vmatpush3.msk.msra.mxu1 %vm147_vm0, %v121_v11  ;;  %v111_v19 = vld [vmem:[%s6413_s3 + $0x50] sm:$0xff]  ;;  %v110_v20 = vld [vmem:[%s6413_s3 + $0x48] sm:$0xff]  ;;  %v112_v21 = vld [vmem:[%s6413_s3 + $0x58] sm:$0xff] }
  0x14   :  { %57 = vperm.xlu0 %4437, %v46_v5   ;;  %178 = vmatpush1.msra.mxu0 %v116_v12  ;;  %v108_v22 = vld [vmem:[%s6413_s3 + $0x38] sm:$0xff]  ;;  %v376_v23 = vld [vmem:[%s6411_s1 + $0x8] sm:$0xff]  ;;  %v375_v24 = vld [vmem:[%s6411_s1] sm:$0xff] }
  0x15   :  { %3842 = vmatprep.subr.mxu1 %v118_v13  ;;  %179 = vmatprep.subr.mxu0 %v114_v14  ;;  %v107_v25 = vld [vmem:[%s6413_s3 + $0x30] sm:$0xff]  ;;  %v109_v26 = vld [vmem:[%s6413_s3 + $0x40] sm:$0xff]  ;;  %v104_v28 = vld [vmem:[%s6413_s3 + $0x18] sm:$0xff] }
  0x16   :  { %3843 = vmatpush3.msra.mxu1 %v118_v13  ;;  %180 = vmatpush1.msra.mxu0 %v113_v15  ;;  %v105_v27 = vld [vmem:[%s6413_s3 + $0x20] sm:$0xff]  ;;  %v106_v29 = vld [vmem:[%s6413_s3 + $0x28] sm:$0xff]  ;;  %v378_v30 = vld [vmem:[%s6411_s1 + $0x18] sm:$0xff] }
  0x17   :  { %69 = vperm.xlu1 %4438, %v50_v9   ;;  %3844 = vmatprep.subr.mxu1 %v115_v16  ;;  %v377_v31 = vld [vmem:[%s6411_s1 + $0x10] sm:$0xff]  ;;  %v102_v32 = vld [vmem:[%s6413_s3 + $0x8] sm:$0xff]  ;;  %v101_v33 = vld [vmem:[%s6413_s3] sm:$0xff] }
  0x18   :  { %66 = vperm.xlu0 %4437, %v49_v10   ;;  %181 = vmatprep.subr.mxu0 %v111_v19  ;;  %v103_v34 = vld [vmem:[%s6413_s3 + $0x10] sm:$0xff]  ;;  %v379_v35 = vld [vmem:[%s6411_s1 + $0x20] sm:$0xff]  ;;  %v3512_v42 = vld [vmem:[%s6413_s3 + $0x148] sm:$0x3] }
  0x19   :  { %3845 = vmatpush3.msra.mxu1 %v115_v16  ;;  %182 = vmatpush1.msra.mxu0 %v110_v20  ;;  %v3511_v36 = vld [vmem:[%s6413_s3 + $0x140] sm:$0x3]  ;;  %v3437_v37 = vld [vmem:[%s6415_s5 + $0x5] ss:$0 sm:$0xff]  ;;  %v3509_v44 = vld [vmem:[%s6413_s3 + $0x130] sm:$0xff] }
  0x1a   :  { %3846 = vmatprep.subr.mxu1 %v112_v21  ;;  %183 = vmatprep.subr.mxu0 %v108_v22  ;;  %v3510_v48 = vld [vmem:[%s6413_s3 + $0x138] sm:$0x3]  ;;  %v3508_v50 = vld [vmem:[%s6413_s3 + $0x128] sm:$0xff]  ;;  %v3507_v51 = vld [vmem:[%s6413_s3 + $0x120] sm:$0xff] }
  0x1b   :  { %75 = vperm.xlu1 %4438, %v52_v17   ;;  %3847 = vmatpush3.msra.mxu1 %v112_v21  ;;  %v3505_v54 = vld [vmem:[%s6413_s3 + $0x110] sm:$0xff]  ;;  %v3504_v57 = vld [vmem:[%s6413_s3 + $0x108] sm:$0xff]  ;;  %v3502_v58 = vld [vmem:[%s6413_s3 + $0xf8] sm:$0xff] }
  0x1c   :  { %72 = vperm.xlu0 %4437, %v51_v18   ;;  %184 = vmatpush1.msra.mxu0 %v107_v25  ;;  %v3506_v59 = vld [vmem:[%s6413_s3 + $0x118] sm:$0xff]  ;;  %v3501_v62 = vld [vmem:[%s6413_s3 + $0xf0] sm:$0xff]  ;;  %v3499_v2 = vld [vmem:[%s6413_s3 + $0xe0] sm:$0xff] }
  0x1d   :  { %3848 = vmatprep.subr.mxu1 %v109_v26  ;;  %185 = vmatprep.subr.mxu0 %v105_v27  ;;  %v3498_v3 = vld [vmem:[%s6413_s3 + $0xd8] sm:$0xff]  ;;  %v3496_v4 = vld [vmem:[%s6413_s3 + $0xc8] sm:$0xff]  ;;  %v3495_v6 = vld [vmem:[%s6413_s3 + $0xc0] sm:$0xff] }
  0x1e   :  { %3849 = vmatpush3.msra.mxu1 %v109_v26  ;;  %186 = vmatpush1.msra.mxu0 %v104_v28  ;;  %v3493_v8 = vld [vmem:[%s6413_s3 + $0xb0] sm:$0xff]  ;;  %v3503_v9 = vld [vmem:[%s6413_s3 + $0x100] sm:$0xff]  ;;  %v3492_v10 = vld [vmem:[%s6413_s3 + $0xa8] sm:$0xff] }
  0x1f   :  { %384 = vperm.xlu1 %4438, %v376_v23   ;;  %3850 = vmatprep.subr.mxu1 %v106_v29  ;;  %v4921_v12 = vld [vmem:[#allocation2 + $0x170] sm:$0xff]  ;;  %v4923_v13 = vld [vmem:[#allocation2 + $0x168] sm:$0xff]  ;;  %v4927_v15 = vld [vmem:[#allocation2 + $0x158] sm:$0xff] }
  0x20   :  { %381 = vperm.xlu0 %4437, %v375_v24   ;;  %187 = vmatprep.subr.mxu0 %v102_v32  ;;  %6458 = vst [vmem:[#allocation5_spill] sm:$0xff] %v4921_v12  ;;  %v4932_v16 = vld [vmem:[#allocation2 + $0x150] sm:$0xff]  ;;  %v4936_v17 = vld [vmem:[#allocation2 + $0x140] sm:$0xff]  ;;  %v4940_v19 = vld [vmem:[#allocation2 + $0x138] sm:$0xff] }
  0x21   :  { %3851 = vmatpush3.msra.mxu1 %v106_v29  ;;  %188 = vmatpush1.msra.mxu0 %v101_v33  ;;  %v4945_v21 = vld [vmem:[#allocation2 + $0x128] sm:$0xff]  ;;  %v4949_v22 = vld [vmem:[#allocation2 + $0x120] sm:$0xff]  ;;  %v4957_v24 = vld [vmem:[#allocation2 + $0x110] sm:$0xff] }
  0x22   :  { %3852 = vmatprep.subr.mxu1 %v103_v34  ;;  %3866 = vmatprep.subr.mxu0 %v6421_v1  ;;  %v3500_v23 = vld [vmem:[%s6413_s3 + $0xe8] sm:$0xff]  ;;  %v3497_v28 = vld [vmem:[%s6413_s3 + $0xd0] sm:$0xff]  ;;  %v4970_v29 = vld [vmem:[#allocation2 + $0xf8] sm:$0xff] }
  0x23   :  { %390 = vperm.xlu1 %4438, %v378_v30   ;;  %3853 = vmatpush3.msra.mxu1 %v103_v34  ;;  %v4963_v25 = vld [vmem:[#allocation2 + $0x108] sm:$0xff]  ;;  %v4974_v30 = vld [vmem:[#allocation2 + $0xf0] sm:$0xff]  ;;  %v4983_v32 = vld [vmem:[#allocation2 + $0xe0] sm:$0xff] }
  0x24   :  { %387 = vperm.xlu0 %4437, %v377_v31   ;;  %3513 = vmatprep.subr.msk.mxu1 %vm147_vm0, %v3511_v36  ;;  %v3494_v31 = vld [vmem:[%s6413_s3 + $0xb8] sm:$0xff]  ;;  %v4994_v36 = vld [vmem:[#allocation2 + $0xc8] sm:$0xff] }
  0x25   :  { %v4988_v34 = vld [vmem:[#allocation2 + $0xd8] sm:$0xff] }
  0x28   :  { %393 = vperm.xlu0 %4437, %v379_v35  }
  0x2c   :  { %3440 = vperm.xlu0 %4437, %v3437_v37   ;;  %v4999_v37 = vld [vmem:[#allocation2 + $0xc0] sm:$0xff] }
  0x8a   :  { %v61_v40 = vpop.permute.xlu1 %60 }
  0x8b   :  { %v55_v41 = vpop.permute.xlu0 %54  ;;  %vm79_vm3 = vcmp.eq.s32.totalorder %v61_v40, %v4827_v39  ;;  %v5003_v40 = vld [vmem:[#allocation2 + $0xb0] sm:$0xff] }
  0x8c   :  { %vm77_vm2 = vcmp.eq.s32.totalorder %v55_v41, %v4827_v39  ;;  %v3462_v47 = vsel %vm79_vm3, 1.0, %v6421_v1  ;;  %v5008_v41 = vld [vmem:[#allocation2 + $0xa8] sm:$0xff] }
  0x8d   :  { %v3460_v43 = vsel %vm77_vm2, 1.0, %v6421_v1 }
  0x8e   :  { %3470 = vmatmul.mubr.msk.f32.vlgmr.msra.gmra.mxu0 %vm122_vm1, %v3460_v43  ;;  %3854 = vmatprep.mubr.msk.f32.mxu1 %vm122_vm1, %v3460_v43  ;;  %v64_v45 = vpop.permute.xlu1 %63  ;;  %v5017_v43 = vld [vmem:[#allocation2 + $0x90] sm:$0xff] }
  0x8f   :  { %v58_v46 = vpop.permute.xlu0 %57  ;;  %227 = vmatprep.mubr.f32.mxu0 %v6421_v1  ;;  %3867 = vmatpush3.msk.msra.mxu0 %vm147_vm0, %v3512_v42  ;;  %vm80_vm5 = vcmp.eq.s32.totalorder %v64_v45, %v4827_v39  ;;  %v5012_v42 = vld [vmem:[#allocation2 + $0x98] sm:$0xff] }
  0x90   :  { %vm78_vm4 = vcmp.eq.s32.totalorder %v58_v46, %v4827_v39  ;;  %3868 = vmatprep.subr.mxu0 %v6421_v1  ;;  %v3463_v55 = vsel %vm80_vm5, 1.0, %v6421_v1  ;;  %v5023_v45 = vld [vmem:[#allocation2 + $0x178] sm:$0xff] }
  0x91   :  { %v3461_v49 = vsel %vm78_vm4, 1.0, %v6421_v1  ;;  %3869 = vmatpush3.msra.mxu0 %v3509_v44  ;;  %v5021_v44 = vld [vmem:[#allocation2 + $0x80] sm:$0xff]  ;;  %v5028_v46 = vld [vmem:[#allocation2 + $0x78] sm:$0xff] }
  0x92   :  { %3471 = vmatmul.mubr.msk.f32.gmra.mxu0 %vm122_vm1, %v3461_v49  ;;  %3855 = vmatmul.mubr.msk.f32.vlgmr.msra.gmra.mxu1 %vm122_vm1, %v3461_v49  ;;  %v70_v52 = vpop.permute.xlu1 %69  ;;  %v5040_v49 = vld [vmem:[#allocation2 + $0x50] sm:$0xff] }
  0x93   :  { %3857 = vmatprep.mubr.msk.f32.mxu1 %vm122_vm1, %v3462_v47  ;;  %3514 = vmatpush1.msk.msra.mxu1 %vm147_vm0, %v3510_v48  ;;  %v67_v53 = vpop.permute.xlu0 %66  ;;  %vm82_vm7 = vcmp.eq.s32.totalorder %v70_v52, %v4827_v39  ;;  %v5035_v48 = vld [vmem:[#allocation2 + $0x60] sm:$0xff]  ;;  %v5050_v52 = vld [vmem:[#allocation2 + $0x38] sm:$0xff]  ;;  %vm3354_vm0 = vcmask 1024  }
  0x94   :  { %vm81_vm6 = vcmp.eq.s32.totalorder %v67_v53, %v4827_v39  ;;  %233 = vmatprep.mubr.f32.mxu0 %v6421_v1  ;;  %476 = vmatprep.subr.mxu1 %v3508_v50  ;;  %v3465_v63 = vsel %vm82_vm7, 1.0, %v6421_v1  ;;  %v5042_v50 = vld [vmem:[#allocation2 + $0x160] sm:$0xff]  ;;  %v5054_v53 = vld [vmem:[#allocation2 + $0x30] sm:$0xff] }
  0x95   :  { %v3464_v56 = vsel %vm81_vm6, 1.0, %v6421_v1  ;;  %477 = vmatpush1.msra.mxu1 %v3507_v51  ;;  %3870 = vmatprep.subr.mxu0 %v6421_v1  ;;  %v5047_v51 = vld [vmem:[#allocation2 + $0x48] sm:$0xff] }
  0x96   :  { %3472 = vmatmul.mubr.msk.f32.gmra.mxu0 %vm122_vm1, %v3462_v47  ;;  %3858 = vmatmul.mubr.msk.f32.gmra.mxu1 %vm122_vm1, %v3463_v55  ;;  %v76_v61 = vpop.permute.xlu1 %75  ;;  %v5031_v47 = vld [vmem:[#allocation2 + $0x68] sm:$0xff] }
  0x97   :  { %3860 = vmatprep.mubr.msk.f32.mxu1 %vm122_vm1, %v3464_v56  ;;  %478 = vmatprep.subr.mxu1 %v3505_v54  ;;  %v73_v60 = vpop.permute.xlu0 %72  ;;  %vm84_vm9 = vcmp.eq.s32.totalorder %v76_v61, %v4827_v39  ;;  %v5059_v54 = vld [vmem:[#allocation2 + $0x20] sm:$0xff] }
  0x98   :  { %vm83_vm8 = vcmp.eq.s32.totalorder %v73_v60, %v4827_v39  ;;  %479 = vmatpush1.msra.mxu1 %v3504_v57  ;;  %239 = vmatprep.mubr.f32.mxu0 %v6421_v1  ;;  %v3467_v7 = vsel %vm84_vm9, 1.0, %v6421_v1  ;;  %v5069_v57 = vld [vmem:[#allocation2 + $0x8] sm:$0xff]  ;;  %v5082_v60 = vld [vmem:[#allocation2 + $0x118] sm:$0xff]  ;;  %v5088_v61 = vld [vmem:[#allocation2 + $0x100] sm:$0xff] }
  0x99   :  { %v3466_v0 = vsel %vm83_vm8, 1.0, %v6421_v1  ;;  %480 = vmatprep.subr.mxu1 %v3502_v58  ;;  %3871 = vmatpush3.msra.mxu0 %v3506_v59  ;;  %6459 = vst [vmem:[#allocation6_spill] sm:$0xff] %v5069_v57  ;;  %v5073_v58 = vld [vmem:[#allocation2] sm:$0xff]  ;;  %v5076_v59 = vld [vmem:[#allocation2 + $0x130] sm:$0xff] }
  0x9a   :  { %3473 = vmatmul.mubr.msk.f32.gmra.mxu0 %vm122_vm1, %v3463_v55  ;;  %3861 = vmatmul.mubr.msk.f32.gmra.mxu1 %vm122_vm1, %v3465_v63  ;;  %v385_v11 = vpop.permute.xlu1 %384  ;;  %v5061_v55 = vld [vmem:[#allocation2 + $0x148] sm:$0xff]  ;;  %6460 = vst [vmem:[#allocation7_spill] sm:$0xff] %v5073_v58 }
  0x9b   :  { %481 = vmatpush1.msra.mxu1 %v3501_v62  ;;  %3863 = vmatprep.mubr.msk.f32.mxu1 %vm122_vm1, %v3466_v0  ;;  %v382_v5 = vpop.permute.xlu0 %381  ;;  %vm396_vm11 = vcmp.eq.s32.totalorder %v385_v11, %v4827_v39  ;;  %v5094_v62 = vld [vmem:[#allocation2 + $0xe8] sm:$0xff] }
  0x9c   :  { %482 = vmatprep.subr.mxu1 %v3499_v2  ;;  %245 = vmatprep.mubr.f32.mxu0 %v6421_v1  ;;  %vm395_vm10 = vcmp.eq.s32.totalorder %v382_v5, %v4827_v39  ;;  %v3488_v20 = vsel %vm396_vm11, 1.0, %v6421_v1  ;;  %v5112_v2 = vld [vmem:[#allocation2 + $0xa0] sm:$0xff]  ;;  %v5130_v5 = vld [vmem:[#allocation2 + $0x58] sm:$0xff] }
  0x9d   :  { %483 = vmatpush1.msra.mxu1 %v3498_v3  ;;  %3872 = vmatprep.subr.mxu0 %v6421_v1  ;;  %v3487_v14 = vsel %vm395_vm10, 1.0, %v6421_v1  ;;  %v5118_v3 = vld [vmem:[#allocation2 + $0x88] sm:$0xff] }
  0x9e   :  { %484 = vmatprep.subr.mxu1 %v3496_v4  ;;  %3474 = vmatmul.mubr.msk.f32.gmra.mxu0 %vm122_vm1, %v3464_v56  ;;  %v391_v26 = vpop.permute.xlu1 %390  ;;  %v5066_v56 = vld [vmem:[#allocation2 + $0x18] sm:$0xff]  ;;  %v5124_v4 = vld [vmem:[#allocation2 + $0x70] sm:$0xff] }
  0x9f   :  { %3864 = vmatmul.mubr.msk.f32.gmra.mxu1 %vm122_vm1, %v3467_v7  ;;  %251 = vmatprep.mubr.f32.mxu0 %v6421_v1  ;;  %v388_v18 = vpop.permute.xlu0 %387  ;;  %vm398_vm13 = vcmp.eq.s32.totalorder %v391_v26, %v4827_v39 }
  0xa0   :  { %485 = vmatpush1.msra.mxu1 %v3495_v6  ;;  %520 = vmatprep.mubr.f32.mxu1 %v6421_v1  ;;  %vm397_vm12 = vcmp.eq.s32.totalorder %v388_v18, %v4827_v39  ;;  %v3490_v35 = vsel %vm398_vm13, 1.0, %v6421_v1  ;;  %v5136_v6 = vld [vmem:[#allocation2 + $0x40] sm:$0xff] }
  0xa1   :  { %486 = vmatprep.subr.mxu1 %v3493_v8  ;;  %3873 = vmatpush3.msra.mxu0 %v3503_v9  ;;  %v3489_v27 = vsel %vm397_vm12, 1.0, %v6421_v1  ;;  %v5148_v8 = vld [vmem:[#allocation2 + $0x10] sm:$0xff] }
  0xa2   :  { %487 = vmatpush1.msra.mxu1 %v3492_v10  ;;  %3475 = vmatmul.mubr.msk.f32.gmra.mxu0 %vm122_vm1, %v3465_v63  ;;  %v5100_v63 = vld [vmem:[#allocation2 + $0xd0] sm:$0xff]  ;;  %6462 = vst [vmem:[#allocation9_spill] sm:$0xff] %v5148_v8 }
  0xa3   :  { %690 = vmatprep.subr.mxu1 %v4921_v12  ;;  %3515 = vmatmul.mubr.msk.f32.vlgmr.msra.gmra.mxu1 %vm122_vm1, %v3487_v14  ;;  %v394_v33 = vpop.permute.xlu0 %393 }
  0xa4   :  { %691 = vmatpush1.msra.mxu1 %v4923_v13  ;;  %257 = vmatprep.mubr.f32.mxu0 %v6421_v1  ;;  %vm399_vm15 = vcmp.eq.s32.totalorder %v394_v33, %v4827_v39 }
  0xa5   :  { %692 = vmatprep.subr.mxu1 %v4927_v15  ;;  %526 = vmatprep.mubr.f32.mxu1 %v6421_v1  ;;  %v3491_v39 = vsel %vm399_vm15, 1.0, %v6421_v1 }
  0xa6   :  { %693 = vmatpush1.msra.mxu1 %v4932_v16  ;;  %3476 = vmatmul.mubr.msk.f32.gmra.mxu0 %vm122_vm1, %v3466_v0  ;;  %v5106_v0 = vld [vmem:[#allocation2 + $0xb8] sm:$0xff] }
  0xa7   :  { %694 = vmatprep.subr.mxu1 %v4936_v17  ;;  %3516 = vmatmul.mubr.msk.f32.gmra.mxu1 %vm122_vm1, %v3488_v20 }
  0xa8   :  { %695 = vmatpush1.msra.mxu1 %v4940_v19  ;;  %3874 = vmatprep.subr.mxu0 %v6421_v1 }
  0xa9   :  { %696 = vmatprep.subr.mxu1 %v4945_v21  ;;  %263 = vmatprep.mubr.f32.mxu0 %v6421_v1 }
  0xaa   :  { %697 = vmatpush1.msra.mxu1 %v4949_v22  ;;  %532 = vmatprep.mubr.f32.mxu1 %v6421_v1 }
  0xab   :  { %3875 = vmatpush3.msra.mxu0 %v3500_v23  ;;  %698 = vmatprep.subr.mxu1 %v4957_v24 }
  0xac   :  { %3477 = vmatmul.mubr.msk.f32.gmra.mxu0 %vm122_vm1, %v3467_v7  ;;  %3517 = vmatmul.mubr.msk.f32.gmra.mxu1 %vm122_vm1, %v3489_v27  ;;  %v5142_v7 = vld [vmem:[#allocation2 + $0x28] sm:$0xff] }
  0xad   :  { %3876 = vmatprep.subr.mxu0 %v6421_v1  ;;  %699 = vmatpush1.msra.mxu1 %v4963_v25  ;;  %6461 = vst [vmem:[#allocation8_spill] sm:$0xff] %v5142_v7 }
  0xae   :  { %3877 = vmatpush3.msra.mxu0 %v3497_v28  ;;  %700 = vmatprep.subr.mxu1 %v4970_v29 }
  0xaf   :  { %3878 = vmatprep.subr.mxu0 %v6421_v1  ;;  %701 = vmatpush1.msra.mxu1 %v4974_v30 }
  0xb0   :  { %538 = vmatprep.mubr.f32.mxu1 %v6421_v1  ;;  %3879 = vmatpush3.msra.mxu0 %v3494_v31 }
  0xb1   :  { %3880 = vmatprep.mubr.msk.f32.mxu0 %vm4656_vm14, %v6421_v1  ;;  %702 = vmatprep.subr.mxu1 %v4983_v32 }
  0xb2   :  { %3518 = vmatmul.mubr.msk.f32.gmra.mxu1 %vm122_vm1, %v3490_v35  ;;  %3881 = vmatmul.mubr.msk.f32.vlgmr.msra.gmra.mxu0 %vm122_vm1, %v3487_v14 }
  0xb3   :  { %703 = vmatpush1.msra.mxu1 %v4988_v34  ;;  %544 = vmatprep.mubr.f32.mxu1 %v6421_v1 }
  0xb4   :  { %704 = vmatprep.subr.mxu1 %v4994_v36  ;;  %3883 = vmatprep.mubr.msk.f32.mxu0 %vm4656_vm14, %v6421_v1 }
  0xb5   :  { %705 = vmatpush1.msra.mxu1 %v4999_v37  ;;  %3895 = vmatprep.subr.mxu0 %v6421_v1 }
  0xb6   :  { %706 = vmatprep.subr.mxu1 %v5003_v40  ;;  %3519 = vmatmul.mubr.msk.f32.gmra.mxu1 %vm122_vm1, %v3491_v39 }
  0xb7   :  { %3884 = vmatmul.mubr.msk.f32.gmra.mxu0 %vm122_vm1, %v3488_v20  ;;  %707 = vmatpush1.msra.mxu1 %v5008_v41 }
  0xb8   :  { %708 = vmatprep.subr.mxu1 %v5012_v42  ;;  %3886 = vmatprep.mubr.msk.f32.mxu0 %vm4656_vm14, %v6421_v1 }
  0xb9   :  { %709 = vmatpush1.msra.mxu1 %v5017_v43  ;;  %754 = vmatprep.mubr.f32.mxu1 %v6421_v1 }
  0xba   :  { %710 = vmatprep.subr.mxu1 %v5021_v44  ;;  %3896 = vmatpush3.msra.mxu0 %v5023_v45 }
  0xbb   :  { %3887 = vmatmul.mubr.msk.f32.gmra.mxu0 %vm122_vm1, %v3489_v27  ;;  %711 = vmatpush1.msra.mxu1 %v5028_v46 }
  0xbc   :  { %712 = vmatprep.subr.mxu1 %v5031_v47  ;;  %3889 = vmatprep.mubr.msk.f32.mxu0 %vm4656_vm14, %v6421_v1 }
  0xbd   :  { %713 = vmatpush1.msra.mxu1 %v5035_v48  ;;  %3897 = vmatprep.subr.mxu0 %v6421_v1 }
  0xbe   :  { %714 = vmatprep.subr.mxu1 %v5040_v49  ;;  %3898 = vmatpush3.msra.mxu0 %v5042_v50 }
  0xbf   :  { %3890 = vmatmul.mubr.msk.f32.gmra.mxu0 %vm122_vm1, %v3490_v35  ;;  %715 = vmatpush1.msra.mxu1 %v5047_v51 }
  0xc0   :  { %716 = vmatprep.subr.mxu1 %v5050_v52  ;;  %3892 = vmatprep.mubr.msk.f32.mxu0 %vm4656_vm14, %v6421_v1 }
  0xc1   :  { %717 = vmatpush1.msra.mxu1 %v5054_v53  ;;  %3899 = vmatprep.subr.mxu0 %v6421_v1 }
  0xc2   :  { %718 = vmatprep.subr.mxu1 %v5059_v54  ;;  %3900 = vmatpush3.msra.mxu0 %v5061_v55 }
  0xc3   :  { %3893 = vmatmul.mubr.msk.f32.gmra.mxu0 %vm122_vm1, %v3491_v39  ;;  %719 = vmatpush1.msra.mxu1 %v5066_v56  ;;  %vm3445_vm1 = vcmask 41984  }
  0xc4   :  { %720 = vmatprep.subr.mxu1 %v5069_v57  ;;  %3901 = vmatprep.subr.mxu0 %v6421_v1 }
  0xc5   :  { %721 = vmatpush1.msra.mxu1 %v5073_v58  ;;  %3902 = vmatpush3.msra.mxu0 %v5076_v59 }
  0xc6   :  { %755 = vmatmul.mubr.f32.vlgmr.msra.gmra.mxu1 %v6421_v1  ;;  %3903 = vmatprep.subr.mxu0 %v6421_v1 }
  0xc7   :  { %3904 = vmatpush3.msra.mxu0 %v5082_v60  ;;  %3927 = vmatprep.mubr.msk.f32.mxu0 %vm4656_vm14, %v6421_v1 }
  0xc8   :  { %3905 = vmatprep.subr.mxu0 %v6421_v1  ;;  %853 = vmatprep.subr.mxu1 %v4921_v12 }
  0xc9   :  { %3906 = vmatpush3.msra.mxu0 %v5088_v61  ;;  %854 = vmatpush1.msra.mxu1 %v4923_v13 }
  0xca   :  { %3907 = vmatprep.subr.mxu0 %v6421_v1  ;;  %855 = vmatprep.subr.mxu1 %v4927_v15 }
  0xcb   :  { %3908 = vmatpush3.msra.mxu0 %v5094_v62  ;;  %856 = vmatpush1.msra.mxu1 %v4932_v16 }
  0xcc   :  { %3909 = vmatprep.subr.mxu0 %v6421_v1  ;;  %857 = vmatprep.subr.mxu1 %v4936_v17 }
  0xcd   :  { %3910 = vmatpush3.msra.mxu0 %v5100_v63  ;;  %858 = vmatpush1.msra.mxu1 %v4940_v19 }
  0xce   :  { %3911 = vmatprep.subr.mxu0 %v6421_v1  ;;  %859 = vmatprep.subr.mxu1 %v4945_v21 }
  0xcf   :  { %3912 = vmatpush3.msra.mxu0 %v5106_v0  ;;  %860 = vmatpush1.msra.mxu1 %v4949_v22 }
  0xd0   :  { %3913 = vmatprep.subr.mxu0 %v6421_v1  ;;  %861 = vmatprep.subr.mxu1 %v4957_v24 }
  0xd1   :  { %3914 = vmatpush3.msra.mxu0 %v5112_v2  ;;  %862 = vmatpush1.msra.mxu1 %v4963_v25 }
  0xd2   :  { %3915 = vmatprep.subr.mxu0 %v6421_v1  ;;  %863 = vmatprep.subr.mxu1 %v4970_v29 }
  0xd3   :  { %3916 = vmatpush3.msra.mxu0 %v5118_v3  ;;  %864 = vmatpush1.msra.mxu1 %v4974_v30 }
  0xd4   :  { %3917 = vmatprep.subr.mxu0 %v6421_v1  ;;  %865 = vmatprep.subr.mxu1 %v4983_v32 }
  0xd5   :  { %3918 = vmatpush3.msra.mxu0 %v5124_v4  ;;  %866 = vmatpush1.msra.mxu1 %v4988_v34 }
  0xd6   :  { %3919 = vmatprep.subr.mxu0 %v6421_v1  ;;  %867 = vmatprep.subr.mxu1 %v4994_v36 }
  0xd7   :  { %3920 = vmatpush3.msra.mxu0 %v5130_v5  ;;  %868 = vmatpush1.msra.mxu1 %v4999_v37 }
  0xd8   :  { %3921 = vmatprep.subr.mxu0 %v6421_v1  ;;  %869 = vmatprep.subr.mxu1 %v5003_v40 }
  0xd9   :  { %3922 = vmatpush3.msra.mxu0 %v5136_v6  ;;  %870 = vmatpush1.msra.mxu1 %v5008_v41 }
  0xda   :  { %3923 = vmatprep.subr.mxu0 %v6421_v1  ;;  %871 = vmatprep.subr.mxu1 %v5012_v42 }
  0xdb   :  { %3924 = vmatpush3.msra.mxu0 %v5142_v7  ;;  %872 = vmatpush1.msra.mxu1 %v5017_v43 }
  0xdc   :  { %3925 = vmatprep.subr.mxu0 %v6421_v1  ;;  %873 = vmatprep.subr.mxu1 %v5021_v44 }
  0xdd   :  { %3926 = vmatpush3.msra.mxu0 %v5148_v8  ;;  %874 = vmatpush1.msra.mxu1 %v5028_v46 }
  0xde   :  { %3928 = vmatmul.mubr.f32.vlgmr.msra.gmra.mxu0 %v6421_v1  ;;  %3930 = vmatprep.subr.mxu0 %v6421_v1 }
  0xdf   :  { %3931 = vmatpush3.msra.mxu0 %v5023_v45  ;;  %875 = vmatprep.subr.mxu1 %v5031_v47 }
  0xe0   :  { %3932 = vmatprep.subr.mxu0 %v6421_v1  ;;  %876 = vmatpush1.msra.mxu1 %v5035_v48 }
  0xe1   :  { %3933 = vmatpush3.msra.mxu0 %v5042_v50  ;;  %877 = vmatprep.subr.mxu1 %v5040_v49 }
  0xe2   :  { %3934 = vmatprep.subr.mxu0 %v6421_v1  ;;  %878 = vmatpush1.msra.mxu1 %v5047_v51 }
  0xe3   :  { %3935 = vmatpush3.msra.mxu0 %v5061_v55  ;;  %879 = vmatprep.subr.mxu1 %v5050_v52 }
  0xe4   :  { %3936 = vmatprep.subr.mxu0 %v6421_v1  ;;  %880 = vmatpush1.msra.mxu1 %v5054_v53 }
  0xe5   :  { %3937 = vmatpush3.msra.mxu0 %v5076_v59  ;;  %881 = vmatprep.subr.mxu1 %v5059_v54 }
  0xe6   :  { %3938 = vmatprep.subr.mxu0 %v6421_v1  ;;  %882 = vmatpush1.msra.mxu1 %v5066_v56 }
  0xe7   :  { %3939 = vmatpush3.msra.mxu0 %v5082_v60  ;;  %883 = vmatprep.subr.mxu1 %v5069_v57 }
  0xe8   :  { %3940 = vmatprep.subr.mxu0 %v6421_v1  ;;  %884 = vmatpush1.msra.mxu1 %v5073_v58 }
  0xe9   :  { %3941 = vmatpush3.msra.mxu0 %v5088_v61  ;;  %917 = vmatprep.mubr.f32.mxu1 %v6421_v1 }
  0xea   :  { %3942 = vmatprep.subr.mxu0 %v6421_v1  ;;  %3962 = vmatprep.mubr.msk.f32.mxu0 %vm4656_vm14, %v6421_v1 }
  0xeb   :  { %3943 = vmatpush3.msra.mxu0 %v5094_v62  ;;  %1016 = vmatprep.subr.mxu1 %v4921_v12 }
  0xec   :  { %3944 = vmatprep.subr.mxu0 %v6421_v1 }
  0xed   :  { %3945 = vmatpush3.msra.mxu0 %v5100_v63 }
  0xee   :  { %3946 = vmatprep.subr.mxu0 %v6421_v1 }
  0xef   :  { %3947 = vmatpush3.msra.mxu0 %v5106_v0 }
  0xf0   :  { %3948 = vmatprep.subr.mxu0 %v6421_v1 }
  0xf1   :  { %3949 = vmatpush3.msra.mxu0 %v5112_v2 }
  0xf2   :  { %3950 = vmatprep.subr.mxu0 %v6421_v1 }
  0xf3   :  { %3951 = vmatpush3.msra.mxu0 %v5118_v3 }
  0xf4   :  { %3952 = vmatprep.subr.mxu0 %v6421_v1 }
  0xf5   :  { %3953 = vmatpush3.msra.mxu0 %v5124_v4 }
  0xf6   :  { %3954 = vmatprep.subr.mxu0 %v6421_v1 }
  0xf7   :  { %3955 = vmatpush3.msra.mxu0 %v5130_v5 }
  0xf8   :  { %3956 = vmatprep.subr.mxu0 %v6421_v1 }
  0xf9   :  { %3957 = vmatpush3.msra.mxu0 %v5136_v6 }
  0xfa   :  { %3958 = vmatprep.subr.mxu0 %v6421_v1 }
  0xfb   :  { %3959 = vmatpush3.msra.mxu0 %v5142_v7 }
  0xfc   :  { %3960 = vmatprep.subr.mxu0 %v6421_v1 }
  0xfd   :  { %3961 = vmatpush3.msra.mxu0 %v5148_v8 }
  0xfe   :  { %3965 = vmatprep.subr.mxu0 %v6421_v1 }
 0x14e   :  { %v223_v9 = vpop.f32.mrf.mxu0 }
 0x150   :  { %v225_v10 = vpop.f32.mrf.mxu0 }
 0x152   :  { %v5205_v11 = vpop.f32.mrf.mxu0  ;;  %v5207_v14 = vpop.f32.mrf.mxu1 }
 0x153   :  { %6463 = vst [vmem:[#allocation10_spill] sm:$0xff] %v5205_v11  ;;  %6464 = vst [vmem:[#allocation11_spill] sm:$0xff] %v5207_v14 }
 0x154   :  { %v5209_v18 = vpop.f32.mrf.mxu0  ;;  %v336_v20 = vpop.f32.mrf.mxu1 }
 0x155   :  { %6465 = vst [vmem:[#allocation12_spill] sm:$0xff] %v5209_v18 }
 0x156   :  { %v5211_v23 = vpop.f32.mrf.mxu0  ;;  %v5213_v26 = vpop.f32.mrf.mxu1 }
 0x157   :  { %6466 = vst [vmem:[#allocation13_spill] sm:$0xff] %v5211_v23  ;;  %6467 = vst [vmem:[#allocation14_spill] sm:$0xff] %v5213_v26 }
 0x158   :  { %v5215_v27 = vpop.f32.mrf.mxu0  ;;  %v5217_v28 = vpop.f32.mrf.mxu1 }
 0x159   :  { %6468 = vst [vmem:[#allocation15_spill] sm:$0xff] %v5215_v27  ;;  %6469 = vst [vmem:[#allocation16_spill] sm:$0xff] %v5217_v28 }
 0x15a   :  { %v5219_v31 = vpop.f32.mrf.mxu0  ;;  %v5221_v33 = vpop.f32.mrf.mxu1 }
 0x15b   :  { %6470 = vst [vmem:[#allocation17_spill] sm:$0xff] %v5219_v31  ;;  %6471 = vst [vmem:[#allocation18_spill] sm:$0xff] %v5221_v33 }
 0x15c   :  { %v5223_v35 = vpop.f32.mrf.mxu0  ;;  %v5225_v39 = vpop.f32.mrf.mxu1 }
 0x15d   :  { %6472 = vst [vmem:[#allocation19_spill] sm:$0xff] %v5223_v35  ;;  %6473 = vst [vmem:[#allocation20_spill] sm:$0xff] %v5225_v39 }
 0x15e   :  { %v5227_v38 = vpop.f32.mrf.mxu0 }
 0x15f   :  { %6474 = vst [vmem:[#allocation21_spill] sm:$0xff] %v5227_v38  ;;  %v5229_v1 = vpop.f32.mrf.mxu1 }
 0x160   :  { %6475 = vst [vmem:[#allocation22_spill] sm:$0xff] %v5229_v1  ;;  %v5231_v14 = vpop.f32.mrf.mxu0 }
 0x161   :  { %6476 = vst [vmem:[#allocation23_spill] sm:$0xff] %v5231_v14  ;;  %v5233_v23 = vpop.f32.mrf.mxu1 }
 0x162   :  { %6477 = vst [vmem:[#allocation24_spill] sm:$0xff] %v5233_v23  ;;  %v5235_v26 = vpop.f32.mrf.mxu0 }
 0x163   :  { %6478 = vst [vmem:[#allocation25_spill] sm:$0xff] %v5235_v26  ;;  %v5237_v27 = vpop.f32.mrf.mxu1 }
 0x164   :  { %6479 = vst [vmem:[#allocation26_spill] sm:$0xff] %v5237_v27  ;;  %v5239_v28 = vpop.f32.mrf.mxu0 }
 0x165   :  { %6480 = vst [vmem:[#allocation27_spill] sm:$0xff] %v5239_v28  ;;  %v5241_v31 = vpop.f32.mrf.mxu1 }
 0x166   :  { %6481 = vst [vmem:[#allocation28_spill] sm:$0xff] %v5241_v31  ;;  %v5243_v33 = vpop.f32.mrf.mxu0 }
 0x167   :  { %6482 = vst [vmem:[#allocation29_spill] sm:$0xff] %v5243_v33  ;;  %v5245_v35 = vpop.f32.mrf.mxu1 }
 0x168   :  { %6483 = vst [vmem:[#allocation30_spill] sm:$0xff] %v5245_v35  ;;  %v5247_v39 = vpop.f32.mrf.mxu0 }
 0x169   :  { %6484 = vst [vmem:[#allocation31_spill] sm:$0xff] %v5247_v39  ;;  %v5249_v38 = vpop.f32.mrf.mxu1 }
 0x16a   :  { %6485 = vst [vmem:[#allocation32_spill] sm:$0xff] %v5249_v38 }
 0x16c   :  { %v5251_v1 = vpop.f32.mrf.mxu0  ;;  %v5255_v23 = vpop.f32.mrf.mxu1 }
 0x16d   :  { %6486 = vst [vmem:[#allocation33_spill] sm:$0xff] %v5251_v1  ;;  %6488 = vst [vmem:[#allocation35_spill] sm:$0xff] %v5255_v23 }
 0x16e   :  { %v5253_v14 = vpop.f32.mrf.mxu0  ;;  %v5259_v27 = vpop.f32.mrf.mxu1 }
 0x16f   :  { %6487 = vst [vmem:[#allocation34_spill] sm:$0xff] %v5253_v14  ;;  %6490 = vst [vmem:[#allocation37_spill] sm:$0xff] %v5259_v27 }
 0x172   :  { %v5257_v26 = vpop.f32.mrf.mxu0  ;;  %v5263_v33 = vpop.f32.mrf.mxu1 }
 0x173   :  { %6489 = vst [vmem:[#allocation36_spill] sm:$0xff] %v5257_v26  ;;  %6492 = vst [vmem:[#allocation39_spill] sm:$0xff] %v5263_v33 }
 0x174   :  { %v3882_v28 = vpop.f32.mrf.mxu0  ;;  %v5267_v39 = vpop.f32.mrf.mxu1 }
 0x175   :  { %6494 = vst [vmem:[#allocation41_spill] sm:$0xff] %v5267_v39 }
 0x176   :  { %v5271_v14 = vpop.f32.mrf.mxu1 }
 0x177   :  { %v5261_v31 = vpop.f32.mrf.mxu0  ;;  %6496 = vst [vmem:[#allocation43_spill] sm:$0xff] %v5271_v14 }
 0x178   :  { %6491 = vst [vmem:[#allocation38_spill] sm:$0xff] %v5261_v31  ;;  %v5275_v26 = vpop.f32.mrf.mxu1 }
 0x179   :  { %v3885_v35 = vpop.f32.mrf.mxu0  ;;  %6498 = vst [vmem:[#allocation45_spill] sm:$0xff] %v5275_v26 }
 0x17b   :  { %v5265_v18 = vpop.f32.mrf.mxu0 }
 0x17c   :  { %6493 = vst [vmem:[#allocation40_spill] sm:$0xff] %v5265_v18 }
 0x17d   :  { %v3888_v38 = vpop.f32.mrf.mxu0 }
 0x17f   :  { %v5269_v1 = vpop.f32.mrf.mxu0 }
 0x180   :  { %6495 = vst [vmem:[#allocation42_spill] sm:$0xff] %v5269_v1 }
 0x181   :  { %v3891_v23 = vpop.f32.mrf.mxu0 }
 0x182   :  { %v5280_v23 = vld [vmem:[%s6415_s5 + $0x1] ss:$0 sm:$0xff] }
 0x183   :  { %v5273_v11 = vpop.f32.mrf.mxu0 }
 0x184   :  { %6497 = vst [vmem:[#allocation44_spill] sm:$0xff] %v5273_v11 }
 0x185   :  { %v3894_v28 = vpop.f32.mrf.mxu0 }
 0x186   :  { %v756_v27 = vpop.f32.mrf.mxu1 }
 0x187   :  { %v831_v31 = vadd.f32 %v756_v27, %v223_v9 }
 0x188   :  { %v758_v33 = vpop.f32.mrf.mxu1 }
 0x189   :  { %v3526_v12 = vmul.f32 -1.442695, %v831_v31  ;;  %v838_v35 = vadd.f32 %v758_v33, %v225_v10 }
 0x18b   :  { %4440 = vpow2.f32 %v3526_v12  ;;  %v3527_v18 = vmul.f32 -1.442695, %v838_v35 }
 0x18d   :  { %4442 = vpow2.f32 %v3527_v18 }
 0x198   :  { %v4441_v39 = vpop.eup %4440 }
 0x199   :  { %v835_v38 = vadd.f32 1.0, %v4441_v39 }
 0x19a   :  { %v4443_v14 = vpop.eup %4442 }
 0x19b   :  { %4444 = vrcp.f32 %v835_v38  ;;  %v842_v28 = vadd.f32 1.0, %v4443_v14  ;;  %v6500_v14 = vld [vmem:[#allocation9_spill] sm:$0xff] }
 0x19d   :  { %4446 = vrcp.f32 %v842_v28 }
 0x19e   :  { %v827_v1 = vpop.f32.mrf.mxu0 }
 0x19f   :  { %v845_v9 = vadd.f32 %v827_v1, %v5280_v23  ;;  %v6499_v1 = vmov 0.0  }
 0x1a0   :  { %v3929_v8 = vpop.f32.mrf.mxu0 }
 0x1a8   :  { %v4445_v27 = vpop.eup %4444 }
 0x1a9   :  { %v846_v12 = vmul.f32 %v4445_v27, %v845_v9  ;;  %v6502_v9 = vld [vmem:[#allocation10_spill] sm:$0xff] }
 0x1aa   :  { %v4447_v18 = vpop.eup %4446 }
 0x1ab   :  { %v847_v10 = vadd.f32 %v846_v12, %v336_v20  ;;  %v849_v31 = vsub.f32 1.0, %v4447_v18  ;;  %v851_v35 = vmul.f32 0.0, %v4447_v18  ;;  %v6501_v20 = vld [vmem:[#allocation5_spill] sm:$0xff] }
 0x1ad   :  { %4448 = vtanh.f32 %v847_v10 }
 0x1ba   :  { %v4449_v33 = vpop.eup %4448 }
 0x1bb   :  { %v850_v39 = vmul.f32 %v4449_v33, %v849_v31  ;;  %v6503_v31 = vld [vmem:[#allocation12_spill] sm:$0xff] }
 0x1bd   :  { %v5283_v8 = vadd.f32 %v851_v35, %v850_v39 }
 0x1bf   :  { %918 = vmatmul.mubr.f32.vlgmr.msra.gmra.mxu1 %v5283_v8  ;;  %3963 = vmatmul.mubr.f32.vlgmr.msra.gmra.mxu0 %v5283_v8 }
 0x1c0   :  { %1017 = vmatpush1.msra.mxu1 %v4923_v13  ;;  %3966 = vmatpush3.msra.mxu0 %v5023_v45 }
 0x1c1   :  { %1018 = vmatprep.subr.mxu1 %v4927_v15  ;;  %3967 = vmatprep.subr.mxu0 %v6499_v1 }
 0x1c2   :  { %1019 = vmatpush1.msra.mxu1 %v4932_v16  ;;  %3968 = vmatpush3.msra.mxu0 %v5042_v50 }
 0x1c3   :  { %1020 = vmatprep.subr.mxu1 %v4936_v17  ;;  %3969 = vmatprep.subr.mxu0 %v6499_v1 }
 0x1c4   :  { %1021 = vmatpush1.msra.mxu1 %v4940_v19  ;;  %3970 = vmatpush3.msra.mxu0 %v5061_v55 }
 0x1c5   :  { %1022 = vmatprep.subr.mxu1 %v4945_v21  ;;  %3971 = vmatprep.subr.mxu0 %v6499_v1 }
 0x1c6   :  { %1023 = vmatpush1.msra.mxu1 %v4949_v22  ;;  %3972 = vmatpush3.msra.mxu0 %v5076_v59 }
 0x1c7   :  { %1024 = vmatprep.subr.mxu1 %v4957_v24  ;;  %3973 = vmatprep.subr.mxu0 %v6499_v1 }
 0x1c8   :  { %1025 = vmatpush1.msra.mxu1 %v4963_v25  ;;  %3974 = vmatpush3.msra.mxu0 %v5082_v60 }
 0x1c9   :  { %1026 = vmatprep.subr.mxu1 %v4970_v29  ;;  %3975 = vmatprep.subr.mxu0 %v6499_v1 }
 0x1ca   :  { %1027 = vmatpush1.msra.mxu1 %v4974_v30  ;;  %3976 = vmatpush3.msra.mxu0 %v5088_v61 }
 0x1cb   :  { %1028 = vmatprep.subr.mxu1 %v4983_v32  ;;  %3977 = vmatprep.subr.mxu0 %v6499_v1 }
 0x1cc   :  { %1029 = vmatpush1.msra.mxu1 %v4988_v34  ;;  %3978 = vmatpush3.msra.mxu0 %v5094_v62 }
 0x1cd   :  { %1030 = vmatprep.subr.mxu1 %v4994_v36  ;;  %3979 = vmatprep.subr.mxu0 %v6499_v1 }
 0x1ce   :  { %1031 = vmatpush1.msra.mxu1 %v4999_v37  ;;  %3980 = vmatpush3.msra.mxu0 %v5100_v63 }
 0x1cf   :  { %1032 = vmatprep.subr.mxu1 %v5003_v40  ;;  %3981 = vmatprep.subr.mxu0 %v6499_v1 }
 0x1d0   :  { %1033 = vmatpush1.msra.mxu1 %v5008_v41  ;;  %3982 = vmatpush3.msra.mxu0 %v5106_v0 }
 0x1d1   :  { %1034 = vmatprep.subr.mxu1 %v5012_v42  ;;  %3983 = vmatprep.subr.mxu0 %v6499_v1 }
 0x1d2   :  { %1035 = vmatpush1.msra.mxu1 %v5017_v43  ;;  %3984 = vmatpush3.msra.mxu0 %v5112_v2 }
 0x1d3   :  { %1036 = vmatprep.subr.mxu1 %v5021_v44  ;;  %3985 = vmatprep.subr.mxu0 %v6499_v1 }
 0x1d4   :  { %1037 = vmatpush1.msra.mxu1 %v5028_v46  ;;  %3986 = vmatpush3.msra.mxu0 %v5118_v3 }
 0x1d5   :  { %1038 = vmatprep.subr.mxu1 %v5031_v47  ;;  %3987 = vmatprep.subr.mxu0 %v6499_v1 }
 0x1d6   :  { %1039 = vmatpush1.msra.mxu1 %v5035_v48  ;;  %3988 = vmatpush3.msra.mxu0 %v5124_v4 }
 0x1d7   :  { %1040 = vmatprep.subr.mxu1 %v5040_v49  ;;  %3989 = vmatprep.subr.mxu0 %v6499_v1 }
 0x1d8   :  { %1041 = vmatpush1.msra.mxu1 %v5047_v51  ;;  %3990 = vmatpush3.msra.mxu0 %v5130_v5 }
 0x1d9   :  { %1042 = vmatprep.subr.mxu1 %v5050_v52  ;;  %3991 = vmatprep.subr.mxu0 %v6499_v1 }
 0x1da   :  { %1043 = vmatpush1.msra.mxu1 %v5054_v53  ;;  %3992 = vmatpush3.msra.mxu0 %v5136_v6 }
 0x1db   :  { %1044 = vmatprep.subr.mxu1 %v5059_v54  ;;  %3993 = vmatprep.subr.mxu0 %v6499_v1 }
 0x1dc   :  { %1045 = vmatpush1.msra.mxu1 %v5066_v56  ;;  %3994 = vmatpush3.msra.mxu0 %v5142_v7  ;;  %v6504_v7 = vld [vmem:[#allocation11_spill] sm:$0xff] }
 0x1dd   :  { %1046 = vmatprep.subr.mxu1 %v5069_v57  ;;  %3995 = vmatprep.subr.mxu0 %v6499_v1 }
 0x1de   :  { %1047 = vmatpush1.msra.mxu1 %v5073_v58  ;;  %1080 = vmatprep.mubr.f32.mxu1 %v6499_v1 }
 0x1df   :  { %3996 = vmatpush3.msra.mxu0 %v6500_v14  ;;  %3997 = vmatprep.mubr.msk.f32.mxu0 %vm4656_vm14, %v6499_v1 }
 0x1e0   :  { %1179 = vmatprep.subr.mxu1 %v6501_v20  ;;  %4000 = vmatprep.subr.mxu0 %v6499_v1 }
 0x27f   :  { %v919_v38 = vpop.f32.mrf.mxu1  ;;  %v990_v28 = vpop.f32.mrf.mxu0 }
 0x280   :  { %v994_v27 = vadd.f32 %v919_v38, %v6502_v9  ;;  %v1008_v20 = vadd.f32 %v990_v28, %v5280_v23 }
 0x281   :  { %v3964_v12 = vpop.f32.mrf.mxu0  ;;  %v921_v18 = vpop.f32.mrf.mxu1 }
 0x282   :  { %v3528_v10 = vmul.f32 -1.442695, %v994_v27  ;;  %v1001_v33 = vadd.f32 %v921_v18, %v6503_v31 }
 0x284   :  { %4450 = vpow2.f32 %v3528_v10  ;;  %v3529_v39 = vmul.f32 -1.442695, %v1001_v33 }
 0x286   :  { %4452 = vpow2.f32 %v3529_v39 }
 0x291   :  { %v4451_v35 = vpop.eup %4450 }
 0x292   :  { %v998_v11 = vadd.f32 1.0, %v4451_v35 }
 0x293   :  { %v4453_v26 = vpop.eup %4452 }
 0x294   :  { %4454 = vrcp.f32 %v998_v11  ;;  %v1005_v14 = vadd.f32 1.0, %v4453_v26  ;;  %v6508_v11 = vld [vmem:[#allocation9_spill] sm:$0xff] }
 0x295   :  { %v6509_v26 = vld [vmem:[#allocation5_spill] sm:$0xff] }
 0x296   :  { %4456 = vrcp.f32 %v1005_v14 }
 0x2a1   :  { %v4455_v58 = vpop.eup %4454 }
 0x2a2   :  { %v1009_v57 = vmul.f32 %v4455_v58, %v1008_v20  ;;  %v6506_v58 = vld [vmem:[#allocation6_spill] sm:$0xff]  ;;  %v6510_v20 = vld [vmem:[#allocation13_spill] sm:$0xff] }
 0x2a3   :  { %v4457_v9 = vpop.eup %4456 }
 0x2a4   :  { %v1010_v38 = vadd.f32 %v6504_v7, %v1009_v57  ;;  %v1012_v27 = vsub.f32 1.0, %v4457_v9  ;;  %v1014_v18 = vmul.f32 %v4457_v9, %v5283_v8  ;;  %v6505_v57 = vld [vmem:[#allocation8_spill] sm:$0xff]  ;;  %v6507_v7 = vld [vmem:[#allocation7_spill] sm:$0xff] }
 0x2a6   :  { %4458 = vtanh.f32 %v1010_v38  ;;  %v6511_v38 = vld [vmem:[#allocation15_spill] sm:$0xff] }
 0x2b3   :  { %v4459_v12 = vpop.eup %4458 }
 0x2b4   :  { %v1013_v10 = vmul.f32 %v4459_v12, %v1012_v27 }
 0x2b6   :  { %v5359_v31 = vadd.f32 %v1014_v18, %v1013_v10 }
 0x2b8   :  { %1081 = vmatmul.mubr.f32.vlgmr.msra.gmra.mxu1 %v5359_v31  ;;  %3998 = vmatmul.mubr.f32.vlgmr.msra.gmra.mxu0 %v5359_v31 }
 0x2b9   :  { %1180 = vmatpush1.msra.mxu1 %v4923_v13  ;;  %4001 = vmatpush3.msra.mxu0 %v5023_v45 }
 0x2ba   :  { %1181 = vmatprep.subr.mxu1 %v4927_v15  ;;  %4002 = vmatprep.subr.mxu0 %v6499_v1 }
 0x2bb   :  { %1182 = vmatpush1.msra.mxu1 %v4932_v16  ;;  %4003 = vmatpush3.msra.mxu0 %v5042_v50 }
 0x2bc   :  { %1183 = vmatprep.subr.mxu1 %v4936_v17  ;;  %4004 = vmatprep.subr.mxu0 %v6499_v1 }
 0x2bd   :  { %1184 = vmatpush1.msra.mxu1 %v4940_v19  ;;  %4005 = vmatpush3.msra.mxu0 %v5061_v55 }
 0x2be   :  { %1185 = vmatprep.subr.mxu1 %v4945_v21  ;;  %4006 = vmatprep.subr.mxu0 %v6499_v1 }
 0x2bf   :  { %1186 = vmatpush1.msra.mxu1 %v4949_v22  ;;  %4007 = vmatpush3.msra.mxu0 %v5076_v59 }
 0x2c0   :  { %1187 = vmatprep.subr.mxu1 %v4957_v24  ;;  %4008 = vmatprep.subr.mxu0 %v6499_v1 }
 0x2c1   :  { %1188 = vmatpush1.msra.mxu1 %v4963_v25  ;;  %4009 = vmatpush3.msra.mxu0 %v5082_v60 }
 0x2c2   :  { %1189 = vmatprep.subr.mxu1 %v4970_v29  ;;  %4010 = vmatprep.subr.mxu0 %v6499_v1 }
 0x2c3   :  { %1190 = vmatpush1.msra.mxu1 %v4974_v30  ;;  %4011 = vmatpush3.msra.mxu0 %v5088_v61 }
 0x2c4   :  { %1191 = vmatprep.subr.mxu1 %v4983_v32  ;;  %4012 = vmatprep.subr.mxu0 %v6499_v1 }
 0x2c5   :  { %1192 = vmatpush1.msra.mxu1 %v4988_v34  ;;  %4013 = vmatpush3.msra.mxu0 %v5094_v62 }
 0x2c6   :  { %1193 = vmatprep.subr.mxu1 %v4994_v36  ;;  %4014 = vmatprep.subr.mxu0 %v6499_v1 }
 0x2c7   :  { %1194 = vmatpush1.msra.mxu1 %v4999_v37  ;;  %4015 = vmatpush3.msra.mxu0 %v5100_v63 }
 0x2c8   :  { %1195 = vmatprep.subr.mxu1 %v5003_v40  ;;  %4016 = vmatprep.subr.mxu0 %v6499_v1 }
 0x2c9   :  { %1196 = vmatpush1.msra.mxu1 %v5008_v41  ;;  %4017 = vmatpush3.msra.mxu0 %v5106_v0 }
 0x2ca   :  { %1197 = vmatprep.subr.mxu1 %v5012_v42  ;;  %4018 = vmatprep.subr.mxu0 %v6499_v1 }
 0x2cb   :  { %1198 = vmatpush1.msra.mxu1 %v5017_v43  ;;  %4019 = vmatpush3.msra.mxu0 %v5112_v2 }
 0x2cc   :  { %1199 = vmatprep.subr.mxu1 %v5021_v44  ;;  %4020 = vmatprep.subr.mxu0 %v6499_v1 }
 0x2cd   :  { %1200 = vmatpush1.msra.mxu1 %v5028_v46  ;;  %4021 = vmatpush3.msra.mxu0 %v5118_v3 }
 0x2ce   :  { %1201 = vmatprep.subr.mxu1 %v5031_v47  ;;  %4022 = vmatprep.subr.mxu0 %v6499_v1 }
 0x2cf   :  { %1202 = vmatpush1.msra.mxu1 %v5035_v48  ;;  %4023 = vmatpush3.msra.mxu0 %v5124_v4 }
 0x2d0   :  { %1203 = vmatprep.subr.mxu1 %v5040_v49  ;;  %4024 = vmatprep.subr.mxu0 %v6499_v1 }
 0x2d1   :  { %1204 = vmatpush1.msra.mxu1 %v5047_v51  ;;  %4025 = vmatpush3.msra.mxu0 %v5130_v5 }
 0x2d2   :  { %1205 = vmatprep.subr.mxu1 %v5050_v52  ;;  %4026 = vmatprep.subr.mxu0 %v6499_v1 }
 0x2d3   :  { %1206 = vmatpush1.msra.mxu1 %v5054_v53  ;;  %4027 = vmatpush3.msra.mxu0 %v5136_v6 }
 0x2d4   :  { %1207 = vmatprep.subr.mxu1 %v5059_v54  ;;  %4028 = vmatprep.subr.mxu0 %v6499_v1 }
 0x2d5   :  { %1208 = vmatpush1.msra.mxu1 %v5066_v56  ;;  %4029 = vmatpush3.msra.mxu0 %v6505_v57  ;;  %v6512_v57 = vld [vmem:[#allocation16_spill] sm:$0xff] }
 0x2d6   :  { %1209 = vmatprep.subr.mxu1 %v6506_v58  ;;  %4030 = vmatprep.subr.mxu0 %v6499_v1 }
 0x2d7   :  { %1210 = vmatpush1.msra.mxu1 %v6507_v7  ;;  %1243 = vmatprep.mubr.f32.mxu1 %v6499_v1 }
 0x2d8   :  { %4031 = vmatpush3.msra.mxu0 %v6508_v11  ;;  %4032 = vmatprep.mubr.msk.f32.mxu0 %vm4656_vm14, %v6499_v1 }
 0x2d9   :  { %1342 = vmatprep.subr.mxu1 %v6509_v26  ;;  %4035 = vmatprep.subr.mxu0 %v6499_v1 }
 0x378   :  { %v1082_v8 = vpop.f32.mrf.mxu1  ;;  %v1153_v14 = vpop.f32.mrf.mxu0 }
 0x379   :  { %v1157_v28 = vadd.f32 %v1082_v8, %v6510_v20  ;;  %v1171_v26 = vadd.f32 %v1153_v14, %v5280_v23  ;;  %v5533_v14 = vld [vmem:[#allocation2 + $0x138] sm:$0xff] }
 0x37a   :  { %v3999_v33 = vpop.f32.mrf.mxu0  ;;  %v1084_v35 = vpop.f32.mrf.mxu1 }
 0x37b   :  { %v3530_v39 = vmul.f32 -1.442695, %v1157_v28  ;;  %v1164_v9 = vadd.f32 %v1084_v35, %v6511_v38 }
 0x37d   :  { %4460 = vpow2.f32 %v3530_v39  ;;  %v3531_v27 = vmul.f32 -1.442695, %v1164_v9  ;;  %v5541_v9 = vld [vmem:[#allocation2 + $0x120] sm:$0xff] }
 0x37f   :  { %4462 = vpow2.f32 %v3531_v27  ;;  %v5549_v27 = vld [vmem:[#allocation2 + $0x108] sm:$0xff] }
 0x38a   :  { %v4461_v12 = vpop.eup %4460 }
 0x38b   :  { %v1161_v10 = vadd.f32 1.0, %v4461_v12  ;;  %v5557_v12 = vld [vmem:[#allocation2 + $0xf0] sm:$0xff] }
 0x38c   :  { %v4463_v18 = vpop.eup %4462 }
 0x38d   :  { %4464 = vrcp.f32 %v1161_v10  ;;  %v1168_v11 = vadd.f32 1.0, %v4463_v18  ;;  %v5565_v10 = vld [vmem:[#allocation2 + $0xd8] sm:$0xff]  ;;  %v5573_v18 = vld [vmem:[#allocation2 + $0xc0] sm:$0xff] }
 0x38f   :  { %4466 = vrcp.f32 %v1168_v11  ;;  %v5529_v11 = vld [vmem:[#allocation2 + $0x140] sm:$0xff] }
 0x39a   :  { %v4465_v7 = vpop.eup %4464 }
 0x39b   :  { %v1172_v58 = vmul.f32 %v4465_v7, %v1171_v26  ;;  %v5525_v7 = vld [vmem:[#allocation2 + $0x150] sm:$0xff]  ;;  %v5581_v26 = vld [vmem:[#allocation2 + $0xa8] sm:$0xff] }
 0x39c   :  { %v4467_v20 = vpop.eup %4466 }
 0x39d   :  { %v1173_v8 = vadd.f32 %v1172_v58, %v6512_v57  ;;  %v1175_v28 = vsub.f32 1.0, %v4467_v20  ;;  %v1177_v35 = vmul.f32 %v4467_v20, %v5359_v31  ;;  %v5517_v57 = vld [vmem:[#allocation2 + $0x168] sm:$0xff]  ;;  %v5521_v58 = vld [vmem:[#allocation2 + $0x158] sm:$0xff] }
 0x39e   :  { %v5597_v20 = vld [vmem:[#allocation2 + $0x78] sm:$0xff] }
 0x39f   :  { %4468 = vtanh.f32 %v1173_v8  ;;  %v5589_v8 = vld [vmem:[#allocation2 + $0x90] sm:$0xff] }
 0x3ac   :  { %v4469_v33 = vpop.eup %4468 }
 0x3ad   :  { %v1176_v39 = vmul.f32 %v4469_v33, %v1175_v28  ;;  %v5605_v28 = vld [vmem:[#allocation2 + $0x60] sm:$0xff]  ;;  %v5613_v33 = vld [vmem:[#allocation2 + $0x48] sm:$0xff] }
 0x3af   :  { %v5435_v38 = vadd.f32 %v1177_v35, %v1176_v39  ;;  %v5621_v39 = vld [vmem:[#allocation2 + $0x30] sm:$0xff]  ;;  %v5629_v35 = vld [vmem:[#allocation2 + $0x18] sm:$0xff] }
 0x3b1   :  { %1244 = vmatmul.mubr.f32.vlgmr.msra.gmra.mxu1 %v5435_v38  ;;  %4033 = vmatmul.mubr.f32.vlgmr.msra.gmra.mxu0 %v5435_v38 }
 0x3b2   :  { %1343 = vmatpush1.msra.mxu1 %v4923_v13  ;;  %4036 = vmatpush3.msra.mxu0 %v5023_v45  ;;  %v6513_v13 = vld [vmem:[#allocation8_spill] sm:$0xff] }
 0x3b3   :  { %1344 = vmatprep.subr.mxu1 %v4927_v15  ;;  %4037 = vmatprep.subr.mxu0 %v6499_v1  ;;  %v6514_v15 = vld [vmem:[#allocation6_spill] sm:$0xff] }
 0x3b4   :  { %1345 = vmatpush1.msra.mxu1 %v4932_v16  ;;  %4038 = vmatpush3.msra.mxu0 %v5042_v50  ;;  %v6515_v16 = vld [vmem:[#allocation7_spill] sm:$0xff] }
 0x3b5   :  { %1346 = vmatprep.subr.mxu1 %v4936_v17  ;;  %4039 = vmatprep.subr.mxu0 %v6499_v1  ;;  %v6516_v17 = vld [vmem:[#allocation9_spill] sm:$0xff] }
 0x3b6   :  { %1347 = vmatpush1.msra.mxu1 %v4940_v19  ;;  %4040 = vmatpush3.msra.mxu0 %v5061_v55  ;;  %v5504_v19 = vld [vmem:[#allocation2 + $0x170] sm:$0xff] }
 0x3b7   :  { %1348 = vmatprep.subr.mxu1 %v4945_v21  ;;  %4041 = vmatprep.subr.mxu0 %v6499_v1 }
 0x3b8   :  { %1349 = vmatpush1.msra.mxu1 %v4949_v22  ;;  %4042 = vmatpush3.msra.mxu0 %v5076_v59 }
 0x3b9   :  { %1350 = vmatprep.subr.mxu1 %v4957_v24  ;;  %4043 = vmatprep.subr.mxu0 %v6499_v1  ;;  %v6517_v24 = vld [vmem:[#allocation17_spill] sm:$0xff] }
 0x3ba   :  { %1351 = vmatpush1.msra.mxu1 %v4963_v25  ;;  %4044 = vmatpush3.msra.mxu0 %v5082_v60 }
 0x3bb   :  { %1352 = vmatprep.subr.mxu1 %v4970_v29  ;;  %4045 = vmatprep.subr.mxu0 %v6499_v1 }
 0x3bc   :  { %1353 = vmatpush1.msra.mxu1 %v4974_v30  ;;  %4046 = vmatpush3.msra.mxu0 %v5088_v61 }
 0x3bd   :  { %1354 = vmatprep.subr.mxu1 %v4983_v32  ;;  %4047 = vmatprep.subr.mxu0 %v6499_v1 }
 0x3be   :  { %1355 = vmatpush1.msra.mxu1 %v4988_v34  ;;  %4048 = vmatpush3.msra.mxu0 %v5094_v62  ;;  %v6518_v34 = vld [vmem:[#allocation19_spill] sm:$0xff] }
 0x3bf   :  { %1356 = vmatprep.subr.mxu1 %v4994_v36  ;;  %4049 = vmatprep.subr.mxu0 %v6499_v1 }
 0x3c0   :  { %1357 = vmatpush1.msra.mxu1 %v4999_v37  ;;  %4050 = vmatpush3.msra.mxu0 %v5100_v63 }
 0x3c1   :  { %1358 = vmatprep.subr.mxu1 %v5003_v40  ;;  %4051 = vmatprep.subr.mxu0 %v6499_v1 }
 0x3c2   :  { %1359 = vmatpush1.msra.mxu1 %v5008_v41  ;;  %4052 = vmatpush3.msra.mxu0 %v5106_v0 }
 0x3c3   :  { %1360 = vmatprep.subr.mxu1 %v5012_v42  ;;  %4053 = vmatprep.subr.mxu0 %v6499_v1 }
 0x3c4   :  { %1361 = vmatpush1.msra.mxu1 %v5017_v43  ;;  %4054 = vmatpush3.msra.mxu0 %v5112_v2 }
 0x3c5   :  { %1362 = vmatprep.subr.mxu1 %v5021_v44  ;;  %4055 = vmatprep.subr.mxu0 %v6499_v1 }
 0x3c6   :  { %1363 = vmatpush1.msra.mxu1 %v5028_v46  ;;  %4056 = vmatpush3.msra.mxu0 %v5118_v3 }
 0x3c7   :  { %1364 = vmatprep.subr.mxu1 %v5031_v47  ;;  %4057 = vmatprep.subr.mxu0 %v6499_v1 }
 0x3c8   :  { %1365 = vmatpush1.msra.mxu1 %v5035_v48  ;;  %4058 = vmatpush3.msra.mxu0 %v5124_v4  ;;  %v6519_v48 = vld [vmem:[#allocation14_spill] sm:$0xff] }
 0x3c9   :  { %1366 = vmatprep.subr.mxu1 %v5040_v49  ;;  %4059 = vmatprep.subr.mxu0 %v6499_v1 }
 0x3ca   :  { %1367 = vmatpush1.msra.mxu1 %v5047_v51  ;;  %4060 = vmatpush3.msra.mxu0 %v5130_v5 }
 0x3cb   :  { %1368 = vmatprep.subr.mxu1 %v5050_v52  ;;  %4061 = vmatprep.subr.mxu0 %v6499_v1 }
 0x3cc   :  { %1369 = vmatpush1.msra.mxu1 %v5054_v53  ;;  %4062 = vmatpush3.msra.mxu0 %v5136_v6 }
 0x3cd   :  { %1370 = vmatprep.subr.mxu1 %v5059_v54  ;;  %4063 = vmatprep.subr.mxu0 %v6499_v1 }
 0x3ce   :  { %1371 = vmatpush1.msra.mxu1 %v5066_v56  ;;  %4064 = vmatpush3.msra.mxu0 %v6513_v13 }
 0x3cf   :  { %1372 = vmatprep.subr.mxu1 %v6514_v15  ;;  %4065 = vmatprep.subr.mxu0 %v6499_v1  ;;  %v6522_v15 = vld [vmem:[#allocation21_spill] sm:$0xff] }
 0x3d0   :  { %1373 = vmatpush1.msra.mxu1 %v6515_v16  ;;  %1406 = vmatprep.mubr.f32.mxu1 %v6499_v1 }
 0x3d1   :  { %4066 = vmatpush3.msra.mxu0 %v6516_v17  ;;  %4067 = vmatprep.mubr.msk.f32.mxu0 %vm4656_vm14, %v6499_v1 }
 0x3d2   :  { %1505 = vmatprep.subr.mxu1 %v5504_v19  ;;  %4070 = vmatprep.subr.mxu0 %v6499_v1 }
 0x471   :  { %v1245_v21 = vpop.f32.mrf.mxu1  ;;  %v1316_v22 = vpop.f32.mrf.mxu0 }
 0x472   :  { %v1320_v25 = vadd.f32 %v1245_v21, %v6517_v24  ;;  %v1334_v44 = vadd.f32 %v1316_v22, %v5280_v23 }
 0x473   :  { %v4034_v29 = vpop.f32.mrf.mxu0  ;;  %v1247_v32 = vpop.f32.mrf.mxu1 }
 0x474   :  { %v3532_v30 = vmul.f32 -1.442695, %v1320_v25  ;;  %v1327_v36 = vadd.f32 %v1247_v32, %v6518_v34  ;;  %v6523_v25 = vld [vmem:[#allocation23_spill] sm:$0xff] }
 0x476   :  { %4470 = vpow2.f32 %v3532_v30  ;;  %v3533_v37 = vmul.f32 -1.442695, %v1327_v36 }
 0x478   :  { %4472 = vpow2.f32 %v3533_v37 }
 0x483   :  { %v4471_v40 = vpop.eup %4470 }
 0x484   :  { %v1324_v41 = vadd.f32 1.0, %v4471_v40 }
 0x485   :  { %v4473_v42 = vpop.eup %4472 }
 0x486   :  { %4474 = vrcp.f32 %v1324_v41  ;;  %v1331_v43 = vadd.f32 1.0, %v4473_v42  ;;  %v6524_v42 = vld [vmem:[#allocation20_spill] sm:$0xff] }
 0x488   :  { %4476 = vrcp.f32 %v1331_v43 }
 0x493   :  { %v4475_v46 = vpop.eup %4474 }
 0x494   :  { %v1335_v47 = vmul.f32 %v4475_v46, %v1334_v44 }
 0x495   :  { %v4477_v51 = vpop.eup %4476 }
 0x496   :  { %v1336_v49 = vadd.f32 %v6519_v48, %v1335_v47  ;;  %v1338_v52 = vsub.f32 1.0, %v4477_v51  ;;  %v1340_v56 = vmul.f32 %v4477_v51, %v5435_v38  ;;  %v5637_v38 = vld [vmem:[#allocation2] sm:$0xff] }
 0x497   :  { %6521 = vst [vmem:[#allocation12_spill] sm:$0xff] %v5637_v38 }
 0x498   :  { %4478 = vtanh.f32 %v1336_v49 }
 0x4a5   :  { %v4479_v53 = vpop.eup %4478 }
 0x4a6   :  { %v1339_v54 = vmul.f32 %v4479_v53, %v1338_v52  ;;  %v5656_v52 = vld [vmem:[#allocation2 + $0x178] sm:$0xff]  ;;  %v5662_v53 = vld [vmem:[#allocation2 + $0x160] sm:$0xff] }
 0x4a8   :  { %v5513_v31 = vadd.f32 %v1340_v56, %v1339_v54  ;;  %v5668_v54 = vld [vmem:[#allocation2 + $0x148] sm:$0xff]  ;;  %v5674_v56 = vld [vmem:[#allocation2 + $0x130] sm:$0xff] }
 0x4aa   :  { %1407 = vmatmul.mubr.f32.vlgmr.msra.gmra.mxu1 %v5513_v31  ;;  %4068 = vmatmul.mubr.f32.vlgmr.msra.gmra.mxu0 %v5513_v31 }
 0x4ab   :  { %1506 = vmatpush1.msra.mxu1 %v5517_v57  ;;  %4071 = vmatpush3.msra.mxu0 %v5023_v45  ;;  %v5537_v45 = vld [vmem:[#allocation2 + $0x128] sm:$0xff] }
 0x4ac   :  { %1507 = vmatprep.subr.mxu1 %v5521_v58  ;;  %4072 = vmatprep.subr.mxu0 %v6499_v1 }
 0x4ad   :  { %1508 = vmatpush1.msra.mxu1 %v5525_v7  ;;  %4073 = vmatpush3.msra.mxu0 %v5042_v50  ;;  %v5545_v50 = vld [vmem:[#allocation2 + $0x110] sm:$0xff] }
 0x4ae   :  { %1509 = vmatprep.subr.mxu1 %v5529_v11  ;;  %4074 = vmatprep.subr.mxu0 %v6499_v1 }
 0x4af   :  { %1510 = vmatpush1.msra.mxu1 %v5533_v14  ;;  %4075 = vmatpush3.msra.mxu0 %v5061_v55  ;;  %v5553_v55 = vld [vmem:[#allocation2 + $0xf8] sm:$0xff] }
 0x4b0   :  { %1511 = vmatprep.subr.mxu1 %v5537_v45  ;;  %4076 = vmatprep.subr.mxu0 %v6499_v1 }
 0x4b1   :  { %1512 = vmatpush1.msra.mxu1 %v5541_v9  ;;  %4077 = vmatpush3.msra.mxu0 %v5076_v59  ;;  %v5561_v59 = vld [vmem:[#allocation2 + $0xe0] sm:$0xff] }
 0x4b2   :  { %1513 = vmatprep.subr.mxu1 %v5545_v50  ;;  %4078 = vmatprep.subr.mxu0 %v6499_v1 }
 0x4b3   :  { %1514 = vmatpush1.msra.mxu1 %v5549_v27  ;;  %4079 = vmatpush3.msra.mxu0 %v5082_v60  ;;  %v5569_v60 = vld [vmem:[#allocation2 + $0xc8] sm:$0xff] }
 0x4b4   :  { %1515 = vmatprep.subr.mxu1 %v5553_v55  ;;  %4080 = vmatprep.subr.mxu0 %v6499_v1 }
 0x4b5   :  { %1516 = vmatpush1.msra.mxu1 %v5557_v12  ;;  %4081 = vmatpush3.msra.mxu0 %v5088_v61  ;;  %v5577_v61 = vld [vmem:[#allocation2 + $0xb0] sm:$0xff] }
 0x4b6   :  { %1517 = vmatprep.subr.mxu1 %v5561_v59  ;;  %4082 = vmatprep.subr.mxu0 %v6499_v1 }
 0x4b7   :  { %1518 = vmatpush1.msra.mxu1 %v5565_v10  ;;  %4083 = vmatpush3.msra.mxu0 %v5094_v62  ;;  %v5585_v62 = vld [vmem:[#allocation2 + $0x98] sm:$0xff] }
 0x4b8   :  { %1519 = vmatprep.subr.mxu1 %v5569_v60  ;;  %4084 = vmatprep.subr.mxu0 %v6499_v1 }
 0x4b9   :  { %1520 = vmatpush1.msra.mxu1 %v5573_v18  ;;  %4085 = vmatpush3.msra.mxu0 %v5100_v63  ;;  %v5593_v63 = vld [vmem:[#allocation2 + $0x80] sm:$0xff] }
 0x4ba   :  { %1521 = vmatprep.subr.mxu1 %v5577_v61  ;;  %4086 = vmatprep.subr.mxu0 %v6499_v1 }
 0x4bb   :  { %1522 = vmatpush1.msra.mxu1 %v5581_v26  ;;  %4087 = vmatpush3.msra.mxu0 %v5106_v0  ;;  %v5601_v0 = vld [vmem:[#allocation2 + $0x68] sm:$0xff] }
 0x4bc   :  { %1523 = vmatprep.subr.mxu1 %v5585_v62  ;;  %4088 = vmatprep.subr.mxu0 %v6499_v1 }
 0x4bd   :  { %1524 = vmatpush1.msra.mxu1 %v5589_v8  ;;  %4089 = vmatpush3.msra.mxu0 %v5112_v2  ;;  %v5609_v2 = vld [vmem:[#allocation2 + $0x50] sm:$0xff] }
 0x4be   :  { %1525 = vmatprep.subr.mxu1 %v5593_v63  ;;  %4090 = vmatprep.subr.mxu0 %v6499_v1 }
 0x4bf   :  { %1526 = vmatpush1.msra.mxu1 %v5597_v20  ;;  %4091 = vmatpush3.msra.mxu0 %v5118_v3  ;;  %v5617_v3 = vld [vmem:[#allocation2 + $0x38] sm:$0xff] }
 0x4c0   :  { %1527 = vmatprep.subr.mxu1 %v5601_v0  ;;  %4092 = vmatprep.subr.mxu0 %v6499_v1 }
 0x4c1   :  { %1528 = vmatpush1.msra.mxu1 %v5605_v28  ;;  %4093 = vmatpush3.msra.mxu0 %v5124_v4  ;;  %v5625_v4 = vld [vmem:[#allocation2 + $0x20] sm:$0xff] }
 0x4c2   :  { %1529 = vmatprep.subr.mxu1 %v5609_v2  ;;  %4094 = vmatprep.subr.mxu0 %v6499_v1 }
 0x4c3   :  { %1530 = vmatpush1.msra.mxu1 %v5613_v33  ;;  %4095 = vmatpush3.msra.mxu0 %v5130_v5  ;;  %v5633_v5 = vld [vmem:[#allocation2 + $0x8] sm:$0xff] }
 0x4c4   :  { %1531 = vmatprep.subr.mxu1 %v5617_v3  ;;  %4096 = vmatprep.subr.mxu0 %v6499_v1  ;;  %6520 = vst [vmem:[#allocation10_spill] sm:$0xff] %v5633_v5 }
 0x4c5   :  { %1532 = vmatpush1.msra.mxu1 %v5621_v39  ;;  %4097 = vmatpush3.msra.mxu0 %v5136_v6 }
 0x4c6   :  { %1533 = vmatprep.subr.mxu1 %v5625_v4  ;;  %4098 = vmatprep.subr.mxu0 %v6499_v1 }
 0x4c7   :  { %1534 = vmatpush1.msra.mxu1 %v5629_v35  ;;  %4099 = vmatpush3.msra.mxu0 %v6513_v13 }
 0x4c8   :  { %1535 = vmatprep.subr.mxu1 %v5633_v5  ;;  %4100 = vmatprep.subr.mxu0 %v6499_v1 }
 0x4c9   :  { %1536 = vmatpush1.msra.mxu1 %v5637_v38  ;;  %1569 = vmatprep.mubr.f32.mxu1 %v6499_v1 }
 0x4ca   :  { %4101 = vmatpush3.msra.mxu0 %v6516_v17  ;;  %4102 = vmatprep.mubr.msk.f32.mxu0 %vm4656_vm14, %v6499_v1 }
 0x4cb   :  { %1668 = vmatprep.subr.mxu1 %v5504_v19  ;;  %4105 = vmatprep.subr.mxu0 %v6499_v1 }
 0x56a   :  { %v1408_v6 = vpop.f32.mrf.mxu1  ;;  %v1479_v13 = vpop.f32.mrf.mxu0 }
 0x56b   :  { %v1483_v16 = vadd.f32 %v1408_v6, %v6522_v15  ;;  %v1497_v37 = vadd.f32 %v1479_v13, %v5280_v23  ;;  %v5686_v6 = vld [vmem:[#allocation2 + $0x100] sm:$0xff]  ;;  %v5692_v13 = vld [vmem:[#allocation2 + $0xe8] sm:$0xff]  ;;  %v5698_v15 = vld [vmem:[#allocation2 + $0xd0] sm:$0xff] }
 0x56c   :  { %v4069_v21 = vpop.f32.mrf.mxu0  ;;  %v1410_v24 = vpop.f32.mrf.mxu1 }
 0x56d   :  { %v3534_v22 = vmul.f32 -1.442695, %v1483_v16  ;;  %v1490_v29 = vadd.f32 %v1410_v24, %v6523_v25  ;;  %v5704_v16 = vld [vmem:[#allocation2 + $0xb8] sm:$0xff]  ;;  %v5710_v21 = vld [vmem:[#allocation2 + $0xa0] sm:$0xff]  ;;  %v5722_v24 = vld [vmem:[#allocation2 + $0x70] sm:$0xff] }
 0x56e   :  { %v5728_v25 = vld [vmem:[#allocation2 + $0x58] sm:$0xff] }
 0x56f   :  { %4480 = vpow2.f32 %v3534_v22  ;;  %v3535_v30 = vmul.f32 -1.442695, %v1490_v29  ;;  %v5716_v22 = vld [vmem:[#allocation2 + $0x88] sm:$0xff]  ;;  %v5734_v29 = vld [vmem:[#allocation2 + $0x40] sm:$0xff] }
 0x571   :  { %4482 = vpow2.f32 %v3535_v30  ;;  %v5740_v30 = vld [vmem:[#allocation2 + $0x28] sm:$0xff] }
 0x572   :  { %6525 = vst [vmem:[#allocation11_spill] sm:$0xff] %v5740_v30 }
 0x57c   :  { %v4481_v17 = vpop.eup %4480 }
 0x57d   :  { %v1487_v32 = vadd.f32 1.0, %v4481_v17  ;;  %v5747_v17 = vld [vmem:[#allocation2 + $0x10] sm:$0xff] }
 0x57e   :  { %v4483_v34 = vpop.eup %4482  ;;  %6526 = vst [vmem:[#allocation5_spill] sm:$0xff] %v5747_v17 }
 0x57f   :  { %4484 = vrcp.f32 %v1487_v32  ;;  %v1494_v36 = vadd.f32 1.0, %v4483_v34 }
 0x581   :  { %4486 = vrcp.f32 %v1494_v36  ;;  %v6527_v36 = vld [vmem:[#allocation25_spill] sm:$0xff] }
 0x58c   :  { %v4485_v40 = vpop.eup %4484 }
 0x58d   :  { %v1498_v41 = vmul.f32 %v4485_v40, %v1497_v37 }
 0x58e   :  { %v4487_v44 = vpop.eup %4486 }
 0x58f   :  { %v1499_v43 = vadd.f32 %v1498_v41, %v6524_v42  ;;  %v1501_v46 = vsub.f32 1.0, %v4487_v44  ;;  %v1503_v49 = vmul.f32 %v4487_v44, %v5513_v31  ;;  %v5680_v31 = vld [vmem:[#allocation2 + $0x118] sm:$0xff] }
 0x591   :  { %4488 = vtanh.f32 %v1499_v43  ;;  %v6528_v43 = vld [vmem:[#allocation27_spill] sm:$0xff] }
 0x59e   :  { %v4489_v47 = vpop.eup %4488 }
 0x59f   :  { %v1502_v48 = vmul.f32 %v4489_v47, %v1501_v46 }
 0x5a1   :  { %v5651_v51 = vadd.f32 %v1503_v49, %v1502_v48 }
 0x5a3   :  { %1570 = vmatmul.mubr.f32.vlgmr.msra.gmra.mxu1 %v5651_v51  ;;  %4103 = vmatmul.mubr.f32.vlgmr.msra.gmra.mxu0 %v5651_v51 }
 0x5a4   :  { %1669 = vmatpush1.msra.mxu1 %v5517_v57  ;;  %4106 = vmatpush3.msra.mxu0 %v5656_v52 }
 0x5a5   :  { %1670 = vmatprep.subr.mxu1 %v5521_v58  ;;  %4107 = vmatprep.subr.mxu0 %v6499_v1 }
 0x5a6   :  { %1671 = vmatpush1.msra.mxu1 %v5525_v7  ;;  %4108 = vmatpush3.msra.mxu0 %v5662_v53 }
 0x5a7   :  { %1672 = vmatprep.subr.mxu1 %v5529_v11  ;;  %4109 = vmatprep.subr.mxu0 %v6499_v1 }
 0x5a8   :  { %1673 = vmatpush1.msra.mxu1 %v5533_v14  ;;  %4110 = vmatpush3.msra.mxu0 %v5668_v54 }
 0x5a9   :  { %1674 = vmatprep.subr.mxu1 %v5537_v45  ;;  %4111 = vmatprep.subr.mxu0 %v6499_v1 }
 0x5aa   :  { %1675 = vmatpush1.msra.mxu1 %v5541_v9  ;;  %4112 = vmatpush3.msra.mxu0 %v5674_v56 }
 0x5ab   :  { %1676 = vmatprep.subr.mxu1 %v5545_v50  ;;  %4113 = vmatprep.subr.mxu0 %v6499_v1 }
 0x5ac   :  { %1677 = vmatpush1.msra.mxu1 %v5549_v27  ;;  %4114 = vmatpush3.msra.mxu0 %v5680_v31 }
 0x5ad   :  { %1678 = vmatprep.subr.mxu1 %v5553_v55  ;;  %4115 = vmatprep.subr.mxu0 %v6499_v1 }
 0x5ae   :  { %1679 = vmatpush1.msra.mxu1 %v5557_v12  ;;  %4116 = vmatpush3.msra.mxu0 %v5686_v6 }
 0x5af   :  { %1680 = vmatprep.subr.mxu1 %v5561_v59  ;;  %4117 = vmatprep.subr.mxu0 %v6499_v1 }
 0x5b0   :  { %1681 = vmatpush1.msra.mxu1 %v5565_v10  ;;  %4118 = vmatpush3.msra.mxu0 %v5692_v13 }
 0x5b1   :  { %1682 = vmatprep.subr.mxu1 %v5569_v60  ;;  %4119 = vmatprep.subr.mxu0 %v6499_v1 }
 0x5b2   :  { %1683 = vmatpush1.msra.mxu1 %v5573_v18  ;;  %4120 = vmatpush3.msra.mxu0 %v5698_v15 }
 0x5b3   :  { %1684 = vmatprep.subr.mxu1 %v5577_v61  ;;  %4121 = vmatprep.subr.mxu0 %v6499_v1 }
 0x5b4   :  { %1685 = vmatpush1.msra.mxu1 %v5581_v26  ;;  %4122 = vmatpush3.msra.mxu0 %v5704_v16 }
 0x5b5   :  { %1686 = vmatprep.subr.mxu1 %v5585_v62  ;;  %4123 = vmatprep.subr.mxu0 %v6499_v1 }
 0x5b6   :  { %1687 = vmatpush1.msra.mxu1 %v5589_v8  ;;  %4124 = vmatpush3.msra.mxu0 %v5710_v21 }
 0x5b7   :  { %1688 = vmatprep.subr.mxu1 %v5593_v63  ;;  %4125 = vmatprep.subr.mxu0 %v6499_v1 }
 0x5b8   :  { %1689 = vmatpush1.msra.mxu1 %v5597_v20  ;;  %4126 = vmatpush3.msra.mxu0 %v5716_v22 }
 0x5b9   :  { %1690 = vmatprep.subr.mxu1 %v5601_v0  ;;  %4127 = vmatprep.subr.mxu0 %v6499_v1 }
 0x5ba   :  { %1691 = vmatpush1.msra.mxu1 %v5605_v28  ;;  %4128 = vmatpush3.msra.mxu0 %v5722_v24 }
 0x5bb   :  { %1692 = vmatprep.subr.mxu1 %v5609_v2  ;;  %4129 = vmatprep.subr.mxu0 %v6499_v1 }
 0x5bc   :  { %1693 = vmatpush1.msra.mxu1 %v5613_v33  ;;  %4130 = vmatpush3.msra.mxu0 %v5728_v25 }
 0x5bd   :  { %1694 = vmatprep.subr.mxu1 %v5617_v3  ;;  %4131 = vmatprep.subr.mxu0 %v6499_v1 }
 0x5be   :  { %1695 = vmatpush1.msra.mxu1 %v5621_v39  ;;  %4132 = vmatpush3.msra.mxu0 %v5734_v29 }
 0x5bf   :  { %1696 = vmatprep.subr.mxu1 %v5625_v4  ;;  %4133 = vmatprep.subr.mxu0 %v6499_v1 }
 0x5c0   :  { %1697 = vmatpush1.msra.mxu1 %v5629_v35  ;;  %4134 = vmatpush3.msra.mxu0 %v5740_v30  ;;  %v6529_v30 = vld [vmem:[#allocation18_spill] sm:$0xff] }
 0x5c1   :  { %1698 = vmatprep.subr.mxu1 %v5633_v5  ;;  %4135 = vmatprep.subr.mxu0 %v6499_v1 }
 0x5c2   :  { %1699 = vmatpush1.msra.mxu1 %v5637_v38  ;;  %1732 = vmatprep.mubr.f32.mxu1 %v6499_v1 }
 0x5c3   :  { %4136 = vmatpush3.msra.mxu0 %v5747_v17  ;;  %4137 = vmatprep.mubr.msk.f32.mxu0 %vm4656_vm14, %v6499_v1 }
 0x5c4   :  { %1831 = vmatprep.subr.mxu1 %v5504_v19  ;;  %4140 = vmatprep.subr.mxu0 %v6499_v1 }
 0x663   :  { %v1571_v32 = vpop.f32.mrf.mxu1  ;;  %v1642_v34 = vpop.f32.mrf.mxu0 }
 0x664   :  { %v1646_v37 = vadd.f32 %v1571_v32, %v6527_v36  ;;  %v1660_v19 = vadd.f32 %v1642_v34, %v5280_v23  ;;  %v6530_v23 = vld [vmem:[#allocation11_spill] sm:$0xff]  ;;  %v2022_v34 = vld [vmem:[#allocation2 + $0x558] sm:$0xff] }
 0x665   :  { %v4104_v40 = vpop.f32.mrf.mxu0  ;;  %v1573_v42 = vpop.f32.mrf.mxu1 }
 0x666   :  { %v3536_v41 = vmul.f32 -1.442695, %v1646_v37  ;;  %v1653_v44 = vadd.f32 %v1573_v42, %v6528_v43 }
 0x668   :  { %4490 = vpow2.f32 %v3536_v41  ;;  %v3537_v46 = vmul.f32 -1.442695, %v1653_v44  ;;  %v2020_v44 = vld [vmem:[#allocation2 + $0x548] sm:$0xff] }
 0x66a   :  { %4492 = vpow2.f32 %v3537_v46  ;;  %v2024_v46 = vld [vmem:[#allocation2 + $0x568] sm:$0xff] }
 0x675   :  { %v4491_v47 = vpop.eup %4490 }
 0x676   :  { %v1650_v48 = vadd.f32 1.0, %v4491_v47  ;;  %v2019_v47 = vld [vmem:[#allocation2 + $0x540] sm:$0xff] }
 0x677   :  { %v4493_v49 = vpop.eup %4492 }
 0x678   :  { %4494 = vrcp.f32 %v1650_v48  ;;  %v1657_v17 = vadd.f32 1.0, %v4493_v49  ;;  %v2017_v48 = vld [vmem:[#allocation2 + $0x530] sm:$0xff] }
 0x679   :  { %v2021_v49 = vld [vmem:[#allocation2 + $0x550] sm:$0xff] }
 0x67a   :  { %4496 = vrcp.f32 %v1657_v17  ;;  %v2027_v17 = vld [vmem:[#allocation2 + $0x580] sm:$0xff] }
 0x685   :  { %v4495_v38 = vpop.eup %4494 }
 0x686   :  { %v1661_v5 = vmul.f32 %v4495_v38, %v1660_v19  ;;  %v2040_v38 = vld [vmem:[#allocation2 + $0x5e8] sm:$0xff] }
 0x687   :  { %v4497_v36 = vpop.eup %4496  ;;  %v2016_v19 = vld [vmem:[#allocation2 + $0x528] sm:$0xff] }
 0x688   :  { %v1662_v32 = vadd.f32 %v6529_v30, %v1661_v5  ;;  %v1664_v37 = vsub.f32 1.0, %v4497_v36  ;;  %v1666_v42 = vmul.f32 %v4497_v36, %v5651_v51  ;;  %v2041_v5 = vld [vmem:[#allocation2 + $0x5f0] sm:$0xff]  ;;  %v2038_v51 = vld [vmem:[#allocation2 + $0x5d8] sm:$0xff]  ;;  %v2023_v30 = vld [vmem:[#allocation2 + $0x560] sm:$0xff] }
 0x689   :  { %v2018_v36 = vld [vmem:[#allocation2 + $0x538] sm:$0xff] }
 0x68a   :  { %4498 = vtanh.f32 %v1662_v32  ;;  %v2014_v32 = vld [vmem:[#allocation2 + $0x518] sm:$0xff] }
 0x697   :  { %v4499_v40 = vpop.eup %4498 }
 0x698   :  { %v1665_v41 = vmul.f32 %v4499_v40, %v1664_v37  ;;  %v2013_v37 = vld [vmem:[#allocation2 + $0x510] sm:$0xff]  ;;  %v2011_v40 = vld [vmem:[#allocation2 + $0x500] sm:$0xff] }
 0x69a   :  { %v5759_v43 = vadd.f32 %v1666_v42, %v1665_v41  ;;  %v2015_v41 = vld [vmem:[#allocation2 + $0x520] sm:$0xff]  ;;  %v2010_v42 = vld [vmem:[#allocation2 + $0x4f8] sm:$0xff] }
 0x69c   :  { %1733 = vmatmul.mubr.f32.vlgmr.msra.gmra.mxu1 %v5759_v43  ;;  %4138 = vmatmul.mubr.f32.vlgmr.msra.gmra.mxu0 %v5759_v43 }
 0x69d   :  { %1832 = vmatpush1.msra.mxu1 %v5517_v57  ;;  %4141 = vmatpush3.msra.mxu0 %v5656_v52  ;;  %v6531_v57 = vld [vmem:[#allocation10_spill] sm:$0xff]  ;;  %v2042_v52 = vld [vmem:[#allocation2 + $0x5f8] sm:$0xff] }
 0x69e   :  { %1833 = vmatprep.subr.mxu1 %v5521_v58  ;;  %4142 = vmatprep.subr.mxu0 %v6499_v1  ;;  %v6532_v58 = vld [vmem:[#allocation12_spill] sm:$0xff] }
 0x69f   :  { %1834 = vmatpush1.msra.mxu1 %v5525_v7  ;;  %4143 = vmatpush3.msra.mxu0 %v5662_v53  ;;  %v6533_v7 = vld [vmem:[#allocation5_spill] sm:$0xff]  ;;  %v2037_v53 = vld [vmem:[#allocation2 + $0x5d0] sm:$0xff] }
 0x6a0   :  { %1835 = vmatprep.subr.mxu1 %v5529_v11  ;;  %4144 = vmatprep.subr.mxu0 %v6499_v1 }
 0x6a1   :  { %1836 = vmatpush1.msra.mxu1 %v5533_v14  ;;  %4145 = vmatpush3.msra.mxu0 %v5668_v54  ;;  %v2035_v54 = vld [vmem:[#allocation2 + $0x5c0] sm:$0xff] }
 0x6a2   :  { %1837 = vmatprep.subr.mxu1 %v5537_v45  ;;  %4146 = vmatprep.subr.mxu0 %v6499_v1  ;;  %v6534_v45 = vld [vmem:[#allocation29_spill] sm:$0xff] }
 0x6a3   :  { %1838 = vmatpush1.msra.mxu1 %v5541_v9  ;;  %4147 = vmatpush3.msra.mxu0 %v5674_v56  ;;  %v2039_v56 = vld [vmem:[#allocation2 + $0x5e0] sm:$0xff] }
 0x6a4   :  { %1839 = vmatprep.subr.mxu1 %v5545_v50  ;;  %4148 = vmatprep.subr.mxu0 %v6499_v1 }
 0x6a5   :  { %1840 = vmatpush1.msra.mxu1 %v5549_v27  ;;  %4149 = vmatpush3.msra.mxu0 %v5680_v31  ;;  %v2034_v31 = vld [vmem:[#allocation2 + $0x5b8] sm:$0xff] }
 0x6a6   :  { %1841 = vmatprep.subr.mxu1 %v5553_v55  ;;  %4150 = vmatprep.subr.mxu0 %v6499_v1 }
 0x6a7   :  { %1842 = vmatpush1.msra.mxu1 %v5557_v12  ;;  %4151 = vmatpush3.msra.mxu0 %v5686_v6  ;;  %v6535_v12 = vld [vmem:[#allocation31_spill] sm:$0xff]  ;;  %v2032_v6 = vld [vmem:[#allocation2 + $0x5a8] sm:$0xff] }
 0x6a8   :  { %1843 = vmatprep.subr.mxu1 %v5561_v59  ;;  %4152 = vmatprep.subr.mxu0 %v6499_v1 }
 0x6a9   :  { %1844 = vmatpush1.msra.mxu1 %v5565_v10  ;;  %4153 = vmatpush3.msra.mxu0 %v5692_v13  ;;  %v2036_v13 = vld [vmem:[#allocation2 + $0x5c8] sm:$0xff] }
 0x6aa   :  { %1845 = vmatprep.subr.mxu1 %v5569_v60  ;;  %4154 = vmatprep.subr.mxu0 %v6499_v1 }
 0x6ab   :  { %1846 = vmatpush1.msra.mxu1 %v5573_v18  ;;  %4155 = vmatpush3.msra.mxu0 %v5698_v15  ;;  %v2031_v15 = vld [vmem:[#allocation2 + $0x5a0] sm:$0xff] }
 0x6ac   :  { %1847 = vmatprep.subr.mxu1 %v5577_v61  ;;  %4156 = vmatprep.subr.mxu0 %v6499_v1 }
 0x6ad   :  { %1848 = vmatpush1.msra.mxu1 %v5581_v26  ;;  %4157 = vmatpush3.msra.mxu0 %v5704_v16  ;;  %v2029_v16 = vld [vmem:[#allocation2 + $0x590] sm:$0xff] }
 0x6ae   :  { %1849 = vmatprep.subr.mxu1 %v5585_v62  ;;  %4158 = vmatprep.subr.mxu0 %v6499_v1  ;;  %v5834_v62 = vld [vmem:[%s6415_s5 + $0x1] ss:$0 sm:$0xff] }
 0x6af   :  { %1850 = vmatpush1.msra.mxu1 %v5589_v8  ;;  %4159 = vmatpush3.msra.mxu0 %v5710_v21  ;;  %v2033_v21 = vld [vmem:[#allocation2 + $0x5b0] sm:$0xff] }
 0x6b0   :  { %1851 = vmatprep.subr.mxu1 %v5593_v63  ;;  %4160 = vmatprep.subr.mxu0 %v6499_v1 }
 0x6b1   :  { %1852 = vmatpush1.msra.mxu1 %v5597_v20  ;;  %4161 = vmatpush3.msra.mxu0 %v5716_v22  ;;  %v2028_v22 = vld [vmem:[#allocation2 + $0x588] sm:$0xff] }
 0x6b2   :  { %1853 = vmatprep.subr.mxu1 %v5601_v0  ;;  %4162 = vmatprep.subr.mxu0 %v6499_v1  ;;  %v6536_v0 = vld [vmem:[#allocation24_spill] sm:$0xff] }
 0x6b3   :  { %1854 = vmatpush1.msra.mxu1 %v5605_v28  ;;  %4163 = vmatpush3.msra.mxu0 %v5722_v24  ;;  %v2026_v24 = vld [vmem:[#allocation2 + $0x578] sm:$0xff] }
 0x6b4   :  { %1855 = vmatprep.subr.mxu1 %v5609_v2  ;;  %4164 = vmatprep.subr.mxu0 %v6499_v1 }
 0x6b5   :  { %1856 = vmatpush1.msra.mxu1 %v5613_v33  ;;  %4165 = vmatpush3.msra.mxu0 %v5728_v25  ;;  %v2030_v25 = vld [vmem:[#allocation2 + $0x598] sm:$0xff] }
 0x6b6   :  { %1857 = vmatprep.subr.mxu1 %v5617_v3  ;;  %4166 = vmatprep.subr.mxu0 %v6499_v1 }
 0x6b7   :  { %1858 = vmatpush1.msra.mxu1 %v5621_v39  ;;  %4167 = vmatpush3.msra.mxu0 %v5734_v29  ;;  %v2025_v29 = vld [vmem:[#allocation2 + $0x570] sm:$0xff] }
 0x6b8   :  { %1859 = vmatprep.subr.mxu1 %v5625_v4  ;;  %4168 = vmatprep.subr.mxu0 %v6499_v1 }
 0x6b9   :  { %1860 = vmatpush1.msra.mxu1 %v5629_v35  ;;  %4169 = vmatpush3.msra.mxu0 %v6530_v23  ;;  %v2012_v23 = vld [vmem:[#allocation2 + $0x508] sm:$0xff] }
 0x6ba   :  { %1861 = vmatprep.subr.mxu1 %v6531_v57  ;;  %4170 = vmatprep.subr.mxu0 %v6499_v1  ;;  %v2007_v57 = vld [vmem:[#allocation2 + $0x4e0] sm:$0xff] }
 0x6bb   :  { %1862 = vmatpush1.msra.mxu1 %v6532_v58  ;;  %1895 = vmatprep.mubr.f32.mxu1 %v6499_v1  ;;  %v2005_v58 = vld [vmem:[#allocation2 + $0x4d0] sm:$0xff] }
 0x6bc   :  { %4171 = vmatpush3.msra.mxu0 %v6533_v7  ;;  %4172 = vmatprep.mubr.msk.f32.mxu0 %vm4656_vm14, %v6499_v1  ;;  %v2009_v7 = vld [vmem:[#allocation2 + $0x4f0] sm:$0xff] }
 0x6bd   :  { %4175 = vmatprep.subr.mxu0 %v6499_v1  ;;  %2060 = vmatprep.subr.mxu1 %v2041_v5 }
 0x75c   :  { %v1734_v11 = vpop.f32.mrf.mxu1  ;;  %v1805_v14 = vpop.f32.mrf.mxu0 }
 0x75d   :  { %v1809_v9 = vadd.f32 %v1734_v11, %v6534_v45  ;;  %v1823_v8 = vadd.f32 %v5834_v62, %v1805_v14  ;;  %v2004_v11 = vld [vmem:[#allocation2 + $0x4c8] sm:$0xff]  ;;  %v2002_v14 = vld [vmem:[#allocation2 + $0x4b8] sm:$0xff] }
 0x75e   :  { %v4139_v50 = vpop.f32.mrf.mxu0  ;;  %v1736_v55 = vpop.f32.mrf.mxu1  ;;  %v2006_v45 = vld [vmem:[#allocation2 + $0x4d8] sm:$0xff] }
 0x75f   :  { %v3538_v27 = vmul.f32 -1.442695, %v1809_v9  ;;  %v1816_v59 = vadd.f32 %v1736_v55, %v6535_v12  ;;  %v2001_v9 = vld [vmem:[#allocation2 + $0x4b0] sm:$0xff]  ;;  %v1999_v50 = vld [vmem:[#allocation2 + $0x4a0] sm:$0xff]  ;;  %v1998_v55 = vld [vmem:[#allocation2 + $0x498] sm:$0xff] }
 0x760   :  { %v1996_v12 = vld [vmem:[#allocation2 + $0x488] sm:$0xff] }
 0x761   :  { %4500 = vpow2.f32 %v3538_v27  ;;  %v3539_v10 = vmul.f32 -1.442695, %v1816_v59  ;;  %v2003_v27 = vld [vmem:[#allocation2 + $0x4c0] sm:$0xff]  ;;  %v2000_v59 = vld [vmem:[#allocation2 + $0x4a8] sm:$0xff] }
 0x763   :  { %4502 = vpow2.f32 %v3539_v10  ;;  %v1995_v10 = vld [vmem:[#allocation2 + $0x480] sm:$0xff] }
 0x76e   :  { %v4501_v60 = vpop.eup %4500 }
 0x76f   :  { %v1813_v18 = vadd.f32 1.0, %v4501_v60  ;;  %v1997_v60 = vld [vmem:[#allocation2 + $0x490] sm:$0xff] }
 0x770   :  { %v4503_v61 = vpop.eup %4502 }
 0x771   :  { %4504 = vrcp.f32 %v1813_v18  ;;  %v1820_v26 = vadd.f32 1.0, %v4503_v61  ;;  %v2249_v18 = vld [vmem:[#allocation2 + $0x470] sm:$0xff] }
 0x773   :  { %4506 = vrcp.f32 %v1820_v26 }
 0x77e   :  { %v4505_v63 = vpop.eup %4504 }
 0x77f   :  { %v1824_v20 = vmul.f32 %v4505_v63, %v1823_v8  ;;  %v6537_v8 = vld [vmem:[#allocation33_spill] sm:$0xff] }
 0x780   :  { %v4507_v2 = vpop.eup %4506 }
 0x781   :  { %v1825_v28 = vadd.f32 %v1824_v20, %v6536_v0  ;;  %v1827_v33 = vsub.f32 1.0, %v4507_v2  ;;  %v1829_v4 = vmul.f32 %v4507_v2, %v5759_v43  ;;  %v2008_v43 = vld [vmem:[#allocation2 + $0x4e8] sm:$0xff] }
 0x782   :  { %v6538_v2 = vld [vmem:[#allocation34_spill] sm:$0xff] }
 0x783   :  { %4508 = vtanh.f32 %v1825_v28 }
 0x790   :  { %v4509_v3 = vpop.eup %4508 }
 0x791   :  { %v1828_v39 = vmul.f32 %v4509_v3, %v1827_v33 }
 0x793   :  { %v5839_v35 = vadd.f32 %v1829_v4, %v1828_v39 }
 0x795   :  { %1896 = vmatmul.mubr.f32.vlgmr.msra.gmra.mxu1 %v5839_v35  ;;  %4173 = vmatmul.mubr.f32.vlgmr.msra.gmra.mxu0 %v5839_v35 }
 0x796   :  { %2124 = vmatprep.mubr.f32.mxu1 %v6499_v1  ;;  %4207 = vmatprep.mubr.msk.f32.mxu0 %vm4656_vm14, %v6499_v1 }
 0x797   :  { %2061 = vmatpush1.msra.mxu1 %v2040_v38  ;;  %4176 = vmatpush3.msra.mxu0 %v2042_v52 }
 0x798   :  { %2062 = vmatprep.subr.mxu1 %v2038_v51  ;;  %4177 = vmatprep.subr.mxu0 %v6499_v1 }
 0x799   :  { %2063 = vmatpush1.msra.mxu1 %v2037_v53  ;;  %4178 = vmatpush3.msra.mxu0 %v2039_v56 }
 0x79a   :  { %2064 = vmatprep.subr.mxu1 %v2035_v54  ;;  %4179 = vmatprep.subr.mxu0 %v6499_v1  ;;  %v6539_v54 = vld [vmem:[#allocation22_spill] sm:$0xff] }
 0x79b   :  { %2065 = vmatpush1.msra.mxu1 %v2034_v31  ;;  %4180 = vmatpush3.msra.mxu0 %v2036_v13 }
 0x79c   :  { %2066 = vmatprep.subr.mxu1 %v2032_v6  ;;  %4181 = vmatprep.subr.mxu0 %v6499_v1 }
 0x79d   :  { %2067 = vmatpush1.msra.mxu1 %v2031_v15  ;;  %4182 = vmatpush3.msra.mxu0 %v2033_v21 }
 0x79e   :  { %2068 = vmatprep.subr.mxu1 %v2029_v16  ;;  %4183 = vmatprep.subr.mxu0 %v6499_v1 }
 0x79f   :  { %2069 = vmatpush1.msra.mxu1 %v2028_v22  ;;  %4184 = vmatpush3.msra.mxu0 %v2030_v25  ;;  %v2248_v22 = vld [vmem:[#allocation2 + $0x468] sm:$0xff]  ;;  %v2250_v25 = vld [vmem:[#allocation2 + $0x478] sm:$0xff] }
 0x7a0   :  { %2070 = vmatprep.subr.mxu1 %v2026_v24  ;;  %4185 = vmatprep.subr.mxu0 %v6499_v1  ;;  %v2246_v24 = vld [vmem:[#allocation2 + $0x458] sm:$0xff] }
 0x7a1   :  { %2071 = vmatpush1.msra.mxu1 %v2025_v29  ;;  %4186 = vmatpush3.msra.mxu0 %v2027_v17  ;;  %v2245_v29 = vld [vmem:[#allocation2 + $0x450] sm:$0xff]  ;;  %v2242_v17 = vld [vmem:[#allocation2 + $0x438] sm:$0xff] }
 0x7a2   :  { %2072 = vmatprep.subr.mxu1 %v2023_v30  ;;  %4187 = vmatprep.subr.mxu0 %v6499_v1  ;;  %v2247_v30 = vld [vmem:[#allocation2 + $0x460] sm:$0xff] }
 0x7a3   :  { %2073 = vmatpush1.msra.mxu1 %v2022_v34  ;;  %4188 = vmatpush3.msra.mxu0 %v2024_v46  ;;  %v2240_v34 = vld [vmem:[#allocation2 + $0x428] sm:$0xff]  ;;  %v2237_v46 = vld [vmem:[#allocation2 + $0x410] sm:$0xff] }
 0x7a4   :  { %2074 = vmatprep.subr.mxu1 %v2020_v44  ;;  %4189 = vmatprep.subr.mxu0 %v6499_v1  ;;  %v2239_v44 = vld [vmem:[#allocation2 + $0x420] sm:$0xff] }
 0x7a5   :  { %2075 = vmatpush1.msra.mxu1 %v2019_v47  ;;  %4190 = vmatpush3.msra.mxu0 %v2021_v49  ;;  %v2241_v47 = vld [vmem:[#allocation2 + $0x430] sm:$0xff]  ;;  %v2234_v49 = vld [vmem:[#allocation2 + $0x3f8] sm:$0xff] }
 0x7a6   :  { %2076 = vmatprep.subr.mxu1 %v2017_v48  ;;  %4191 = vmatprep.subr.mxu0 %v6499_v1  ;;  %v2236_v48 = vld [vmem:[#allocation2 + $0x408] sm:$0xff] }
 0x7a7   :  { %2077 = vmatpush1.msra.mxu1 %v2016_v19  ;;  %4192 = vmatpush3.msra.mxu0 %v2018_v36  ;;  %v2238_v19 = vld [vmem:[#allocation2 + $0x418] sm:$0xff]  ;;  %v2231_v36 = vld [vmem:[#allocation2 + $0x3e0] sm:$0xff] }
 0x7a8   :  { %2078 = vmatprep.subr.mxu1 %v2014_v32  ;;  %4193 = vmatprep.subr.mxu0 %v6499_v1  ;;  %v2233_v32 = vld [vmem:[#allocation2 + $0x3f0] sm:$0xff] }
 0x7a9   :  { %2079 = vmatpush1.msra.mxu1 %v2013_v37  ;;  %4194 = vmatpush3.msra.mxu0 %v2015_v41  ;;  %v2235_v37 = vld [vmem:[#allocation2 + $0x400] sm:$0xff]  ;;  %v2228_v41 = vld [vmem:[#allocation2 + $0x3c8] sm:$0xff] }
 0x7aa   :  { %2080 = vmatprep.subr.mxu1 %v2011_v40  ;;  %4195 = vmatprep.subr.mxu0 %v6499_v1  ;;  %v2230_v40 = vld [vmem:[#allocation2 + $0x3d8] sm:$0xff] }
 0x7ab   :  { %2081 = vmatpush1.msra.mxu1 %v2010_v42  ;;  %4196 = vmatpush3.msra.mxu0 %v2012_v23  ;;  %v2232_v42 = vld [vmem:[#allocation2 + $0x3e8] sm:$0xff]  ;;  %v2225_v23 = vld [vmem:[#allocation2 + $0x3b0] sm:$0xff] }
 0x7ac   :  { %2082 = vmatprep.subr.mxu1 %v2008_v43  ;;  %4197 = vmatprep.subr.mxu0 %v6499_v1  ;;  %v2227_v43 = vld [vmem:[#allocation2 + $0x3c0] sm:$0xff] }
 0x7ad   :  { %2083 = vmatpush1.msra.mxu1 %v2007_v57  ;;  %4198 = vmatpush3.msra.mxu0 %v2009_v7  ;;  %v2229_v57 = vld [vmem:[#allocation2 + $0x3d0] sm:$0xff]  ;;  %v2222_v7 = vld [vmem:[#allocation2 + $0x398] sm:$0xff] }
 0x7ae   :  { %2084 = vmatprep.subr.mxu1 %v2005_v58  ;;  %4199 = vmatprep.subr.mxu0 %v6499_v1  ;;  %v2224_v58 = vld [vmem:[#allocation2 + $0x3a8] sm:$0xff] }
 0x7af   :  { %2085 = vmatpush1.msra.mxu1 %v2004_v11  ;;  %4200 = vmatpush3.msra.mxu0 %v2006_v45  ;;  %v2226_v11 = vld [vmem:[#allocation2 + $0x3b8] sm:$0xff]  ;;  %v2219_v45 = vld [vmem:[#allocation2 + $0x380] sm:$0xff] }
 0x7b0   :  { %2086 = vmatprep.subr.mxu1 %v2002_v14  ;;  %4201 = vmatprep.subr.mxu0 %v6499_v1  ;;  %v2221_v14 = vld [vmem:[#allocation2 + $0x390] sm:$0xff] }
 0x7b1   :  { %2087 = vmatpush1.msra.mxu1 %v2001_v9  ;;  %4202 = vmatpush3.msra.mxu0 %v2003_v27  ;;  %v2223_v9 = vld [vmem:[#allocation2 + $0x3a0] sm:$0xff]  ;;  %v2216_v27 = vld [vmem:[#allocation2 + $0x368] sm:$0xff] }
 0x7b2   :  { %2088 = vmatprep.subr.mxu1 %v1999_v50  ;;  %4203 = vmatprep.subr.mxu0 %v6499_v1  ;;  %v2218_v50 = vld [vmem:[#allocation2 + $0x378] sm:$0xff] }
 0x7b3   :  { %2089 = vmatpush1.msra.mxu1 %v1998_v55  ;;  %4204 = vmatpush3.msra.mxu0 %v2000_v59  ;;  %v2220_v55 = vld [vmem:[#allocation2 + $0x388] sm:$0xff]  ;;  %v2213_v59 = vld [vmem:[#allocation2 + $0x350] sm:$0xff] }
 0x7b4   :  { %2090 = vmatprep.subr.mxu1 %v1996_v12  ;;  %4205 = vmatprep.subr.mxu0 %v6499_v1  ;;  %v2215_v12 = vld [vmem:[#allocation2 + $0x360] sm:$0xff] }
 0x7b5   :  { %2091 = vmatpush1.msra.mxu1 %v1995_v10  ;;  %4206 = vmatpush3.msra.mxu0 %v1997_v60  ;;  %v2217_v10 = vld [vmem:[#allocation2 + $0x370] sm:$0xff]  ;;  %v2212_v60 = vld [vmem:[#allocation2 + $0x348] sm:$0xff] }
 0x7b6   :  { %2252 = vmatprep.subr.mxu1 %v2249_v18  ;;  %4210 = vmatprep.subr.mxu0 %v6499_v1  ;;  %v2210_v18 = vld [vmem:[#allocation2 + $0x338] sm:$0xff] }
 0x855   :  { %v1897_v61 = vpop.f32.mrf.mxu1  ;;  %v1968_v26 = vpop.f32.mrf.mxu0 }
 0x856   :  { %v1972_v63 = vadd.f32 %v1897_v61, %v6537_v8  ;;  %v1986_v51 = vadd.f32 %v5834_v62, %v1968_v26  ;;  %v2243_v62 = vld [vmem:[#allocation2 + $0x440] sm:$0xff]  ;;  %v2214_v61 = vld [vmem:[#allocation2 + $0x358] sm:$0xff]  ;;  %v2209_v26 = vld [vmem:[#allocation2 + $0x330] sm:$0xff] }
 0x857   :  { %v4174_v20 = vpop.f32.mrf.mxu0  ;;  %v1899_v28 = vpop.f32.mrf.mxu1  ;;  %v2207_v8 = vld [vmem:[#allocation2 + $0x320] sm:$0xff] }
 0x858   :  { %v3540_v0 = vmul.f32 -1.442695, %v1972_v63  ;;  %v1979_v33 = vadd.f32 %v1899_v28, %v6538_v2  ;;  %v2211_v63 = vld [vmem:[#allocation2 + $0x340] sm:$0xff]  ;;  %v2206_v20 = vld [vmem:[#allocation2 + $0x318] sm:$0xff]  ;;  %v2208_v28 = vld [vmem:[#allocation2 + $0x328] sm:$0xff] }
 0x859   :  { %v2203_v2 = vld [vmem:[#allocation2 + $0x300] sm:$0xff] }
 0x85a   :  { %4510 = vpow2.f32 %v3540_v0  ;;  %v3541_v3 = vmul.f32 -1.442695, %v1979_v33  ;;  %v2204_v0 = vld [vmem:[#allocation2 + $0x308] sm:$0xff]  ;;  %v5884_v33 = vld [vmem:[%s6412_s2] sm:$0xff] }
 0x85c   :  { %4512 = vpow2.f32 %v3541_v3  ;;  %v5886_v3 = vld [vmem:[#allocation2 + $0x2f0] sm:$0xff] }
 0x85d   :  { %6540 = vst [vmem:[#allocation13_spill] sm:$0xff] %v5886_v3 }
 0x867   :  { %v4511_v39 = vpop.eup %4510 }
 0x868   :  { %v1976_v4 = vadd.f32 1.0, %v4511_v39  ;;  %v5889_v39 = vld [vmem:[#allocation2 + $0x2e8] sm:$0xff] }
 0x869   :  { %v4513_v5 = vpop.eup %4512 }
 0x86a   :  { %4514 = vrcp.f32 %v1976_v4  ;;  %v1983_v38 = vadd.f32 1.0, %v4513_v5  ;;  %v2205_v4 = vld [vmem:[#allocation2 + $0x310] sm:$0xff]  ;;  %v5891_v5 = vld [vmem:[#allocation2 + $0x2d8] sm:$0xff] }
 0x86c   :  { %4516 = vrcp.f32 %v1983_v38  ;;  %v5896_v38 = vld [vmem:[#allocation2 + $0x2d0] sm:$0xff] }
 0x877   :  { %v4515_v52 = vpop.eup %4514 }
 0x878   :  { %v1987_v53 = vmul.f32 %v4515_v52, %v1986_v51  ;;  %v5899_v51 = vld [vmem:[#allocation2 + $0x2c0] sm:$0xff]  ;;  %v5902_v52 = vld [vmem:[#allocation2 + $0x2b8] sm:$0xff] }
 0x879   :  { %v4517_v31 = vpop.eup %4516 }
 0x87a   :  { %v1988_v56 = vadd.f32 %v6539_v54, %v1987_v53  ;;  %v1990_v6 = vsub.f32 1.0, %v4517_v31  ;;  %v1992_v16 = vmul.f32 %v4517_v31, %v5839_v35  ;;  %v2244_v35 = vld [vmem:[#allocation2 + $0x448] sm:$0xff]  ;;  %v5910_v54 = vld [vmem:[#allocation2 + $0x2f8] sm:$0xff]  ;;  %v5917_v31 = vld [vmem:[#allocation2 + $0x290] sm:$0xff] }
 0x87b   :  { %v5907_v53 = vld [vmem:[#allocation2 + $0x2a8] sm:$0xff] }
 0x87c   :  { %4518 = vtanh.f32 %v1988_v56  ;;  %v5913_v56 = vld [vmem:[#allocation2 + $0x2a0] sm:$0xff] }
 0x889   :  { %v4519_v13 = vpop.eup %4518 }
 0x88a   :  { %v1991_v15 = vmul.f32 %v4519_v13, %v1990_v6  ;;  %v5920_v6 = vld [vmem:[#allocation2 + $0x2e0] sm:$0xff]  ;;  %v5923_v13 = vld [vmem:[#allocation2 + $0x288] sm:$0xff] }
 0x88c   :  { %v1993_v21 = vadd.f32 %v1992_v16, %v1991_v15  ;;  %v5927_v15 = vld [vmem:[#allocation2 + $0x278] sm:$0xff]  ;;  %v5930_v16 = vld [vmem:[#allocation2 + $0x2c8] sm:$0xff] }
 0x88e   :  { %2125 = vmatmul.mubr.f32.vlgmr.msra.gmra.mxu1 %v1993_v21  ;;  %4208 = vmatmul.mubr.f32.vlgmr.msra.gmra.mxu0 %v1993_v21  ;;  %v5933_v21 = vld [vmem:[#allocation2 + $0x270] sm:$0xff] }
 0x88f   :  { %2253 = vmatpush1.msra.mxu1 %v2248_v22  ;;  %2316 = vmatprep.mubr.f32.mxu1 %v6499_v1  ;;  %v5937_v22 = vld [vmem:[#allocation2 + $0x260] sm:$0xff] }
 0x890   :  { %2254 = vmatprep.subr.mxu1 %v2246_v24  ;;  %4211 = vmatpush3.msra.mxu0 %v2250_v25  ;;  %v5940_v24 = vld [vmem:[#allocation2 + $0x2b0] sm:$0xff]  ;;  %v5943_v25 = vld [vmem:[#allocation2 + $0x258] sm:$0xff] }
 0x891   :  { %2255 = vmatpush1.msra.mxu1 %v2245_v29  ;;  %4212 = vmatprep.subr.mxu0 %v6499_v1  ;;  %v5947_v29 = vld [vmem:[#allocation2 + $0x248] sm:$0xff] }
 0x892   :  { %2256 = vmatprep.subr.mxu1 %v2243_v62  ;;  %4213 = vmatpush3.msra.mxu0 %v2247_v30  ;;  %v5950_v62 = vld [vmem:[#allocation2 + $0x298] sm:$0xff]  ;;  %v5953_v30 = vld [vmem:[#allocation2 + $0x240] sm:$0xff] }
 0x893   :  { %2257 = vmatpush1.msra.mxu1 %v2242_v17  ;;  %4214 = vmatprep.subr.mxu0 %v6499_v1  ;;  %v5957_v17 = vld [vmem:[#allocation2 + $0x230] sm:$0xff] }
 0x894   :  { %2258 = vmatprep.subr.mxu1 %v2240_v34  ;;  %4215 = vmatpush3.msra.mxu0 %v2244_v35  ;;  %v5960_v34 = vld [vmem:[#allocation2 + $0x280] sm:$0xff]  ;;  %v5963_v35 = vld [vmem:[#allocation2 + $0x228] sm:$0xff] }
 0x895   :  { %2259 = vmatpush1.msra.mxu1 %v2239_v44  ;;  %4216 = vmatprep.subr.mxu0 %v6499_v1  ;;  %v5967_v44 = vld [vmem:[#allocation2 + $0x218] sm:$0xff] }
 0x896   :  { %2260 = vmatprep.subr.mxu1 %v2237_v46  ;;  %4217 = vmatpush3.msra.mxu0 %v2241_v47  ;;  %v5970_v46 = vld [vmem:[#allocation2 + $0x268] sm:$0xff]  ;;  %v5973_v47 = vld [vmem:[#allocation2 + $0x210] sm:$0xff] }
 0x897   :  { %2261 = vmatpush1.msra.mxu1 %v2236_v48  ;;  %4218 = vmatprep.subr.mxu0 %v6499_v1  ;;  %v5977_v48 = vld [vmem:[#allocation2 + $0x200] sm:$0xff] }
 0x898   :  { %2262 = vmatprep.subr.mxu1 %v2234_v49  ;;  %4219 = vmatpush3.msra.mxu0 %v2238_v19  ;;  %v5980_v49 = vld [vmem:[#allocation2 + $0x250] sm:$0xff]  ;;  %v5983_v19 = vld [vmem:[#allocation2 + $0x1f8] sm:$0xff] }
 0x899   :  { %2263 = vmatpush1.msra.mxu1 %v2233_v32  ;;  %4220 = vmatprep.subr.mxu0 %v6499_v1  ;;  %v5987_v32 = vld [vmem:[#allocation2 + $0x1e8] sm:$0xff] }
 0x89a   :  { %2264 = vmatprep.subr.mxu1 %v2231_v36  ;;  %4221 = vmatpush3.msra.mxu0 %v2235_v37  ;;  %v5990_v36 = vld [vmem:[#allocation2 + $0x238] sm:$0xff]  ;;  %v5993_v37 = vld [vmem:[#allocation2 + $0x1e0] sm:$0xff] }
 0x89b   :  { %2265 = vmatpush1.msra.mxu1 %v2230_v40  ;;  %4222 = vmatprep.subr.mxu0 %v6499_v1  ;;  %v5997_v40 = vld [vmem:[#allocation2 + $0x1d0] sm:$0xff] }
 0x89c   :  { %2266 = vmatprep.subr.mxu1 %v2228_v41  ;;  %4223 = vmatpush3.msra.mxu0 %v2232_v42  ;;  %v6000_v41 = vld [vmem:[#allocation2 + $0x220] sm:$0xff]  ;;  %v6003_v42 = vld [vmem:[#allocation2 + $0x1c8] sm:$0xff] }
 0x89d   :  { %2267 = vmatpush1.msra.mxu1 %v2227_v43  ;;  %4224 = vmatprep.subr.mxu0 %v6499_v1  ;;  %v6007_v43 = vld [vmem:[#allocation2 + $0x1b8] sm:$0xff] }
 0x89e   :  { %2268 = vmatprep.subr.mxu1 %v2225_v23  ;;  %4225 = vmatpush3.msra.mxu0 %v2229_v57  ;;  %v6010_v23 = vld [vmem:[#allocation2 + $0x208] sm:$0xff]  ;;  %v6013_v57 = vld [vmem:[#allocation2 + $0x1b0] sm:$0xff] }
 0x89f   :  { %2269 = vmatpush1.msra.mxu1 %v2224_v58  ;;  %4226 = vmatprep.subr.mxu0 %v6499_v1  ;;  %6541 = vst [vmem:[#allocation15_spill] sm:$0xff] %v6013_v57  ;;  %v6017_v58 = vld [vmem:[#allocation2 + $0x1a0] sm:$0xff] }
 0x8a0   :  { %2270 = vmatprep.subr.mxu1 %v2222_v7  ;;  %4227 = vmatpush3.msra.mxu0 %v2226_v11  ;;  %6542 = vst [vmem:[#allocation16_spill] sm:$0xff] %v6017_v58  ;;  %v6020_v7 = vld [vmem:[#allocation2 + $0x1f0] sm:$0xff]  ;;  %v6023_v11 = vld [vmem:[#allocation2 + $0x198] sm:$0xff] }
 0x8a1   :  { %2271 = vmatpush1.msra.mxu1 %v2221_v14  ;;  %4228 = vmatprep.subr.mxu0 %v6499_v1  ;;  %6543 = vst [vmem:[#allocation8_spill] sm:$0xff] %v6023_v11  ;;  %v6027_v14 = vld [vmem:[#allocation2 + $0x188] sm:$0xff] }
 0x8a2   :  { %2272 = vmatprep.subr.mxu1 %v2219_v45  ;;  %4229 = vmatpush3.msra.mxu0 %v2223_v9  ;;  %6544 = vst [vmem:[#allocation6_spill] sm:$0xff] %v6027_v14  ;;  %v6030_v45 = vld [vmem:[#allocation2 + $0x1d8] sm:$0xff]  ;;  %v6033_v9 = vld [vmem:[#allocation2 + $0x180] sm:$0xff] }
 0x8a3   :  { %2273 = vmatpush1.msra.mxu1 %v2218_v50  ;;  %4230 = vmatprep.subr.mxu0 %v6499_v1  ;;  %6545 = vst [vmem:[#allocation7_spill] sm:$0xff] %v6033_v9  ;;  %v6038_v50 = vld [vmem:[#allocation2 + $0x1c0] sm:$0xff] }
 0x8a4   :  { %2274 = vmatprep.subr.mxu1 %v2216_v27  ;;  %4231 = vmatpush3.msra.mxu0 %v2220_v55  ;;  %6546 = vst [vmem:[#allocation9_spill] sm:$0xff] %v6038_v50  ;;  %v6044_v27 = vld [vmem:[#allocation2 + $0x1a8] sm:$0xff]  ;;  %v6049_v55 = vld [vmem:[#allocation2 + $0x190] sm:$0xff] }
 0x8a5   :  { %2275 = vmatpush1.msra.mxu1 %v2215_v12  ;;  %4232 = vmatprep.subr.mxu0 %v6499_v1  ;;  %6547 = vst [vmem:[#allocation17_spill] sm:$0xff] %v6044_v27  ;;  %6548 = vst [vmem:[#allocation19_spill] sm:$0xff] %v6049_v55 }
 0x8a6   :  { %2276 = vmatprep.subr.mxu1 %v2213_v59  ;;  %4233 = vmatpush3.msra.mxu0 %v2217_v10  ;;  %v6549_v10 = vlaneseq }
 0x8a7   :  { %2277 = vmatpush1.msra.mxu1 %v2212_v60  ;;  %4234 = vmatprep.subr.mxu0 %v6499_v1 }
 0x8a8   :  { %2278 = vmatprep.subr.mxu1 %v2210_v18  ;;  %4235 = vmatpush3.msra.mxu0 %v2214_v61  ;;  %v6127_v60 = vshrl.u32 %v6549_v10, 7  ;;  %v2043_v61 = vld [vmem:[%s6415_s5] ss:$8 sm:$0x7] }
 0x8a9   :  { %2279 = vmatpush1.msra.mxu1 %v2209_v26  ;;  %4236 = vmatprep.subr.mxu0 %v6499_v1 }
 0x8aa   :  { %2280 = vmatprep.subr.mxu1 %v2207_v8  ;;  %4237 = vmatpush3.msra.mxu0 %v2211_v63  ;;  %6550 = vst [vmem:[#allocation14_spill] sm:$0xff] %v6127_v60  ;;  %v6451_v18 = vsub.s32 0, %v6127_v60  ;;  %v2051_v63 = vsub.s32 1, %v6127_v60 }
 0x8ab   :  { %2281 = vmatpush1.msra.mxu1 %v2206_v20  ;;  %4238 = vmatprep.subr.mxu0 %v6499_v1 }
 0x8ac   :  { %2282 = vmatprep.subr.mxu1 %v2204_v0  ;;  %4239 = vmatpush3.msra.mxu0 %v2208_v28  ;;  %v2048_v8 = vrot.slane %v2043_v61, %v6451_v18  ;;  %v2055_v18 = vsub.s32 2, %v6127_v60 }
 0x8ad   :  { %2283 = vmatpush1.msra.mxu1 %v2203_v2  ;;  %4240 = vmatprep.subr.mxu0 %v6499_v1  ;;  %v2052_v2 = vrot.slane %v2043_v61, %v2051_v63 }
 0x8ae   :  { %2317 = vmatmul.mubr.f32.vlgmr.msra.gmra.mxu1 %v5884_v33  ;;  %2466 = vmatprep.subr.mxu1 %v5886_v3 }
 0x8af   :  { %2467 = vmatpush1.msra.mxu1 %v5889_v39  ;;  %4241 = vmatpush3.msra.mxu0 %v2205_v4 }
 0x8b0   :  { %2468 = vmatprep.subr.mxu1 %v5891_v5  ;;  %4242 = vmatprep.mubr.msk.f32.mxu0 %vm4656_vm14, %v6499_v1 }
 0x8b1   :  { %2469 = vmatpush1.msra.mxu1 %v5896_v38  ;;  %4245 = vmatprep.subr.mxu0 %v6499_v1 }
 0x8b2   :  { %2470 = vmatprep.subr.mxu1 %v5899_v51  ;;  %4243 = vmatmul.mubr.f32.vlgmr.msra.gmra.mxu0 %v5884_v33 }
 0x8b3   :  { %2471 = vmatpush1.msra.mxu1 %v5902_v52  ;;  %2530 = vmatprep.mubr.f32.mxu1 %v6499_v1 }
 0x8b4   :  { %2472 = vmatprep.subr.mxu1 %v5907_v53  ;;  %4246 = vmatpush3.msra.mxu0 %v5910_v54 }
 0x8b5   :  { %2473 = vmatpush1.msra.mxu1 %v5913_v56  ;;  %4247 = vmatprep.subr.mxu0 %v6499_v1 }
 0x8b6   :  { %2474 = vmatprep.subr.mxu1 %v5917_v31  ;;  %4248 = vmatpush3.msra.mxu0 %v5920_v6 }
 0x8b7   :  { %2475 = vmatpush1.msra.mxu1 %v5923_v13  ;;  %4249 = vmatprep.subr.mxu0 %v6499_v1 }
 0x8b8   :  { %2476 = vmatprep.subr.mxu1 %v5927_v15  ;;  %4250 = vmatpush3.msra.mxu0 %v5930_v16 }
 0x8b9   :  { %2477 = vmatpush1.msra.mxu1 %v5933_v21  ;;  %4251 = vmatprep.subr.mxu0 %v6499_v1 }
 0x8ba   :  { %2478 = vmatprep.subr.mxu1 %v5937_v22  ;;  %4252 = vmatpush3.msra.mxu0 %v5940_v24 }
 0x8bb   :  { %2479 = vmatpush1.msra.mxu1 %v5943_v25  ;;  %4253 = vmatprep.subr.mxu0 %v6499_v1 }
 0x8bc   :  { %2480 = vmatprep.subr.mxu1 %v5947_v29  ;;  %4254 = vmatpush3.msra.mxu0 %v5950_v62 }
 0x8bd   :  { %2481 = vmatpush1.msra.mxu1 %v5953_v30  ;;  %4255 = vmatprep.subr.mxu0 %v6499_v1 }
 0x8be   :  { %2482 = vmatprep.subr.mxu1 %v5957_v17  ;;  %4256 = vmatpush3.msra.mxu0 %v5960_v34 }
 0x8bf   :  { %2483 = vmatpush1.msra.mxu1 %v5963_v35  ;;  %4257 = vmatprep.subr.mxu0 %v6499_v1 }
 0x8c0   :  { %2484 = vmatprep.subr.mxu1 %v5967_v44  ;;  %4258 = vmatpush3.msra.mxu0 %v5970_v46 }
 0x8c1   :  { %2485 = vmatpush1.msra.mxu1 %v5973_v47  ;;  %4259 = vmatprep.subr.mxu0 %v6499_v1 }
 0x8c2   :  { %2486 = vmatprep.subr.mxu1 %v5977_v48  ;;  %4260 = vmatpush3.msra.mxu0 %v5980_v49 }
 0x8c3   :  { %2487 = vmatpush1.msra.mxu1 %v5983_v19  ;;  %4261 = vmatprep.subr.mxu0 %v6499_v1 }
 0x8c4   :  { %2488 = vmatprep.subr.mxu1 %v5987_v32  ;;  %4262 = vmatpush3.msra.mxu0 %v5990_v36 }
 0x8c5   :  { %2489 = vmatpush1.msra.mxu1 %v5993_v37  ;;  %4263 = vmatprep.subr.mxu0 %v6499_v1 }
 0x8c6   :  { %2490 = vmatprep.subr.mxu1 %v5997_v40  ;;  %4264 = vmatpush3.msra.mxu0 %v6000_v41 }
 0x8c7   :  { %2491 = vmatpush1.msra.mxu1 %v6003_v42  ;;  %4265 = vmatprep.subr.mxu0 %v6499_v1 }
 0x8c8   :  { %2492 = vmatprep.subr.mxu1 %v6007_v43  ;;  %4266 = vmatpush3.msra.mxu0 %v6010_v23 }
 0x8c9   :  { %2493 = vmatpush1.msra.mxu1 %v6013_v57  ;;  %4267 = vmatprep.subr.mxu0 %v6499_v1 }
 0x8ca   :  { %2494 = vmatprep.subr.mxu1 %v6017_v58  ;;  %4268 = vmatpush3.msra.mxu0 %v6020_v7 }
 0x8cb   :  { %2495 = vmatpush1.msra.mxu1 %v6023_v11  ;;  %4269 = vmatprep.subr.mxu0 %v6499_v1 }
 0x8cc   :  { %2496 = vmatprep.subr.mxu1 %v6027_v14  ;;  %4270 = vmatpush3.msra.mxu0 %v6030_v45 }
 0x8cd   :  { %2497 = vmatpush1.msra.mxu1 %v6033_v9  ;;  %4271 = vmatprep.subr.mxu0 %v6499_v1 }
 0x8ce   :  { %2531 = vmatmul.mubr.f32.vlgmr.msra.gmra.mxu1 %v6499_v1  ;;  %4272 = vmatpush3.msra.mxu0 %v6038_v50 }
 0x8cf   :  { %4273 = vmatprep.subr.mxu0 %v6499_v1  ;;  %4277 = vmatprep.mubr.msk.f32.mxu0 %vm4656_vm14, %v6499_v1 }
 0x8d0   :  { %4274 = vmatpush3.msra.mxu0 %v6044_v27  ;;  %2629 = vmatprep.subr.mxu1 %v5886_v3 }
 0x8d1   :  { %4275 = vmatprep.subr.mxu0 %v6499_v1  ;;  %2630 = vmatpush1.msra.mxu1 %v5889_v39 }
 0x8d2   :  { %4276 = vmatpush3.msra.mxu0 %v6049_v55  ;;  %2631 = vmatprep.subr.mxu1 %v5891_v5 }
 0x8d3   :  { %4278 = vmatmul.mubr.f32.vlgmr.msra.gmra.mxu0 %v6499_v1  ;;  %4280 = vmatprep.subr.mxu0 %v6499_v1 }
 0x8d4   :  { %4281 = vmatpush3.msra.mxu0 %v5910_v54  ;;  %2632 = vmatpush1.msra.mxu1 %v5896_v38 }
 0x8d5   :  { %4282 = vmatprep.subr.mxu0 %v6499_v1  ;;  %2633 = vmatprep.subr.mxu1 %v5899_v51 }
 0x8d6   :  { %4283 = vmatpush3.msra.mxu0 %v5920_v6  ;;  %2634 = vmatpush1.msra.mxu1 %v5902_v52 }
 0x8d7   :  { %4284 = vmatprep.subr.mxu0 %v6499_v1  ;;  %2635 = vmatprep.subr.mxu1 %v5907_v53 }
 0x8d8   :  { %4285 = vmatpush3.msra.mxu0 %v5930_v16  ;;  %2636 = vmatpush1.msra.mxu1 %v5913_v56 }
 0x8d9   :  { %4286 = vmatprep.subr.mxu0 %v6499_v1  ;;  %2637 = vmatprep.subr.mxu1 %v5917_v31 }
 0x8da   :  { %4287 = vmatpush3.msra.mxu0 %v5940_v24  ;;  %2638 = vmatpush1.msra.mxu1 %v5923_v13 }
 0x8db   :  { %4288 = vmatprep.subr.mxu0 %v6499_v1  ;;  %2639 = vmatprep.subr.mxu1 %v5927_v15 }
 0x8dc   :  { %4289 = vmatpush3.msra.mxu0 %v5950_v62  ;;  %2640 = vmatpush1.msra.mxu1 %v5933_v21 }
 0x8dd   :  { %4290 = vmatprep.subr.mxu0 %v6499_v1  ;;  %2641 = vmatprep.subr.mxu1 %v5937_v22 }
 0x8de   :  { %4291 = vmatpush3.msra.mxu0 %v5960_v34  ;;  %2642 = vmatpush1.msra.mxu1 %v5943_v25 }
 0x8df   :  { %4292 = vmatprep.subr.mxu0 %v6499_v1  ;;  %2643 = vmatprep.subr.mxu1 %v5947_v29 }
 0x8e0   :  { %4293 = vmatpush3.msra.mxu0 %v5970_v46  ;;  %2644 = vmatpush1.msra.mxu1 %v5953_v30 }
 0x8e1   :  { %4294 = vmatprep.subr.mxu0 %v6499_v1  ;;  %2645 = vmatprep.subr.mxu1 %v5957_v17 }
 0x8e2   :  { %4295 = vmatpush3.msra.mxu0 %v5980_v49  ;;  %2646 = vmatpush1.msra.mxu1 %v5963_v35 }
 0x8e3   :  { %4296 = vmatprep.subr.mxu0 %v6499_v1  ;;  %2647 = vmatprep.subr.mxu1 %v5967_v44 }
 0x8e4   :  { %4297 = vmatpush3.msra.mxu0 %v5990_v36  ;;  %2648 = vmatpush1.msra.mxu1 %v5973_v47 }
 0x8e5   :  { %4298 = vmatprep.subr.mxu0 %v6499_v1  ;;  %2649 = vmatprep.subr.mxu1 %v5977_v48 }
 0x8e6   :  { %4299 = vmatpush3.msra.mxu0 %v6000_v41  ;;  %2650 = vmatpush1.msra.mxu1 %v5983_v19 }
 0x8e7   :  { %4300 = vmatprep.subr.mxu0 %v6499_v1  ;;  %2651 = vmatprep.subr.mxu1 %v5987_v32 }
 0x8e8   :  { %4301 = vmatpush3.msra.mxu0 %v6010_v23  ;;  %2652 = vmatpush1.msra.mxu1 %v5993_v37 }
 0x8e9   :  { %4302 = vmatprep.subr.mxu0 %v6499_v1  ;;  %2653 = vmatprep.subr.mxu1 %v5997_v40 }
 0x8ea   :  { %4303 = vmatpush3.msra.mxu0 %v6020_v7  ;;  %2654 = vmatpush1.msra.mxu1 %v6003_v42 }
 0x8eb   :  { %4304 = vmatprep.subr.mxu0 %v6499_v1  ;;  %2655 = vmatprep.subr.mxu1 %v6007_v43 }
 0x8ec   :  { %4305 = vmatpush3.msra.mxu0 %v6030_v45  ;;  %2656 = vmatpush1.msra.mxu1 %v6013_v57 }
 0x8ed   :  { %4306 = vmatprep.subr.mxu0 %v6499_v1  ;;  %2657 = vmatprep.subr.mxu1 %v6017_v58 }
 0x8ee   :  { %4307 = vmatpush3.msra.mxu0 %v6038_v50  ;;  %2658 = vmatpush1.msra.mxu1 %v6023_v11 }
 0x8ef   :  { %4308 = vmatprep.subr.mxu0 %v6499_v1  ;;  %2659 = vmatprep.subr.mxu1 %v6027_v14 }
 0x8f0   :  { %4309 = vmatpush3.msra.mxu0 %v6044_v27  ;;  %2660 = vmatpush1.msra.mxu1 %v6033_v9 }
 0x8f1   :  { %4310 = vmatprep.subr.mxu0 %v6499_v1  ;;  %2693 = vmatprep.mubr.f32.mxu1 %v6499_v1 }
 0x8f2   :  { %4311 = vmatpush3.msra.mxu0 %v6049_v55  ;;  %4312 = vmatprep.mubr.msk.f32.mxu0 %vm4656_vm14, %v6499_v1 }
 0x8f3   :  { %2792 = vmatprep.subr.mxu1 %v5886_v3  ;;  %4315 = vmatprep.subr.mxu0 %v6499_v1 }
 0x94e   :  { %v2197_v12 = vpop.f32.mrf.mxu0  ;;  %v2126_v26 = vpop.f32.mrf.mxu1 }
 0x94f   :  { %v2127_v0 = vadd.f32 %v2126_v26, %v2048_v8  ;;  %v2251_v26 = vld [vmem:[%s6415_s5 + $0x3] ss:$0 sm:$0xff]  ;;  %v2056_v8 = vrot.slane %v2043_v61, %v2055_v18 }
 0x950   :  { %v4209_v59 = vpop.f32.mrf.mxu0  ;;  %v2128_v20 = vpop.f32.mrf.mxu1 }
 0x951   :  { %v2129_v55 = vadd.f32 %v2128_v20, %v2052_v2  ;;  %v6551_v20 = vld [vmem:[#allocation26_spill] sm:$0xff] }
 0x96e   :  { %v2318_v28 = vpop.f32.mrf.mxu1 }
 0x96f   :  { %v2393_v4 = vadd.f32 %v2318_v28, %v2127_v0 }
 0x970   :  { %v2320_v10 = vpop.f32.mrf.mxu1 }
 0x971   :  { %v3542_v59 = vmul.f32 -1.442695, %v2393_v4  ;;  %v2400_v14 = vadd.f32 %v2320_v10, %v2129_v55  ;;  %v2198_v55 = vadd.f32 %v2197_v12, %v2056_v8 }
 0x972   :  { %v2389_v3 = vpop.f32.mrf.mxu0 }
 0x973   :  { %4520 = vpow2.f32 %v3542_v59  ;;  %v3543_v27 = vmul.f32 -1.442695, %v2400_v14  ;;  %v2407_v0 = vadd.f32 %v2389_v3, %v2251_v26  ;;  %v6552_v59 = vld [vmem:[#allocation28_spill] sm:$0xff] }
 0x974   :  { %v4244_v9 = vpop.f32.mrf.mxu0 }
 0x975   :  { %4522 = vpow2.f32 %v3543_v27 }
 0x980   :  { %v4521_v11 = vpop.eup %4520 }
 0x981   :  { %v2397_v58 = vadd.f32 1.0, %v4521_v11 }
 0x982   :  { %v4523_v50 = vpop.eup %4522 }
 0x983   :  { %4524 = vrcp.f32 %v2397_v58  ;;  %v2404_v63 = vadd.f32 1.0, %v4523_v50 }
 0x985   :  { %4526 = vrcp.f32 %v2404_v63 }
 0x98e   :  { %v2532_v28 = vpop.f32.mrf.mxu1 }
 0x98f   :  { %v2607_v2 = vadd.f32 %v2532_v28, %v6551_v20 }
 0x990   :  { %v4525_v9 = vpop.eup %4524  ;;  %v2534_v11 = vpop.f32.mrf.mxu1 }
 0x991   :  { %v2408_v14 = vmul.f32 %v4525_v9, %v2407_v0  ;;  %v3544_v27 = vmul.f32 -1.442695, %v2607_v2  ;;  %v2614_v10 = vadd.f32 %v2534_v11, %v6552_v59 }
 0x992   :  { %v4527_v50 = vpop.eup %4526 }
 0x993   :  { %v2409_v58 = vadd.f32 %v2408_v14, %v2198_v55  ;;  %4528 = vpow2.f32 %v3544_v27  ;;  %v2603_v4 = vpop.f32.mrf.mxu0  ;;  %v3545_v57 = vmul.f32 -1.442695, %v2614_v10  ;;  %v2411_v61 = vsub.f32 1.0, %v4527_v50  ;;  %v6556_v10 = vld [vmem:[#allocation9_spill] sm:$0xff] }
 0x994   :  { %v2413_v8 = vmul.f32 %v4527_v50, %v5884_v33  ;;  %v6554_v33 = vld [vmem:[#allocation36_spill] sm:$0xff] }
 0x995   :  { %4530 = vtanh.f32 %v2409_v58  ;;  %v4279_v60 = vpop.f32.mrf.mxu0  ;;  %v6557_v50 = vld [vmem:[#allocation16_spill] sm:$0xff] }
 0x996   :  { %4532 = vpow2.f32 %v3545_v57  ;;  %v6152_v57 = vld [vmem:[%s6415_s5 + $0x2] ss:$0 sm:$0xff] }
 0x997   :  { %v2621_v28 = vadd.f32 %v2603_v4, %v6152_v57  ;;  %v6555_v4 = vld [vmem:[#allocation15_spill] sm:$0xff] }
 0x9a0   :  { %v4529_v3 = vpop.eup %4528 }
 0x9a1   :  { %v2611_v18 = vadd.f32 1.0, %v4529_v3  ;;  %v6558_v3 = vld [vmem:[#allocation8_spill] sm:$0xff] }
 0x9a2   :  { %v4531_v26 = vpop.eup %4530 }
 0x9a3   :  { %4534 = vrcp.f32 %v2611_v18  ;;  %v2412_v12 = vmul.f32 %v4531_v26, %v2411_v61  ;;  %v4533_v0 = vpop.eup %4532  ;;  %v6559_v18 = vld [vmem:[#allocation17_spill] sm:$0xff]  ;;  %v6560_v61 = vld [vmem:[#allocation6_spill] sm:$0xff]  ;;  %v6561_v26 = vld [vmem:[#allocation7_spill] sm:$0xff] }
 0x9a4   :  { %v2618_v60 = vadd.f32 1.0, %v4533_v0 }
 0x9a5   :  { %v6143_v63 = vadd.f32 %v2413_v8, %v2412_v12  ;;  %v6562_v12 = vld [vmem:[#allocation19_spill] sm:$0xff]  ;;  %v6563_v8 = vld [vmem:[#allocation13_spill] sm:$0xff] }
 0x9a6   :  { %4536 = vrcp.f32 %v2618_v60 }
 0x9a7   :  { %6553 = vst [vmem:[#allocation21_spill] sm:$0xff] %v6143_v63  ;;  %2415 = vst [vmem:[%s6419_s9] sm:$0xff] %v6143_v63 }
 0x9b0   :  { %v4535_v20 = vpop.eup %4534 }
 0x9b1   :  { %v2622_v2 = vmul.f32 %v4535_v20, %v2621_v28  ;;  %v6564_v28 = vld [vmem:[#allocation30_spill] sm:$0xff] }
 0x9b3   :  { %v2623_v9 = vadd.f32 %v2622_v2, %v6554_v33  ;;  %v4537_v55 = vpop.eup %4536 }
 0x9b4   :  { %v2625_v14 = vsub.f32 1.0, %v4537_v55  ;;  %v2627_v58 = vmul.f32 0.0, %v4537_v55  ;;  %v6565_v55 = vld [vmem:[#allocation32_spill] sm:$0xff] }
 0x9b5   :  { %4538 = vtanh.f32 %v2623_v9 }
 0x9c2   :  { %v4539_v27 = vpop.eup %4538 }
 0x9c3   :  { %v2626_v11 = vmul.f32 %v4539_v27, %v2625_v14 }
 0x9c5   :  { %v6156_v59 = vadd.f32 %v2627_v58, %v2626_v11 }
 0x9c7   :  { %2694 = vmatmul.mubr.f32.vlgmr.msra.gmra.mxu1 %v6156_v59  ;;  %4313 = vmatmul.mubr.f32.vlgmr.msra.gmra.mxu0 %v6156_v59 }
 0x9c8   :  { %2793 = vmatpush1.msra.mxu1 %v5889_v39  ;;  %4316 = vmatpush3.msra.mxu0 %v5910_v54 }
 0x9c9   :  { %2794 = vmatprep.subr.mxu1 %v5891_v5  ;;  %4317 = vmatprep.subr.mxu0 %v6499_v1 }
 0x9ca   :  { %2795 = vmatpush1.msra.mxu1 %v5896_v38  ;;  %4318 = vmatpush3.msra.mxu0 %v5920_v6 }
 0x9cb   :  { %2796 = vmatprep.subr.mxu1 %v5899_v51  ;;  %4319 = vmatprep.subr.mxu0 %v6499_v1 }
 0x9cc   :  { %2797 = vmatpush1.msra.mxu1 %v5902_v52  ;;  %4320 = vmatpush3.msra.mxu0 %v5930_v16 }
 0x9cd   :  { %2798 = vmatprep.subr.mxu1 %v5907_v53  ;;  %4321 = vmatprep.subr.mxu0 %v6499_v1 }
 0x9ce   :  { %2799 = vmatpush1.msra.mxu1 %v5913_v56  ;;  %4322 = vmatpush3.msra.mxu0 %v5940_v24 }
 0x9cf   :  { %2800 = vmatprep.subr.mxu1 %v5917_v31  ;;  %4323 = vmatprep.subr.mxu0 %v6499_v1 }
 0x9d0   :  { %2801 = vmatpush1.msra.mxu1 %v5923_v13  ;;  %4324 = vmatpush3.msra.mxu0 %v5950_v62 }
 0x9d1   :  { %2802 = vmatprep.subr.mxu1 %v5927_v15  ;;  %4325 = vmatprep.subr.mxu0 %v6499_v1 }
 0x9d2   :  { %2803 = vmatpush1.msra.mxu1 %v5933_v21  ;;  %4326 = vmatpush3.msra.mxu0 %v5960_v34 }
 0x9d3   :  { %2804 = vmatprep.subr.mxu1 %v5937_v22  ;;  %4327 = vmatprep.subr.mxu0 %v6499_v1 }
 0x9d4   :  { %2805 = vmatpush1.msra.mxu1 %v5943_v25  ;;  %4328 = vmatpush3.msra.mxu0 %v5970_v46 }
 0x9d5   :  { %2806 = vmatprep.subr.mxu1 %v5947_v29  ;;  %4329 = vmatprep.subr.mxu0 %v6499_v1 }
 0x9d6   :  { %2807 = vmatpush1.msra.mxu1 %v5953_v30  ;;  %4330 = vmatpush3.msra.mxu0 %v5980_v49 }
 0x9d7   :  { %2808 = vmatprep.subr.mxu1 %v5957_v17  ;;  %4331 = vmatprep.subr.mxu0 %v6499_v1 }
 0x9d8   :  { %2809 = vmatpush1.msra.mxu1 %v5963_v35  ;;  %4332 = vmatpush3.msra.mxu0 %v5990_v36 }
 0x9d9   :  { %2810 = vmatprep.subr.mxu1 %v5967_v44  ;;  %4333 = vmatprep.subr.mxu0 %v6499_v1 }
 0x9da   :  { %2811 = vmatpush1.msra.mxu1 %v5973_v47  ;;  %4334 = vmatpush3.msra.mxu0 %v6000_v41 }
 0x9db   :  { %2812 = vmatprep.subr.mxu1 %v5977_v48  ;;  %4335 = vmatprep.subr.mxu0 %v6499_v1 }
 0x9dc   :  { %2813 = vmatpush1.msra.mxu1 %v5983_v19  ;;  %4336 = vmatpush3.msra.mxu0 %v6010_v23 }
 0x9dd   :  { %2814 = vmatprep.subr.mxu1 %v5987_v32  ;;  %4337 = vmatprep.subr.mxu0 %v6499_v1 }
 0x9de   :  { %2815 = vmatpush1.msra.mxu1 %v5993_v37  ;;  %4338 = vmatpush3.msra.mxu0 %v6020_v7 }
 0x9df   :  { %2816 = vmatprep.subr.mxu1 %v5997_v40  ;;  %4339 = vmatprep.subr.mxu0 %v6499_v1 }
 0x9e0   :  { %2817 = vmatpush1.msra.mxu1 %v6003_v42  ;;  %4340 = vmatpush3.msra.mxu0 %v6030_v45 }
 0x9e1   :  { %2818 = vmatprep.subr.mxu1 %v6007_v43  ;;  %4341 = vmatprep.subr.mxu0 %v6499_v1 }
 0x9e2   :  { %2819 = vmatpush1.msra.mxu1 %v6555_v4  ;;  %4342 = vmatpush3.msra.mxu0 %v6556_v10 }
 0x9e3   :  { %2820 = vmatprep.subr.mxu1 %v6557_v50  ;;  %4343 = vmatprep.subr.mxu0 %v6499_v1 }
 0x9e4   :  { %2821 = vmatpush1.msra.mxu1 %v6558_v3  ;;  %4344 = vmatpush3.msra.mxu0 %v6559_v18  ;;  %v6566_v18 = vld [vmem:[#allocation38_spill] sm:$0xff] }
 0x9e5   :  { %2822 = vmatprep.subr.mxu1 %v6560_v61  ;;  %4345 = vmatprep.subr.mxu0 %v6499_v1 }
 0x9e6   :  { %2823 = vmatpush1.msra.mxu1 %v6561_v26  ;;  %2856 = vmatprep.mubr.f32.mxu1 %v6499_v1 }
 0x9e7   :  { %4346 = vmatpush3.msra.mxu0 %v6562_v12  ;;  %4347 = vmatprep.mubr.msk.f32.mxu0 %vm4656_vm14, %v6499_v1 }
 0x9e8   :  { %2955 = vmatprep.subr.mxu1 %v6563_v8  ;;  %4350 = vmatprep.subr.mxu0 %v6499_v1 }
 0xa87   :  { %v2695_v0 = vpop.f32.mrf.mxu1  ;;  %v2766_v60 = vpop.f32.mrf.mxu0 }
 0xa88   :  { %v2770_v20 = vadd.f32 %v2695_v0, %v6564_v28  ;;  %v2784_v8 = vadd.f32 %v2766_v60, %v6152_v57  ;;  %v6572_v60 = vld [vmem:[#allocation35_spill] sm:$0xff] }
 0xa89   :  { %v4314_v2 = vpop.f32.mrf.mxu0  ;;  %v2697_v9 = vpop.f32.mrf.mxu1 }
 0xa8a   :  { %v3546_v33 = vmul.f32 -1.442695, %v2770_v20  ;;  %v2777_v14 = vadd.f32 %v2697_v9, %v6565_v55 }
 0xa8c   :  { %4540 = vpow2.f32 %v3546_v33  ;;  %v3547_v27 = vmul.f32 -1.442695, %v2777_v14 }
 0xa8e   :  { %4542 = vpow2.f32 %v3547_v27 }
 0xa99   :  { %v4541_v11 = vpop.eup %4540 }
 0xa9a   :  { %v2774_v58 = vadd.f32 1.0, %v4541_v11 }
 0xa9b   :  { %v4543_v63 = vpop.eup %4542 }
 0xa9c   :  { %4544 = vrcp.f32 %v2774_v58  ;;  %v2781_v12 = vadd.f32 1.0, %v4543_v63  ;;  %v6567_v63 = vld [vmem:[#allocation17_spill] sm:$0xff] }
 0xa9e   :  { %4546 = vrcp.f32 %v2781_v12 }
 0xaa9   :  { %v4545_v26 = vpop.eup %4544 }
 0xaaa   :  { %v2785_v61 = vmul.f32 %v4545_v26, %v2784_v8  ;;  %v6571_v26 = vld [vmem:[#allocation13_spill] sm:$0xff] }
 0xaab   :  { %v4547_v28 = vpop.eup %4546 }
 0xaac   :  { %v2786_v0 = vadd.f32 %v2785_v61, %v6566_v18  ;;  %v2788_v20 = vsub.f32 1.0, %v4547_v28  ;;  %v2790_v9 = vmul.f32 %v4547_v28, %v6156_v59  ;;  %v6568_v59 = vld [vmem:[#allocation6_spill] sm:$0xff]  ;;  %v6569_v18 = vld [vmem:[#allocation7_spill] sm:$0xff] }
 0xaad   :  { %v6570_v61 = vld [vmem:[#allocation19_spill] sm:$0xff] }
 0xaae   :  { %4548 = vtanh.f32 %v2786_v0  ;;  %v6573_v0 = vld [vmem:[#allocation37_spill] sm:$0xff] }
 0xabb   :  { %v4549_v2 = vpop.eup %4548 }
 0xabc   :  { %v2789_v33 = vmul.f32 %v4549_v2, %v2788_v20 }
 0xabe   :  { %v6232_v55 = vadd.f32 %v2790_v9, %v2789_v33 }
 0xac0   :  { %2857 = vmatmul.mubr.f32.vlgmr.msra.gmra.mxu1 %v6232_v55  ;;  %4348 = vmatmul.mubr.f32.vlgmr.msra.gmra.mxu0 %v6232_v55 }
 0xac1   :  { %2956 = vmatpush1.msra.mxu1 %v5889_v39  ;;  %4351 = vmatpush3.msra.mxu0 %v5910_v54 }
 0xac2   :  { %2957 = vmatprep.subr.mxu1 %v5891_v5  ;;  %4352 = vmatprep.subr.mxu0 %v6499_v1 }
 0xac3   :  { %2958 = vmatpush1.msra.mxu1 %v5896_v38  ;;  %4353 = vmatpush3.msra.mxu0 %v5920_v6 }
 0xac4   :  { %2959 = vmatprep.subr.mxu1 %v5899_v51  ;;  %4354 = vmatprep.subr.mxu0 %v6499_v1 }
 0xac5   :  { %2960 = vmatpush1.msra.mxu1 %v5902_v52  ;;  %4355 = vmatpush3.msra.mxu0 %v5930_v16 }
 0xac6   :  { %2961 = vmatprep.subr.mxu1 %v5907_v53  ;;  %4356 = vmatprep.subr.mxu0 %v6499_v1 }
 0xac7   :  { %2962 = vmatpush1.msra.mxu1 %v5913_v56  ;;  %4357 = vmatpush3.msra.mxu0 %v5940_v24 }
 0xac8   :  { %2963 = vmatprep.subr.mxu1 %v5917_v31  ;;  %4358 = vmatprep.subr.mxu0 %v6499_v1 }
 0xac9   :  { %2964 = vmatpush1.msra.mxu1 %v5923_v13  ;;  %4359 = vmatpush3.msra.mxu0 %v5950_v62 }
 0xaca   :  { %2965 = vmatprep.subr.mxu1 %v5927_v15  ;;  %4360 = vmatprep.subr.mxu0 %v6499_v1 }
 0xacb   :  { %2966 = vmatpush1.msra.mxu1 %v5933_v21  ;;  %4361 = vmatpush3.msra.mxu0 %v5960_v34 }
 0xacc   :  { %2967 = vmatprep.subr.mxu1 %v5937_v22  ;;  %4362 = vmatprep.subr.mxu0 %v6499_v1 }
 0xacd   :  { %2968 = vmatpush1.msra.mxu1 %v5943_v25  ;;  %4363 = vmatpush3.msra.mxu0 %v5970_v46 }
 0xace   :  { %2969 = vmatprep.subr.mxu1 %v5947_v29  ;;  %4364 = vmatprep.subr.mxu0 %v6499_v1 }
 0xacf   :  { %2970 = vmatpush1.msra.mxu1 %v5953_v30  ;;  %4365 = vmatpush3.msra.mxu0 %v5980_v49 }
 0xad0   :  { %2971 = vmatprep.subr.mxu1 %v5957_v17  ;;  %4366 = vmatprep.subr.mxu0 %v6499_v1 }
 0xad1   :  { %2972 = vmatpush1.msra.mxu1 %v5963_v35  ;;  %4367 = vmatpush3.msra.mxu0 %v5990_v36 }
 0xad2   :  { %2973 = vmatprep.subr.mxu1 %v5967_v44  ;;  %4368 = vmatprep.subr.mxu0 %v6499_v1 }
 0xad3   :  { %2974 = vmatpush1.msra.mxu1 %v5973_v47  ;;  %4369 = vmatpush3.msra.mxu0 %v6000_v41 }
 0xad4   :  { %2975 = vmatprep.subr.mxu1 %v5977_v48  ;;  %4370 = vmatprep.subr.mxu0 %v6499_v1 }
 0xad5   :  { %2976 = vmatpush1.msra.mxu1 %v5983_v19  ;;  %4371 = vmatpush3.msra.mxu0 %v6010_v23 }
 0xad6   :  { %2977 = vmatprep.subr.mxu1 %v5987_v32  ;;  %4372 = vmatprep.subr.mxu0 %v6499_v1 }
 0xad7   :  { %2978 = vmatpush1.msra.mxu1 %v5993_v37  ;;  %4373 = vmatpush3.msra.mxu0 %v6020_v7 }
 0xad8   :  { %2979 = vmatprep.subr.mxu1 %v5997_v40  ;;  %4374 = vmatprep.subr.mxu0 %v6499_v1 }
 0xad9   :  { %2980 = vmatpush1.msra.mxu1 %v6003_v42  ;;  %4375 = vmatpush3.msra.mxu0 %v6030_v45 }
 0xada   :  { %2981 = vmatprep.subr.mxu1 %v6007_v43  ;;  %4376 = vmatprep.subr.mxu0 %v6499_v1 }
 0xadb   :  { %2982 = vmatpush1.msra.mxu1 %v6555_v4  ;;  %4377 = vmatpush3.msra.mxu0 %v6556_v10 }
 0xadc   :  { %2983 = vmatprep.subr.mxu1 %v6557_v50  ;;  %4378 = vmatprep.subr.mxu0 %v6499_v1 }
 0xadd   :  { %2984 = vmatpush1.msra.mxu1 %v6558_v3  ;;  %4379 = vmatpush3.msra.mxu0 %v6567_v63  ;;  %v6574_v63 = vld [vmem:[#allocation40_spill] sm:$0xff] }
 0xade   :  { %2985 = vmatprep.subr.mxu1 %v6568_v59  ;;  %4380 = vmatprep.subr.mxu0 %v6499_v1 }
 0xadf   :  { %2986 = vmatpush1.msra.mxu1 %v6569_v18  ;;  %3019 = vmatprep.mubr.f32.mxu1 %v6499_v1 }
 0xae0   :  { %4381 = vmatpush3.msra.mxu0 %v6570_v61  ;;  %4382 = vmatprep.mubr.msk.f32.mxu0 %vm4656_vm14, %v6499_v1 }
 0xae1   :  { %3118 = vmatprep.subr.mxu1 %v6571_v26  ;;  %4385 = vmatprep.subr.mxu0 %v6499_v1 }
 0xb80   :  { %v2858_v12 = vpop.f32.mrf.mxu1  ;;  %v2929_v8 = vpop.f32.mrf.mxu0 }
 0xb81   :  { %v2933_v14 = vadd.f32 %v2858_v12, %v6572_v60  ;;  %v2947_v26 = vadd.f32 %v2929_v8, %v6152_v57 }
 0xb82   :  { %v4349_v27 = vpop.f32.mrf.mxu0  ;;  %v2860_v58 = vpop.f32.mrf.mxu1 }
 0xb83   :  { %v3548_v11 = vmul.f32 -1.442695, %v2933_v14  ;;  %v2940_v28 = vadd.f32 %v2860_v58, %v6573_v0 }
 0xb85   :  { %4550 = vpow2.f32 %v3548_v11  ;;  %v3549_v20 = vmul.f32 -1.442695, %v2940_v28 }
 0xb87   :  { %4552 = vpow2.f32 %v3549_v20 }
 0xb92   :  { %v4551_v2 = vpop.eup %4550 }
 0xb93   :  { %v2937_v33 = vadd.f32 1.0, %v4551_v2 }
 0xb94   :  { %v4553_v9 = vpop.eup %4552 }
 0xb95   :  { %4554 = vrcp.f32 %v2937_v33  ;;  %v2944_v61 = vadd.f32 1.0, %v4553_v9  ;;  %v6585_v33 = vld [vmem:[#allocation44_spill] sm:$0xff] }
 0xb97   :  { %4556 = vrcp.f32 %v2944_v61 }
 0xba2   :  { %v4555_v18 = vpop.eup %4554 }
 0xba3   :  { %v2948_v59 = vmul.f32 %v4555_v18, %v2947_v26 }
 0xba4   :  { %v4557_v60 = vpop.eup %4556 }
 0xba5   :  { %v2949_v12 = vadd.f32 %v2948_v59, %v6574_v63  ;;  %v2951_v14 = vsub.f32 1.0, %v4557_v60  ;;  %v2953_v58 = vmul.f32 %v4557_v60, %v6232_v55 }
 0xba7   :  { %4558 = vtanh.f32 %v2949_v12 }
 0xbb4   :  { %v4559_v27 = vpop.eup %4558 }
 0xbb5   :  { %v2952_v11 = vmul.f32 %v4559_v27, %v2951_v14 }
 0xbb7   :  { %v6308_v0 = vadd.f32 %v2953_v58, %v2952_v11  ;;  %v3356_v58 = vld [vmem:[%s6416_s6 + $0x2] sm:$0x1] }
 0xbb9   :  { %3020 = vmatmul.mubr.f32.vlgmr.msra.gmra.mxu1 %v6308_v0  ;;  %4383 = vmatmul.mubr.f32.vlgmr.msra.gmra.mxu0 %v6308_v0 }
 0xbba   :  { %3119 = vmatpush1.msra.mxu1 %v5889_v39  ;;  %4386 = vmatpush3.msra.mxu0 %v5910_v54  ;;  %v6575_v39 = vld [vmem:[#allocation17_spill] sm:$0xff]  ;;  %v6579_v54 = vld [vmem:[#allocation39_spill] sm:$0xff] }
 0xbbb   :  { %3120 = vmatprep.subr.mxu1 %v5891_v5  ;;  %4387 = vmatprep.subr.mxu0 %v6499_v1  ;;  %v6576_v5 = vld [vmem:[#allocation6_spill] sm:$0xff] }
 0xbbc   :  { %3121 = vmatpush1.msra.mxu1 %v5896_v38  ;;  %4388 = vmatpush3.msra.mxu0 %v5920_v6  ;;  %v6577_v38 = vld [vmem:[#allocation7_spill] sm:$0xff] }
 0xbbd   :  { %3122 = vmatprep.subr.mxu1 %v5899_v51  ;;  %4389 = vmatprep.subr.mxu0 %v6499_v1  ;;  %v6578_v51 = vld [vmem:[#allocation19_spill] sm:$0xff] }
 0xbbe   :  { %3123 = vmatpush1.msra.mxu1 %v5902_v52  ;;  %4390 = vmatpush3.msra.mxu0 %v5930_v16 }
 0xbbf   :  { %3124 = vmatprep.subr.mxu1 %v5907_v53  ;;  %4391 = vmatprep.subr.mxu0 %v6499_v1 }
 0xbc0   :  { %3125 = vmatpush1.msra.mxu1 %v5913_v56  ;;  %4392 = vmatpush3.msra.mxu0 %v5940_v24 }
 0xbc1   :  { %3126 = vmatprep.subr.mxu1 %v5917_v31  ;;  %4393 = vmatprep.subr.mxu0 %v6499_v1 }
 0xbc2   :  { %3127 = vmatpush1.msra.mxu1 %v5923_v13  ;;  %4394 = vmatpush3.msra.mxu0 %v5950_v62 }
 0xbc3   :  { %3128 = vmatprep.subr.mxu1 %v5927_v15  ;;  %4395 = vmatprep.subr.mxu0 %v6499_v1  ;;  %v6580_v15 = vld [vmem:[#allocation41_spill] sm:$0xff] }
 0xbc4   :  { %3129 = vmatpush1.msra.mxu1 %v5933_v21  ;;  %4396 = vmatpush3.msra.mxu0 %v5960_v34  ;;  %v6581_v34 = vld [vmem:[#allocation42_spill] sm:$0xff] }
 0xbc5   :  { %3130 = vmatprep.subr.mxu1 %v5937_v22  ;;  %4397 = vmatprep.subr.mxu0 %v6499_v1 }
 0xbc6   :  { %3131 = vmatpush1.msra.mxu1 %v5943_v25  ;;  %4398 = vmatpush3.msra.mxu0 %v5970_v46 }
 0xbc7   :  { %3132 = vmatprep.subr.mxu1 %v5947_v29  ;;  %4399 = vmatprep.subr.mxu0 %v6499_v1 }
 0xbc8   :  { %3133 = vmatpush1.msra.mxu1 %v5953_v30  ;;  %4400 = vmatpush3.msra.mxu0 %v5980_v49 }
 0xbc9   :  { %3134 = vmatprep.subr.mxu1 %v5957_v17  ;;  %4401 = vmatprep.subr.mxu0 %v6499_v1 }
 0xbca   :  { %3135 = vmatpush1.msra.mxu1 %v5963_v35  ;;  %4402 = vmatpush3.msra.mxu0 %v5990_v36  ;;  %v6582_v36 = vld [vmem:[#allocation21_spill] sm:$0xff] }
 0xbcb   :  { %3136 = vmatprep.subr.mxu1 %v5967_v44  ;;  %4403 = vmatprep.subr.mxu0 %v6499_v1 }
 0xbcc   :  { %3137 = vmatpush1.msra.mxu1 %v5973_v47  ;;  %4404 = vmatpush3.msra.mxu0 %v6000_v41 }
 0xbcd   :  { %3138 = vmatprep.subr.mxu1 %v5977_v48  ;;  %4405 = vmatprep.subr.mxu0 %v6499_v1 }
 0xbce   :  { %3139 = vmatpush1.msra.mxu1 %v5983_v19  ;;  %4406 = vmatpush3.msra.mxu0 %v6010_v23 }
 0xbcf   :  { %3140 = vmatprep.subr.mxu1 %v5987_v32  ;;  %4407 = vmatprep.subr.mxu0 %v6499_v1  ;;  %v3281_v32 = vld [vmem:[%s6416_s6] sm:$0x3] }
 0xbd0   :  { %3141 = vmatpush1.msra.mxu1 %v5993_v37  ;;  %4408 = vmatpush3.msra.mxu0 %v6020_v7  ;;  %v4657_v37 = vmov 1  }
 0xbd1   :  { %3142 = vmatprep.subr.mxu1 %v5997_v40  ;;  %4409 = vmatprep.subr.mxu0 %v6499_v1 }
 0xbd2   :  { %3143 = vmatpush1.msra.mxu1 %v6003_v42  ;;  %4410 = vmatpush3.msra.mxu0 %v6030_v45  ;;  %v6583_v42 = vld [vmem:[#allocation43_spill] sm:$0xff]  ;;  %v3352_v45 = vld [vmem:[%s6415_s5 + $0x4] ss:$0 sm:$0xff] }
 0xbd3   :  { %3144 = vmatprep.subr.mxu1 %v6007_v43  ;;  %4411 = vmatprep.subr.mxu0 %v6499_v1 }
 0xbd4   :  { %3145 = vmatpush1.msra.mxu1 %v6555_v4  ;;  %4412 = vmatpush3.msra.mxu0 %v6556_v10 }
 0xbd5   :  { %3146 = vmatprep.subr.mxu1 %v6557_v50  ;;  %4413 = vmatprep.subr.mxu0 %v6499_v1 }
 0xbd6   :  { %3147 = vmatpush1.msra.mxu1 %v6558_v3  ;;  %4414 = vmatpush3.msra.mxu0 %v6575_v39 }
 0xbd7   :  { %3148 = vmatprep.subr.mxu1 %v6576_v5  ;;  %4415 = vmatprep.subr.mxu0 %v6499_v1 }
 0xbd8   :  { %3149 = vmatpush1.msra.mxu1 %v6577_v38  ;;  %3182 = vmatprep.mubr.f32.mxu1 %v6499_v1 }
 0xbd9   :  { %4416 = vmatpush3.msra.mxu0 %v6578_v51  ;;  %4417 = vmatprep.mubr.msk.f32.mxu0 %vm4656_vm14, %v6499_v1 }
 0xbda   :  { %4420 = vmatprep.subr.mxu1 %v6499_v1  ;;  %4439 = vset.pattern.permute.xlu1 %v4657_v37 }
 0xc79   :  { %v3021_v52 = vpop.f32.mrf.mxu1  ;;  %v3092_v53 = vpop.f32.mrf.mxu0 }
 0xc7a   :  { %v3096_v56 = vadd.f32 %v3021_v52, %v6579_v54  ;;  %v3110_v62 = vadd.f32 %v3092_v53, %v6152_v57  ;;  %v3441_v53 = vpop.permute.xlu0 %3440 }
 0xc7b   :  { %v4384_v31 = vpop.f32.mrf.mxu0  ;;  %v3023_v13 = vpop.f32.mrf.mxu1 }
 0xc7c   :  { %v3550_v6 = vmul.f32 -1.442695, %v3096_v56  ;;  %v3103_v16 = vadd.f32 %v3023_v13, %v6580_v15 }
 0xc7e   :  { %4560 = vpow2.f32 %v3550_v6  ;;  %v3551_v21 = vmul.f32 -1.442695, %v3103_v16 }
 0xc80   :  { %4562 = vpow2.f32 %v3551_v21 }
 0xc8b   :  { %v4561_v22 = vpop.eup %4560 }
 0xc8c   :  { %v3100_v24 = vadd.f32 1.0, %v4561_v22 }
 0xc8d   :  { %v4563_v25 = vpop.eup %4562 }
 0xc8e   :  { %4564 = vrcp.f32 %v3100_v24  ;;  %v3107_v29 = vadd.f32 1.0, %v4563_v25 }
 0xc90   :  { %4566 = vrcp.f32 %v3107_v29 }
 0xc9b   :  { %v4565_v30 = vpop.eup %4564 }
 0xc9c   :  { %v3111_v17 = vmul.f32 %v4565_v30, %v3110_v62 }
 0xc9d   :  { %v4567_v44 = vpop.eup %4566 }
 0xc9e   :  { %v3112_v35 = vadd.f32 %v3111_v17, %v6581_v34  ;;  %v3114_v46 = vsub.f32 1.0, %v4567_v44  ;;  %v3116_v49 = vmul.f32 %v4567_v44, %v6308_v0 }
 0xca0   :  { %4568 = vtanh.f32 %v3112_v35 }
 0xcad   :  { %v4569_v47 = vpop.eup %4568 }
 0xcae   :  { %v3115_v48 = vmul.f32 %v4569_v47, %v3114_v46 }
 0xcb0   :  { %v3117_v19 = vadd.f32 %v3116_v49, %v3115_v48 }
 0xcb2   :  { %3183 = vmatmul.mubr.f32.vlgmr.msra.gmra.mxu1 %v3117_v19  ;;  %4418 = vmatmul.mubr.f32.vlgmr.msra.gmra.mxu0 %v3117_v19 }
 0xcb3   :  { %4421 = vmatpush3.xpose.msra.mxu1 %v3281_v32  ;;  %4422 = vmatprep.mubr.msk.f32.mxu1 %vm4656_vm14, %v6499_v1 }
 0xcb4   :  { %4425 = vmatprep.subr.mxu1 %v6499_v1 }
 0xcb6   :  { %4423 = vmatmul.mubr.f32.vlgmr.msra.gmra.mxu1 %v6582_v36 }
 0xcb7   :  { %4427 = vmatprep.mubr.msk.f32.mxu1 %vm4656_vm14, %v6499_v1  ;;  %v6584_v1 = vld [vmem:[#allocation45_spill] sm:$0xff] }
 0xd72   :  { %v3184_v40 = vpop.f32.mrf.mxu1  ;;  %v3255_v41 = vpop.f32.mrf.mxu0 }
 0xd73   :  { %v3259_v43 = vadd.f32 %v3184_v40, %v6583_v42  ;;  %v3273_v28 = vadd.f32 %v3255_v41, %v6152_v57  ;;  %v6586_v57 = vld [vmem:[#allocation14_spill] sm:$0xff] }
 0xd74   :  { %v3186_v23 = vpop.f32.mrf.mxu1  ;;  %v4419_v7 = vpop.f32.mrf.mxu0  ;;  %v6587_v39 = vsub.s32 0, %v6586_v57 }
 0xd75   :  { %v3552_v4 = vmul.f32 -1.442695, %v3259_v43  ;;  %v3266_v55 = vadd.f32 %v3186_v23, %v6584_v1 }
 0xd76   :  { %v3348_v10 = vpop.f32.mrf.mxu1 }
 0xd77   :  { %4570 = vpow2.f32 %v3552_v4  ;;  %v3353_v50 = vadd.f32 %v3352_v45, %v3348_v10  ;;  %3429 = vperm.xlu1 %4439, %v3348_v10   ;;  %v3553_v63 = vmul.f32 -1.442695, %v3266_v55 }
 0xd78   :  { %v4424_v3 = vpop.f32.mrf.mxu1 }
 0xd79   :  { %3355 = vst.msk [vmem:[%s6418_s8] sm:$0x3] %vm3354_vm0, %v3353_v50  ;;  %4572 = vpow2.f32 %v3553_v63 }
 0xd84   :  { %v4571_v59 = vpop.eup %4570 }
 0xd85   :  { %v3263_v18 = vadd.f32 1.0, %v4571_v59 }
 0xd86   :  { %v4573_v61 = vpop.eup %4572 }
 0xd87   :  { %4574 = vrcp.f32 %v3263_v18  ;;  %v3270_v8 = vadd.f32 1.0, %v4573_v61 }
 0xd89   :  { %4576 = vrcp.f32 %v3270_v8 }
 0xd94   :  { %v4575_v20 = vpop.eup %4574 }
 0xd95   :  { %v3274_v2 = vmul.f32 %v4575_v20, %v3273_v28 }
 0xd96   :  { %v4577_v26 = vpop.eup %4576 }
 0xd97   :  { %v3275_v9 = vadd.f32 %v3274_v2, %v6585_v33  ;;  %v3277_v12 = vsub.f32 1.0, %v4577_v26  ;;  %v3279_v27 = vmul.f32 %v4577_v26, %v3117_v19 }
 0xd99   :  { %4578 = vtanh.f32 %v3275_v9 }
 0xda6   :  { %v4579_v60 = vpop.eup %4578 }
 0xda7   :  { %v3278_v14 = vmul.f32 %v4579_v60, %v3277_v12 }
 0xda9   :  { %v3280_v11 = vadd.f32 %v3279_v27, %v3278_v14 }
 0xdab   :  { %4426 = vmatpush3.xpose.msra.mxu1 %v3280_v11 }
 0xdae   :  { %4428 = vmatmul.mubr.f32.vlgmr.msra.gmra.mxu1 %v3356_v58 }
 0xdf2   :  { %v3430_v38 = vpop.permute.xlu1 %3429 }
 0xe6e   :  { %v3423_v0 = vpop.f32.mrf.mxu1 }
 0xe6f   :  { %v3435_v5 = vrot.slane %v3423_v0, %v6587_v39 }
 0xe70   :  { %v4429_v51 = vpop.f32.mrf.mxu1 }
 0xe71   :  { %v3436_v52 = vadd.f32 %v3435_v5, %v3430_v38 }
 0xe73   :  { %v3443_v54 = vadd.f32 %v3441_v53, %v3436_v52 }
 0xe75   :  { %v3444_v56 = vmax.f32 %v3443_v54, 0.0 }
 0xe77   :  { %3446 = vst.msk [vmem:[%s6417_s7] sm:$0x3] %vm3445_vm1, %v3444_v56 }
 0xe78   :  { %3459 = vsyncpa [#allocation3], 1 }

</bundles_post_ra>
